<compile_context>
chip_gen: v7x
topology: tpu7x:2x2x1
jax: 0.10.0
libtpu: 0.0.40
codegen_flags: <defaults>
</compile_context>

<pallas_src>
import jax
import jax.numpy as jnp
from jax import lax
from jax.experimental import pallas as pl
from jax.experimental.pallas import tpu as pltpu

EPS = 1e-5


def _compiler_params():
    """Per-generation VMEM limit: ~75% of physical VMEM (48 MiB on v7x, ~96 MiB on v5e/v6e)."""
    vmem_cap = 64 * 1024 * 1024
    try:
        info = pltpu.get_tpu_info()
        vmem_cap = int(getattr(info, "vmem_capacity_bytes", vmem_cap))
    except Exception:
        pass
    return pltpu.CompilerParams(
        dimension_semantics=("parallel",),
        vmem_limit_bytes=(vmem_cap * 3) // 4,
    )


# --------------------------- pass 1: conv1 + stats ---------------------------
def conv1_kernel(x_ref, w1_ref, y_ref, stat_ref, xpad_ref):
    _, H, W, Cin = x_ref.shape
    Hp, Wpad, _ = xpad_ref.shape
    P = w1_ref.shape[-1]
    L = Wpad - W - 1                     # sublane-aligned interior column offset

    # Zero only the halo strips the taps actually read.  Done every step (see header).
    zrow = jnp.zeros((1, Wpad, Cin), xpad_ref.dtype)
    xpad_ref[0:1, :, :] = zrow
    xpad_ref[Hp - 1:Hp, :, :] = zrow
    zcol = jnp.zeros((Hp, 1, Cin), xpad_ref.dtype)
    xpad_ref[:, L - 1:L, :] = zcol
    xpad_ref[:, L + W:L + W + 1, :] = zcol

    # Aligned interior store (column offset L is a multiple of the sublane tile).
    xpad_ref[1:H + 1, L:L + W, :] = x_ref[0]

    # im2col: one (H*W, 9*Cin) slab -> single deep-K MXU matmul, f32 accumulation.
    cols = []
    for dh in range(3):
        for dw in range(3):
            cols.append(xpad_ref[dh:dh + H, L - 1 + dw:L - 1 + dw + W, :].reshape(H * W, Cin))
    a = jnp.concatenate(cols, axis=-1)
    y = jnp.dot(a, w1_ref[...], preferred_element_type=jnp.float32)   # (H*W, P) f32

    # Per-image BN1 sufficient statistics in f32, before the staging downcast.
    s = jnp.sum(y, axis=0, keepdims=True)
    ss = jnp.sum(y * y, axis=0, keepdims=True)
    stat_ref[...] = jnp.concatenate([s, ss], axis=0).reshape(1, 2, P)

    y_ref[...] = y.astype(y_ref.dtype).reshape(1, H, W, P)


# ------------------- pass 2: bn1-affine + relu + conv2 + stats ---------------
def bn1_conv2_kernel(y1_ref, s1_ref, t1_ref, w2_ref, y2_ref, stat_ref, ypad_ref):
    _, H, W, P = y1_ref.shape
    Hp, Wpad, _ = ypad_ref.shape
    L = Wpad - W - 1

    scale = s1_ref[...].reshape(1, 1, P)
    shift = t1_ref[...].reshape(1, 1, P)
    # BN1 affine + ReLU in f32, single downcast for the conv2 operand.
    y1 = jnp.maximum(y1_ref[0].astype(jnp.float32) * scale + shift, 0.0)

    zrow = jnp.zeros((1, Wpad, P), ypad_ref.dtype)
    ypad_ref[0:1, :, :] = zrow
    ypad_ref[Hp - 1:Hp, :, :] = zrow
    zcol = jnp.zeros((Hp, 1, P), ypad_ref.dtype)
    ypad_ref[:, L - 1:L, :] = zcol
    ypad_ref[:, L + W:L + W + 1, :] = zcol
    ypad_ref[1:H + 1, L:L + W, :] = y1.astype(ypad_ref.dtype)

    cols = []
    for dh in range(3):
        for dw in range(3):
            cols.append(ypad_ref[dh:dh + H, L - 1 + dw:L - 1 + dw + W, :].reshape(H * W, P))
    a = jnp.concatenate(cols, axis=-1)
    y2 = jnp.dot(a, w2_ref[...], preferred_element_type=jnp.float32)

    s = jnp.sum(y2, axis=0, keepdims=True)
    ss = jnp.sum(y2 * y2, axis=0, keepdims=True)
    stat_ref[...] = jnp.concatenate([s, ss], axis=0).reshape(1, 2, P)

    y2_ref[...] = y2.astype(y2_ref.dtype).reshape(1, H, W, P)


# ------------------- pass 3: bn2-affine + residual + relu --------------------
def bn2_add_relu_kernel(y2_ref, x_ref, s2_ref, t2_ref, o_ref):
    # Lane-dense (1, H, W*P) blocks; scale/shift pre-tiled to width W*P.
    scale = s2_ref[...].reshape(1, 1, -1)
    shift = t2_ref[...].reshape(1, 1, -1)
    preact = (y2_ref[...].astype(jnp.float32) * scale + shift
              + x_ref[...].astype(jnp.float32))
    o_ref[...] = jnp.maximum(preact, 0.0)


# --------------------------------- wrapper -----------------------------------
def basic_block_forward(x_nchw, params, staging_dtype=jnp.bfloat16):
    N, Cin, H, W = x_nchw.shape
    P = params["w1"].shape[0]
    assert Cin == P, "identity shortcut requires inplanes == planes (stride=1, downsample=None)"

    Hp = H + 2
    # Sublane-aligned left halo: 8 columns for 4-byte dtypes, 16 for 2-byte.
    LPAD = 8 * 4 // jnp.dtype(staging_dtype).itemsize
    Wpad = LPAD + W + 1

    cparams = _compiler_params()

    # NHWC + staging cast fused into one XLA op; no wrapper-side jnp.pad.
    x = jnp.transpose(x_nchw, (0, 2, 3, 1)).astype(staging_dtype)

    # torch OIHW -> (kh, kw, in, out) -> (9*in, out), matching im2col column order.
    w1k = jnp.transpose(params["w1"], (2, 3, 1, 0)).reshape(9 * Cin, P).astype(staging_dtype)
    w2k = jnp.transpose(params["w2"], (2, 3, 1, 0)).reshape(9 * P, P).astype(staging_dtype)

    cnt = float(N * H * W)

    # ---- pass 1: conv1 + per-image BN1 sufficient statistics ----
    y1raw, stat1 = pl.pallas_call(
        conv1_kernel,
        grid=(N,),
        in_specs=[
            pl.BlockSpec((1, H, W, Cin), lambda n: (n, 0, 0, 0)),
            pl.BlockSpec((9 * Cin, P), lambda n: (0, 0)),          # resident weights
        ],
        out_specs=(
            pl.BlockSpec((1, H, W, P), lambda n: (n, 0, 0, 0)),
            pl.BlockSpec((1, 2, P), lambda n: (n, 0, 0)),
        ),
        out_shape=(
            jax.ShapeDtypeStruct((N, H, W, P), staging_dtype),
            jax.ShapeDtypeStruct((N, 2, P), jnp.float32),
        ),
        scratch_shapes=[pltpu.VMEM((Hp, Wpad, Cin), staging_dtype)],
        compiler_params=cparams,
    )(x, w1k)

    sum1 = jnp.sum(stat1[:, 0, :], axis=0)
    sumsq1 = jnp.sum(stat1[:, 1, :], axis=0)
    mean1 = sum1 / cnt
    var1 = jnp.maximum(sumsq1 / cnt - mean1 * mean1, 0.0)
    scale1 = params["g1"] * lax.rsqrt(var1 + EPS)
    shift1 = params["b1"] - mean1 * scale1

    # ---- pass 2: bn1 + relu + conv2 + per-image BN2 sufficient statistics ----
    y2raw, stat2 = pl.pallas_call(
        bn1_conv2_kernel,
        grid=(N,),
        in_specs=[
            pl.BlockSpec((1, H, W, P), lambda n: (n, 0, 0, 0)),
            pl.BlockSpec((1, P), lambda n: (0, 0)),
            pl.BlockSpec((1, P), lambda n: (0, 0)),
            pl.BlockSpec((9 * P, P), lambda n: (0, 0)),
        ],
        out_specs=(
            pl.BlockSpec((1, H, W, P), lambda n: (n, 0, 0, 0)),
            pl.BlockSpec((1, 2, P), lambda n: (n, 0, 0)),
        ),
        out_shape=(
            jax.ShapeDtypeStruct((N, H, W, P), staging_dtype),
            jax.ShapeDtypeStruct((N, 2, P), jnp.float32),
        ),
        scratch_shapes=[pltpu.VMEM((Hp, Wpad, P), staging_dtype)],
        compiler_params=cparams,
    )(y1raw, scale1.reshape(1, P), shift1.reshape(1, P), w2k)

    sum2 = jnp.sum(stat2[:, 0, :], axis=0)
    sumsq2 = jnp.sum(stat2[:, 1, :], axis=0)
    mean2 = sum2 / cnt
    var2 = jnp.maximum(sumsq2 / cnt - mean2 * mean2, 0.0)
    scale2 = params["g2"] * lax.rsqrt(var2 + EPS)
    shift2 = params["b2"] - mean2 * scale2

    # ---- pass 3: bn2 + identity residual + relu (lane-dense views) ----
    WP = W * P
    y2_flat = y2raw.reshape(N, H, WP)           # free bitcast reshapes in HBM
    x_flat = x.reshape(N, H, WP)
    scale2_t = jnp.tile(scale2, W).reshape(1, WP)   # index w*P + p -> scale2[p]
    shift2_t = jnp.tile(shift2, W).reshape(1, WP)

    out_flat = pl.pallas_call(
        bn2_add_relu_kernel,
        grid=(N,),
        in_specs=[
            pl.BlockSpec((1, H, WP), lambda n: (n, 0, 0)),
            pl.BlockSpec((1, H, WP), lambda n: (n, 0, 0)),          # residual
            pl.BlockSpec((1, WP), lambda n: (0, 0)),
            pl.BlockSpec((1, WP), lambda n: (0, 0)),
        ],
        out_specs=pl.BlockSpec((1, H, WP), lambda n: (n, 0, 0)),
        out_shape=jax.ShapeDtypeStruct((N, H, WP), jnp.float32),
        compiler_params=cparams,
    )(y2_flat, x_flat, scale2_t, shift2_t)

    out_nhwc = out_flat.reshape(N, H, W, P)
    return jnp.transpose(out_nhwc, (0, 3, 1, 2))                     # NCHW


# ------------------------------ pure-JAX reference ---------------------------
def basic_block_reference(x, params):
    """Pure-JAX reference (NCHW), mirrors the PyTorch forward (training-mode BN)."""
    def conv(x, w):
        return lax.conv_general_dilated(
            x, w, window_strides=(1, 1), padding=((1, 1), (1, 1)),
            dimension_numbers=("NCHW", "OIHW", "NCHW"))

    def bn(x, g, b):
        mean = jnp.mean(x, axis=(0, 2, 3), keepdims=True)
        var = jnp.mean((x - mean) ** 2, axis=(0, 2, 3), keepdims=True)
        return ((x - mean) * lax.rsqrt(var + EPS)
                * g.reshape(1, -1, 1, 1) + b.reshape(1, -1, 1, 1))

    out = jnp.maximum(bn(conv(x, params["w1"]), params["g1"], params["b1"]), 0.0)
    out = bn(conv(out, params["w2"]), params["g2"], params["b2"])
    out = out + x
    return jnp.maximum(out, 0.0)


if __name__ == "__main__":
    N, C, H, W = 2, 4, 16, 16          # inplanes = planes = 4, stride = 1
    key = jax.random.PRNGKey(0)
    k_x, k_w1, k_w2, k_g1, k_b1, k_g2, k_b2 = jax.random.split(key, 7)

    x = jax.random.normal(k_x, (N, C, H, W), jnp.float32)
    params = {
        "w1": 0.1 * jax.random.normal(k_w1, (C, C, 3, 3), jnp.float32),
        "w2": 0.1 * jax.random.normal(k_w2, (C, C, 3, 3), jnp.float32),
        "g1": jax.random.uniform(k_g1, (C,), jnp.float32, 0.8, 1.2),
        "b1": 0.05 * jax.random.normal(k_b1, (C,), jnp.float32),
        "g2": jax.random.uniform(k_g2, (C,), jnp.float32, 0.8, 1.2),
        "b2": 0.05 * jax.random.normal(k_b2, (C,), jnp.float32),
    }

    fwd = jax.jit(basic_block_forward, static_argnames=("staging_dtype",))
    ref = jax.block_until_ready(basic_block_reference(x, params))

    # Exact-precision path (f32 staging + f32 MXU operands): tight check.
    out_f32 = jax.block_until_ready(fwd(x, params, staging_dtype=jnp.float32))
    assert out_f32.shape == (N, C, H, W)
    assert jnp.allclose(out_f32, ref, atol=1e-3, rtol=1e-3), (
        f"f32 path max abs err {jnp.max(jnp.abs(out_f32 - ref))}")

    # Bandwidth-optimized path (bf16 staging + bf16 MXU operands): bf16 tolerance.
    out_bf16 = jax.block_until_ready(fwd(x, params, staging_dtype=jnp.bfloat16))
    assert out_bf16.shape == (N, C, H, W)
    assert jnp.allclose(out_bf16, ref, atol=5e-2, rtol=5e-2), (
        f"bf16 path max abs err {jnp.max(jnp.abs(out_bf16 - ref))}")

    print("KERNEL_OK")
</pallas_src>

<mosaic_0001>
module attributes {stable_mosaic.version = 11 : i64} {
  func.func @conv1_kernel(%arg0: i32, %arg1: memref<1x16x16x4xf32, #tpu.memory_space<vmem>>, %arg2: memref<36x4xf32, #tpu.memory_space<vmem>>, %arg3: memref<1x16x16x4xf32, #tpu.memory_space<vmem>>, %arg4: memref<1x2x4xf32, #tpu.memory_space<vmem>>, %arg5: memref<18x25x4xf32, #tpu.memory_space<vmem>>) attributes {dimension_semantics = [#tpu.dimension_semantics<parallel>], iteration_bounds = array<i64: 2>, scalar_prefetch = 0 : i64, scratch_operands = 1 : i64, tpu.core_type = #tpu.core_type<tc>, window_params = [{transform_indices = @transform_0, window_bounds = array<i64: 1, 16, 16, 4>}, {pipeline_mode = #tpu.pipeline_mode<synchronous>, transform_indices = @transform_1, window_bounds = array<i64: 36, 4>}, {transform_indices = @transform_2, window_bounds = array<i64: 1, 16, 16, 4>}, {transform_indices = @transform_3, window_bounds = array<i64: 1, 2, 4>}]} {
    %cst = arith.constant 0.000000e+00 : f32
    %0 = vector.broadcast %cst : f32 to vector<1x25x4xf32>
    %c0 = arith.constant 0 : index
    %c0_0 = arith.constant 0 : index
    %c0_1 = arith.constant 0 : index
    %1 = vector.load %arg5[%c0, %c0_0, %c0_1] : memref<18x25x4xf32, #tpu.memory_space<vmem>>, vector<1x25x4xf32>
    tpu.vector_store %arg5[%c0, %c0_0, %c0_1], %0 {strides = array<i32>} : memref<18x25x4xf32, #tpu.memory_space<vmem>>, vector<1x25x4xf32>,
    %c17 = arith.constant 17 : index
    %c0_2 = arith.constant 0 : index
    %c0_3 = arith.constant 0 : index
    %2 = vector.load %arg5[%c17, %c0_2, %c0_3] : memref<18x25x4xf32, #tpu.memory_space<vmem>>, vector<1x25x4xf32>
    tpu.vector_store %arg5[%c17, %c0_2, %c0_3], %0 {strides = array<i32>} : memref<18x25x4xf32, #tpu.memory_space<vmem>>, vector<1x25x4xf32>,
    %cst_4 = arith.constant 0.000000e+00 : f32
    %3 = vector.broadcast %cst_4 : f32 to vector<18x1x4xf32>
    %c0_5 = arith.constant 0 : index
    %c7 = arith.constant 7 : index
    %c0_6 = arith.constant 0 : index
    %4 = vector.load %arg5[%c0_5, %c7, %c0_6] : memref<18x25x4xf32, #tpu.memory_space<vmem>>, vector<18x1x4xf32>
    tpu.vector_store %arg5[%c0_5, %c7, %c0_6], %3 {strides = array<i32>} : memref<18x25x4xf32, #tpu.memory_space<vmem>>, vector<18x1x4xf32>,
    %c0_7 = arith.constant 0 : index
    %c24 = arith.constant 24 : index
    %c0_8 = arith.constant 0 : index
    %5 = vector.load %arg5[%c0_7, %c24, %c0_8] : memref<18x25x4xf32, #tpu.memory_space<vmem>>, vector<18x1x4xf32>
    tpu.vector_store %arg5[%c0_7, %c24, %c0_8], %3 {strides = array<i32>} : memref<18x25x4xf32, #tpu.memory_space<vmem>>, vector<18x1x4xf32>,
    %c0_9 = arith.constant 0 : index
    %c0_10 = arith.constant 0 : index
    %c0_11 = arith.constant 0 : index
    %c0_12 = arith.constant 0 : index
    %6 = vector.load %arg1[%c0_9, %c0_10, %c0_11, %c0_12] : memref<1x16x16x4xf32, #tpu.memory_space<vmem>>, vector<1x16x16x4xf32>
    %7 = vector.shape_cast %6 : vector<1x16x16x4xf32> to vector<16x16x4xf32>
    %c1 = arith.constant 1 : index
    %c8 = arith.constant 8 : index
    %c0_13 = arith.constant 0 : index
    %8 = vector.load %arg5[%c1, %c8, %c0_13] : memref<18x25x4xf32, #tpu.memory_space<vmem>>, vector<16x16x4xf32>
    tpu.vector_store %arg5[%c1, %c8, %c0_13], %7 {strides = array<i32>} : memref<18x25x4xf32, #tpu.memory_space<vmem>>, vector<16x16x4xf32>,
    %c0_14 = arith.constant 0 : index
    %c7_15 = arith.constant 7 : index
    %c0_16 = arith.constant 0 : index
    %9 = vector.load %arg5[%c0_14, %c7_15, %c0_16] : memref<18x25x4xf32, #tpu.memory_space<vmem>>, vector<16x16x4xf32>
    %10 = vector.shape_cast %9 : vector<16x16x4xf32> to vector<256x4xf32>
    %c0_17 = arith.constant 0 : index
    %c8_18 = arith.constant 8 : index
    %c0_19 = arith.constant 0 : index
    %11 = vector.load %arg5[%c0_17, %c8_18, %c0_19] : memref<18x25x4xf32, #tpu.memory_space<vmem>>, vector<16x16x4xf32>
    %12 = vector.shape_cast %11 : vector<16x16x4xf32> to vector<256x4xf32>
    %c0_20 = arith.constant 0 : index
    %c9 = arith.constant 9 : index
    %c0_21 = arith.constant 0 : index
    %13 = vector.load %arg5[%c0_20, %c9, %c0_21] : memref<18x25x4xf32, #tpu.memory_space<vmem>>, vector<16x16x4xf32>
    %14 = vector.shape_cast %13 : vector<16x16x4xf32> to vector<256x4xf32>
    %c1_22 = arith.constant 1 : index
    %c7_23 = arith.constant 7 : index
    %c0_24 = arith.constant 0 : index
    %15 = vector.load %arg5[%c1_22, %c7_23, %c0_24] : memref<18x25x4xf32, #tpu.memory_space<vmem>>, vector<16x16x4xf32>
    %16 = vector.shape_cast %15 : vector<16x16x4xf32> to vector<256x4xf32>
    %c1_25 = arith.constant 1 : index
    %c8_26 = arith.constant 8 : index
    %c0_27 = arith.constant 0 : index
    %17 = vector.load %arg5[%c1_25, %c8_26, %c0_27] : memref<18x25x4xf32, #tpu.memory_space<vmem>>, vector<16x16x4xf32>
    %18 = vector.shape_cast %17 : vector<16x16x4xf32> to vector<256x4xf32>
    %c1_28 = arith.constant 1 : index
    %c9_29 = arith.constant 9 : index
    %c0_30 = arith.constant 0 : index
    %19 = vector.load %arg5[%c1_28, %c9_29, %c0_30] : memref<18x25x4xf32, #tpu.memory_space<vmem>>, vector<16x16x4xf32>
    %20 = vector.shape_cast %19 : vector<16x16x4xf32> to vector<256x4xf32>
    %c2 = arith.constant 2 : index
    %c7_31 = arith.constant 7 : index
    %c0_32 = arith.constant 0 : index
    %21 = vector.load %arg5[%c2, %c7_31, %c0_32] : memref<18x25x4xf32, #tpu.memory_space<vmem>>, vector<16x16x4xf32>
    %22 = vector.shape_cast %21 : vector<16x16x4xf32> to vector<256x4xf32>
    %c2_33 = arith.constant 2 : index
    %c8_34 = arith.constant 8 : index
    %c0_35 = arith.constant 0 : index
    %23 = vector.load %arg5[%c2_33, %c8_34, %c0_35] : memref<18x25x4xf32, #tpu.memory_space<vmem>>, vector<16x16x4xf32>
    %24 = vector.shape_cast %23 : vector<16x16x4xf32> to vector<256x4xf32>
    %c2_36 = arith.constant 2 : index
    %c9_37 = arith.constant 9 : index
    %c0_38 = arith.constant 0 : index
    %25 = vector.load %arg5[%c2_36, %c9_37, %c0_38] : memref<18x25x4xf32, #tpu.memory_space<vmem>>, vector<16x16x4xf32>
    %26 = vector.shape_cast %25 : vector<16x16x4xf32> to vector<256x4xf32>
    %27 = tpu.concatenate %10, %12, %14, %16, %18, %20, %22, %24, %26 in 1 : vector<256x4xf32>, vector<256x4xf32>, vector<256x4xf32>, vector<256x4xf32>, vector<256x4xf32>, vector<256x4xf32>, vector<256x4xf32>, vector<256x4xf32>, vector<256x4xf32> -> vector<256x36xf32>
    %c0_39 = arith.constant 0 : index
    %c0_40 = arith.constant 0 : index
    %28 = vector.load %arg2[%c0_39, %c0_40] : memref<36x4xf32, #tpu.memory_space<vmem>>, vector<36x4xf32>
    %cst_41 = arith.constant dense<0.000000e+00> : vector<256x4xf32>
    %29 = tpu.matmul %27, %28, %cst_41 {dimension_numbers = #tpu.dot_dimension_numbers<[1], [0], [0], [1], [0, 0, 1, 1], [], []>} : vector<256x36xf32>, vector<36x4xf32>, vector<256x4xf32> -> vector<256x4xf32>
    %cst_42 = arith.constant dense<0.000000e+00> : vector<4xf32>
    %30 = vector.multi_reduction <add>, %29, %cst_42 [0] : vector<256x4xf32> to vector<4xf32>
    %31 = vector.shape_cast %30 : vector<4xf32> to vector<1x4xf32>
    %32 = arith.mulf %29, %29 : vector<256x4xf32>
    %cst_43 = arith.constant dense<0.000000e+00> : vector<4xf32>
    %33 = vector.multi_reduction <add>, %32, %cst_43 [0] : vector<256x4xf32> to vector<4xf32>
    %34 = vector.shape_cast %33 : vector<4xf32> to vector<1x4xf32>
    %35 = tpu.concatenate %31, %34 in 0 : vector<1x4xf32>, vector<1x4xf32> -> vector<2x4xf32>
    %36 = vector.shape_cast %35 : vector<2x4xf32> to vector<1x2x4xf32>
    %c0_44 = arith.constant 0 : index
    %c0_45 = arith.constant 0 : index
    %c0_46 = arith.constant 0 : index
    %37 = vector.load %arg4[%c0_44, %c0_45, %c0_46] : memref<1x2x4xf32, #tpu.memory_space<vmem>>, vector<1x2x4xf32>
    tpu.vector_store %arg4[%c0_44, %c0_45, %c0_46], %36 {strides = array<i32>} : memref<1x2x4xf32, #tpu.memory_space<vmem>>, vector<1x2x4xf32>,
    %38 = vector.shape_cast %29 : vector<256x4xf32> to vector<1x16x16x4xf32>
    %c0_47 = arith.constant 0 : index
    %c0_48 = arith.constant 0 : index
    %c0_49 = arith.constant 0 : index
    %c0_50 = arith.constant 0 : index
    %39 = vector.load %arg3[%c0_47, %c0_48, %c0_49, %c0_50] : memref<1x16x16x4xf32, #tpu.memory_space<vmem>>, vector<1x16x16x4xf32>
    tpu.vector_store %arg3[%c0_47, %c0_48, %c0_49, %c0_50], %38 {strides = array<i32>} : memref<1x16x16x4xf32, #tpu.memory_space<vmem>>, vector<1x16x16x4xf32>,
    return
  }
  func.func @transform_0(%arg0: i32) -> (i32, i32, i32, i32) {
    %c0_i32 = arith.constant 0 : i32
    %c0_i32_0 = arith.constant 0 : i32
    %c0_i32_1 = arith.constant 0 : i32
    %c0_i32_2 = arith.constant 0 : i32
    return %arg0, %c0_i32, %c0_i32_0, %c0_i32_1 : i32, i32, i32, i32
  }
  func.func @transform_1(%arg0: i32) -> (i32, i32) {
    %c0_i32 = arith.constant 0 : i32
    %c0_i32_0 = arith.constant 0 : i32
    %c0_i32_1 = arith.constant 0 : i32
    return %c0_i32, %c0_i32_0 : i32, i32
  }
  func.func @transform_2(%arg0: i32) -> (i32, i32, i32, i32) {
    %c0_i32 = arith.constant 0 : i32
    %c0_i32_0 = arith.constant 0 : i32
    %c0_i32_1 = arith.constant 0 : i32
    %c0_i32_2 = arith.constant 0 : i32
    return %arg0, %c0_i32, %c0_i32_0, %c0_i32_1 : i32, i32, i32, i32
  }
  func.func @transform_3(%arg0: i32) -> (i32, i32, i32) {
    %c0_i32 = arith.constant 0 : i32
    %c0_i32_0 = arith.constant 0 : i32
    %c0_i32_1 = arith.constant 0 : i32
    return %arg0, %c0_i32, %c0_i32_0 : i32, i32, i32
  }
}

module attributes {stable_mosaic.version = 11 : i64} {
  func.func @bn1_conv2_kernel(%arg0: i32, %arg1: memref<1x16x16x4xf32, #tpu.memory_space<vmem>>, %arg2: memref<1x4xf32, #tpu.memory_space<vmem>>, %arg3: memref<1x4xf32, #tpu.memory_space<vmem>>, %arg4: memref<36x4xf32, #tpu.memory_space<vmem>>, %arg5: memref<1x16x16x4xf32, #tpu.memory_space<vmem>>, %arg6: memref<1x2x4xf32, #tpu.memory_space<vmem>>, %arg7: memref<18x25x4xf32, #tpu.memory_space<vmem>>) attributes {dimension_semantics = [#tpu.dimension_semantics<parallel>], iteration_bounds = array<i64: 2>, scalar_prefetch = 0 : i64, scratch_operands = 1 : i64, tpu.core_type = #tpu.core_type<tc>, window_params = [{transform_indices = @transform_0, window_bounds = array<i64: 1, 16, 16, 4>}, {pipeline_mode = #tpu.pipeline_mode<synchronous>, transform_indices = @transform_1, window_bounds = array<i64: 1, 4>}, {pipeline_mode = #tpu.pipeline_mode<synchronous>, transform_indices = @transform_2, window_bounds = array<i64: 1, 4>}, {pipeline_mode = #tpu.pipeline_mode<synchronous>, transform_indices = @transform_3, window_bounds = array<i64: 36, 4>}, {transform_indices = @transform_4, window_bounds = array<i64: 1, 16, 16, 4>}, {transform_indices = @transform_5, window_bounds = array<i64: 1, 2, 4>}]} {
    %c0 = arith.constant 0 : index
    %c0_0 = arith.constant 0 : index
    %0 = vector.load %arg2[%c0, %c0_0] : memref<1x4xf32, #tpu.memory_space<vmem>>, vector<1x4xf32>
    %1 = vector.shape_cast %0 : vector<1x4xf32> to vector<1x1x4xf32>
    %c0_1 = arith.constant 0 : index
    %c0_2 = arith.constant 0 : index
    %2 = vector.load %arg3[%c0_1, %c0_2] : memref<1x4xf32, #tpu.memory_space<vmem>>, vector<1x4xf32>
    %3 = vector.shape_cast %2 : vector<1x4xf32> to vector<1x1x4xf32>
    %c0_3 = arith.constant 0 : index
    %c0_4 = arith.constant 0 : index
    %c0_5 = arith.constant 0 : index
    %c0_6 = arith.constant 0 : index
    %4 = vector.load %arg1[%c0_3, %c0_4, %c0_5, %c0_6] : memref<1x16x16x4xf32, #tpu.memory_space<vmem>>, vector<1x16x16x4xf32>
    %5 = vector.shape_cast %4 : vector<1x16x16x4xf32> to vector<16x16x4xf32>
    %6 = vector.broadcast %1 : vector<1x1x4xf32> to vector<16x16x4xf32>
    %7 = arith.mulf %5, %6 : vector<16x16x4xf32>
    %8 = vector.broadcast %3 : vector<1x1x4xf32> to vector<16x16x4xf32>
    %9 = arith.addf %7, %8 : vector<16x16x4xf32>
    %cst = arith.constant 0.000000e+00 : f32
    %10 = vector.broadcast %cst : f32 to vector<16x16x4xf32>
    %11 = arith.maximumf %9, %10 : vector<16x16x4xf32>
    %cst_7 = arith.constant 0.000000e+00 : f32
    %12 = vector.broadcast %cst_7 : f32 to vector<1x25x4xf32>
    %c0_8 = arith.constant 0 : index
    %c0_9 = arith.constant 0 : index
    %c0_10 = arith.constant 0 : index
    %13 = vector.load %arg7[%c0_8, %c0_9, %c0_10] : memref<18x25x4xf32, #tpu.memory_space<vmem>>, vector<1x25x4xf32>
    tpu.vector_store %arg7[%c0_8, %c0_9, %c0_10], %12 {strides = array<i32>} : memref<18x25x4xf32, #tpu.memory_space<vmem>>, vector<1x25x4xf32>,
    %c17 = arith.constant 17 : index
    %c0_11 = arith.constant 0 : index
    %c0_12 = arith.constant 0 : index
    %14 = vector.load %arg7[%c17, %c0_11, %c0_12] : memref<18x25x4xf32, #tpu.memory_space<vmem>>, vector<1x25x4xf32>
    tpu.vector_store %arg7[%c17, %c0_11, %c0_12], %12 {strides = array<i32>} : memref<18x25x4xf32, #tpu.memory_space<vmem>>, vector<1x25x4xf32>,
    %cst_13 = arith.constant 0.000000e+00 : f32
    %15 = vector.broadcast %cst_13 : f32 to vector<18x1x4xf32>
    %c0_14 = arith.constant 0 : index
    %c7 = arith.constant 7 : index
    %c0_15 = arith.constant 0 : index
    %16 = vector.load %arg7[%c0_14, %c7, %c0_15] : memref<18x25x4xf32, #tpu.memory_space<vmem>>, vector<18x1x4xf32>
    tpu.vector_store %arg7[%c0_14, %c7, %c0_15], %15 {strides = array<i32>} : memref<18x25x4xf32, #tpu.memory_space<vmem>>, vector<18x1x4xf32>,
    %c0_16 = arith.constant 0 : index
    %c24 = arith.constant 24 : index
    %c0_17 = arith.constant 0 : index
    %17 = vector.load %arg7[%c0_16, %c24, %c0_17] : memref<18x25x4xf32, #tpu.memory_space<vmem>>, vector<18x1x4xf32>
    tpu.vector_store %arg7[%c0_16, %c24, %c0_17], %15 {strides = array<i32>} : memref<18x25x4xf32, #tpu.memory_space<vmem>>, vector<18x1x4xf32>,
    %c1 = arith.constant 1 : index
    %c8 = arith.constant 8 : index
    %c0_18 = arith.constant 0 : index
    %18 = vector.load %arg7[%c1, %c8, %c0_18] : memref<18x25x4xf32, #tpu.memory_space<vmem>>, vector<16x16x4xf32>
    tpu.vector_store %arg7[%c1, %c8, %c0_18], %11 {strides = array<i32>} : memref<18x25x4xf32, #tpu.memory_space<vmem>>, vector<16x16x4xf32>,
    %c0_19 = arith.constant 0 : index
    %c7_20 = arith.constant 7 : index
    %c0_21 = arith.constant 0 : index
    %19 = vector.load %arg7[%c0_19, %c7_20, %c0_21] : memref<18x25x4xf32, #tpu.memory_space<vmem>>, vector<16x16x4xf32>
    %20 = vector.shape_cast %19 : vector<16x16x4xf32> to vector<256x4xf32>
    %c0_22 = arith.constant 0 : index
    %c8_23 = arith.constant 8 : index
    %c0_24 = arith.constant 0 : index
    %21 = vector.load %arg7[%c0_22, %c8_23, %c0_24] : memref<18x25x4xf32, #tpu.memory_space<vmem>>, vector<16x16x4xf32>
    %22 = vector.shape_cast %21 : vector<16x16x4xf32> to vector<256x4xf32>
    %c0_25 = arith.constant 0 : index
    %c9 = arith.constant 9 : index
    %c0_26 = arith.constant 0 : index
    %23 = vector.load %arg7[%c0_25, %c9, %c0_26] : memref<18x25x4xf32, #tpu.memory_space<vmem>>, vector<16x16x4xf32>
    %24 = vector.shape_cast %23 : vector<16x16x4xf32> to vector<256x4xf32>
    %c1_27 = arith.constant 1 : index
    %c7_28 = arith.constant 7 : index
    %c0_29 = arith.constant 0 : index
    %25 = vector.load %arg7[%c1_27, %c7_28, %c0_29] : memref<18x25x4xf32, #tpu.memory_space<vmem>>, vector<16x16x4xf32>
    %26 = vector.shape_cast %25 : vector<16x16x4xf32> to vector<256x4xf32>
    %c1_30 = arith.constant 1 : index
    %c8_31 = arith.constant 8 : index
    %c0_32 = arith.constant 0 : index
    %27 = vector.load %arg7[%c1_30, %c8_31, %c0_32] : memref<18x25x4xf32, #tpu.memory_space<vmem>>, vector<16x16x4xf32>
    %28 = vector.shape_cast %27 : vector<16x16x4xf32> to vector<256x4xf32>
    %c1_33 = arith.constant 1 : index
    %c9_34 = arith.constant 9 : index
    %c0_35 = arith.constant 0 : index
    %29 = vector.load %arg7[%c1_33, %c9_34, %c0_35] : memref<18x25x4xf32, #tpu.memory_space<vmem>>, vector<16x16x4xf32>
    %30 = vector.shape_cast %29 : vector<16x16x4xf32> to vector<256x4xf32>
    %c2 = arith.constant 2 : index
    %c7_36 = arith.constant 7 : index
    %c0_37 = arith.constant 0 : index
    %31 = vector.load %arg7[%c2, %c7_36, %c0_37] : memref<18x25x4xf32, #tpu.memory_space<vmem>>, vector<16x16x4xf32>
    %32 = vector.shape_cast %31 : vector<16x16x4xf32> to vector<256x4xf32>
    %c2_38 = arith.constant 2 : index
    %c8_39 = arith.constant 8 : index
    %c0_40 = arith.constant 0 : index
    %33 = vector.load %arg7[%c2_38, %c8_39, %c0_40] : memref<18x25x4xf32, #tpu.memory_space<vmem>>, vector<16x16x4xf32>
    %34 = vector.shape_cast %33 : vector<16x16x4xf32> to vector<256x4xf32>
    %c2_41 = arith.constant 2 : index
    %c9_42 = arith.constant 9 : index
    %c0_43 = arith.constant 0 : index
    %35 = vector.load %arg7[%c2_41, %c9_42, %c0_43] : memref<18x25x4xf32, #tpu.memory_space<vmem>>, vector<16x16x4xf32>
    %36 = vector.shape_cast %35 : vector<16x16x4xf32> to vector<256x4xf32>
    %37 = tpu.concatenate %20, %22, %24, %26, %28, %30, %32, %34, %36 in 1 : vector<256x4xf32>, vector<256x4xf32>, vector<256x4xf32>, vector<256x4xf32>, vector<256x4xf32>, vector<256x4xf32>, vector<256x4xf32>, vector<256x4xf32>, vector<256x4xf32> -> vector<256x36xf32>
    %c0_44 = arith.constant 0 : index
    %c0_45 = arith.constant 0 : index
    %38 = vector.load %arg4[%c0_44, %c0_45] : memref<36x4xf32, #tpu.memory_space<vmem>>, vector<36x4xf32>
    %cst_46 = arith.constant dense<0.000000e+00> : vector<256x4xf32>
    %39 = tpu.matmul %37, %38, %cst_46 {dimension_numbers = #tpu.dot_dimension_numbers<[1], [0], [0], [1], [0, 0, 1, 1], [], []>} : vector<256x36xf32>, vector<36x4xf32>, vector<256x4xf32> -> vector<256x4xf32>
    %cst_47 = arith.constant dense<0.000000e+00> : vector<4xf32>
    %40 = vector.multi_reduction <add>, %39, %cst_47 [0] : vector<256x4xf32> to vector<4xf32>
    %41 = vector.shape_cast %40 : vector<4xf32> to vector<1x4xf32>
    %42 = arith.mulf %39, %39 : vector<256x4xf32>
    %cst_48 = arith.constant dense<0.000000e+00> : vector<4xf32>
    %43 = vector.multi_reduction <add>, %42, %cst_48 [0] : vector<256x4xf32> to vector<4xf32>
    %44 = vector.shape_cast %43 : vector<4xf32> to vector<1x4xf32>
    %45 = tpu.concatenate %41, %44 in 0 : vector<1x4xf32>, vector<1x4xf32> -> vector<2x4xf32>
    %46 = vector.shape_cast %45 : vector<2x4xf32> to vector<1x2x4xf32>
    %c0_49 = arith.constant 0 : index
    %c0_50 = arith.constant 0 : index
    %c0_51 = arith.constant 0 : index
    %47 = vector.load %arg6[%c0_49, %c0_50, %c0_51] : memref<1x2x4xf32, #tpu.memory_space<vmem>>, vector<1x2x4xf32>
    tpu.vector_store %arg6[%c0_49, %c0_50, %c0_51], %46 {strides = array<i32>} : memref<1x2x4xf32, #tpu.memory_space<vmem>>, vector<1x2x4xf32>,
    %48 = vector.shape_cast %39 : vector<256x4xf32> to vector<1x16x16x4xf32>
    %c0_52 = arith.constant 0 : index
    %c0_53 = arith.constant 0 : index
    %c0_54 = arith.constant 0 : index
    %c0_55 = arith.constant 0 : index
    %49 = vector.load %arg5[%c0_52, %c0_53, %c0_54, %c0_55] : memref<1x16x16x4xf32, #tpu.memory_space<vmem>>, vector<1x16x16x4xf32>
    tpu.vector_store %arg5[%c0_52, %c0_53, %c0_54, %c0_55], %48 {strides = array<i32>} : memref<1x16x16x4xf32, #tpu.memory_space<vmem>>, vector<1x16x16x4xf32>,
    return
  }
  func.func @transform_0(%arg0: i32) -> (i32, i32, i32, i32) {
    %c0_i32 = arith.constant 0 : i32
    %c0_i32_0 = arith.constant 0 : i32
    %c0_i32_1 = arith.constant 0 : i32
    %c0_i32_2 = arith.constant 0 : i32
    return %arg0, %c0_i32, %c0_i32_0, %c0_i32_1 : i32, i32, i32, i32
  }
  func.func @transform_1(%arg0: i32) -> (i32, i32) {
    %c0_i32 = arith.constant 0 : i32
    %c0_i32_0 = arith.constant 0 : i32
    %c0_i32_1 = arith.constant 0 : i32
    return %c0_i32, %c0_i32_0 : i32, i32
  }
  func.func @transform_2(%arg0: i32) -> (i32, i32) {
    %c0_i32 = arith.constant 0 : i32
    %c0_i32_0 = arith.constant 0 : i32
    %c0_i32_1 = arith.constant 0 : i32
    return %c0_i32, %c0_i32_0 : i32, i32
  }
  func.func @transform_3(%arg0: i32) -> (i32, i32) {
    %c0_i32 = arith.constant 0 : i32
    %c0_i32_0 = arith.constant 0 : i32
    %c0_i32_1 = arith.constant 0 : i32
    return %c0_i32, %c0_i32_0 : i32, i32
  }
  func.func @transform_4(%arg0: i32) -> (i32, i32, i32, i32) {
    %c0_i32 = arith.constant 0 : i32
    %c0_i32_0 = arith.constant 0 : i32
    %c0_i32_1 = arith.constant 0 : i32
    %c0_i32_2 = arith.constant 0 : i32
    return %arg0, %c0_i32, %c0_i32_0, %c0_i32_1 : i32, i32, i32, i32
  }
  func.func @transform_5(%arg0: i32) -> (i32, i32, i32) {
    %c0_i32 = arith.constant 0 : i32
    %c0_i32_0 = arith.constant 0 : i32
    %c0_i32_1 = arith.constant 0 : i32
    return %arg0, %c0_i32, %c0_i32_0 : i32, i32, i32
  }
}

module attributes {stable_mosaic.version = 11 : i64} {
  func.func @bn2_add_relu_kernel(%arg0: i32, %arg1: memref<1x16x64xf32, #tpu.memory_space<vmem>>, %arg2: memref<1x16x64xf32, #tpu.memory_space<vmem>>, %arg3: memref<1x64xf32, #tpu.memory_space<vmem>>, %arg4: memref<1x64xf32, #tpu.memory_space<vmem>>, %arg5: memref<1x16x64xf32, #tpu.memory_space<vmem>>) attributes {dimension_semantics = [#tpu.dimension_semantics<parallel>], iteration_bounds = array<i64: 2>, scalar_prefetch = 0 : i64, scratch_operands = 0 : i64, tpu.core_type = #tpu.core_type<tc>, window_params = [{transform_indices = @transform_0, window_bounds = array<i64: 1, 16, 64>}, {transform_indices = @transform_1, window_bounds = array<i64: 1, 16, 64>}, {pipeline_mode = #tpu.pipeline_mode<synchronous>, transform_indices = @transform_2, window_bounds = array<i64: 1, 64>}, {pipeline_mode = #tpu.pipeline_mode<synchronous>, transform_indices = @transform_3, window_bounds = array<i64: 1, 64>}, {transform_indices = @transform_4, window_bounds = array<i64: 1, 16, 64>}]} {
    %c0 = arith.constant 0 : index
    %c0_0 = arith.constant 0 : index
    %0 = vector.load %arg3[%c0, %c0_0] : memref<1x64xf32, #tpu.memory_space<vmem>>, vector<1x64xf32>
    %1 = vector.shape_cast %0 : vector<1x64xf32> to vector<1x1x64xf32>
    %c0_1 = arith.constant 0 : index
    %c0_2 = arith.constant 0 : index
    %2 = vector.load %arg4[%c0_1, %c0_2] : memref<1x64xf32, #tpu.memory_space<vmem>>, vector<1x64xf32>
    %3 = vector.shape_cast %2 : vector<1x64xf32> to vector<1x1x64xf32>
    %c0_3 = arith.constant 0 : index
    %c0_4 = arith.constant 0 : index
    %c0_5 = arith.constant 0 : index
    %4 = vector.load %arg1[%c0_3, %c0_4, %c0_5] : memref<1x16x64xf32, #tpu.memory_space<vmem>>, vector<1x16x64xf32>
    %5 = vector.broadcast %1 : vector<1x1x64xf32> to vector<1x16x64xf32>
    %6 = arith.mulf %4, %5 : vector<1x16x64xf32>
    %7 = vector.broadcast %3 : vector<1x1x64xf32> to vector<1x16x64xf32>
    %8 = arith.addf %6, %7 : vector<1x16x64xf32>
    %c0_6 = arith.constant 0 : index
    %c0_7 = arith.constant 0 : index
    %c0_8 = arith.constant 0 : index
    %9 = vector.load %arg2[%c0_6, %c0_7, %c0_8] : memref<1x16x64xf32, #tpu.memory_space<vmem>>, vector<1x16x64xf32>
    %10 = arith.addf %8, %9 : vector<1x16x64xf32>
    %cst = arith.constant 0.000000e+00 : f32
    %11 = vector.broadcast %cst : f32 to vector<1x16x64xf32>
    %12 = arith.maximumf %10, %11 : vector<1x16x64xf32>
    %c0_9 = arith.constant 0 : index
    %c0_10 = arith.constant 0 : index
    %c0_11 = arith.constant 0 : index
    %13 = vector.load %arg5[%c0_9, %c0_10, %c0_11] : memref<1x16x64xf32, #tpu.memory_space<vmem>>, vector<1x16x64xf32>
    tpu.vector_store %arg5[%c0_9, %c0_10, %c0_11], %12 {strides = array<i32>} : memref<1x16x64xf32, #tpu.memory_space<vmem>>, vector<1x16x64xf32>,
    return
  }
  func.func @transform_0(%arg0: i32) -> (i32, i32, i32) {
    %c0_i32 = arith.constant 0 : i32
    %c0_i32_0 = arith.constant 0 : i32
    %c0_i32_1 = arith.constant 0 : i32
    return %arg0, %c0_i32, %c0_i32_0 : i32, i32, i32
  }
  func.func @transform_1(%arg0: i32) -> (i32, i32, i32) {
    %c0_i32 = arith.constant 0 : i32
    %c0_i32_0 = arith.constant 0 : i32
    %c0_i32_1 = arith.constant 0 : i32
    return %arg0, %c0_i32, %c0_i32_0 : i32, i32, i32
  }
  func.func @transform_2(%arg0: i32) -> (i32, i32) {
    %c0_i32 = arith.constant 0 : i32
    %c0_i32_0 = arith.constant 0 : i32
    %c0_i32_1 = arith.constant 0 : i32
    return %c0_i32, %c0_i32_0 : i32, i32
  }
  func.func @transform_3(%arg0: i32) -> (i32, i32) {
    %c0_i32 = arith.constant 0 : i32
    %c0_i32_0 = arith.constant 0 : i32
    %c0_i32_1 = arith.constant 0 : i32
    return %c0_i32, %c0_i32_0 : i32, i32
  }
  func.func @transform_4(%arg0: i32) -> (i32, i32, i32) {
    %c0_i32 = arith.constant 0 : i32
    %c0_i32_0 = arith.constant 0 : i32
    %c0_i32_1 = arith.constant 0 : i32
    return %arg0, %c0_i32, %c0_i32_0 : i32, i32, i32
  }
}

</mosaic_0001>

<bundles_post_ra>
// kernel: tile.13
= control target key start
LH: loop header
LB: loop body
LE: loop exit
PB: predicated region body
PF: predicated region fallthrough
CT: control target
= control target key end

     0   :  { %s28_s0 = inlined_call_operand.vmem [shape: f32[4], index: 0, kind: input, shape index: {}]   ;;  %s29_s1 = inlined_call_operand.vmem [shape: f32[16,4], index: 1, kind: output, shape index: {}]  }
   0x1   :  { %v4_v0 = vld [vmem:[%s28_s0] ss:$0 sm:$0xff] }
   0x2   :  { %5 = vst [vmem:[%s29_s1] sm:$0xff] %v4_v0  ;;  %8 = vst [vmem:[%s29_s1 + $0x8] sm:$0xff] %v4_v0 }

// kernel: tile.14
= control target key start
LH: loop header
LB: loop body
LE: loop exit
PB: predicated region body
PF: predicated region fallthrough
CT: control target
= control target key end

     0   :  { %s131_s10 = smov 60   ;;  %s132_s11 = smov 52   ;;  %vm3_vm0 = vcmask 31744   ;;  %vm9_vm1 = vcmask 523744   ;;  %vm15_vm2 = vcmask 490944   ;;  %vm21_vm3 = vcmask 458144   ;;  %s207_s0 = inlined_call_operand.vmem [shape: f32[16,4], index: 0, kind: input, shape index: {}]   ;;  %s208_s1 = inlined_call_operand.vmem [shape: f32[1,64], index: 1, kind: output, shape index: {}]  }
   0x1   :  { %v101_v0 = vld [vmem:[%s207_s0 + $0xf] sm:$0x1]   ;;  %v103_v1 = vld [vmem:[%s207_s0 + $0xd] sm:$0x1]   ;;  %v102_v2 = vld [vmem:[%s207_s0 + $0xe] sm:$0x1]  }
   0x2   :  { %7 = vrot.lane.b32.xlu0 %v101_v0, %s131_s10  ;;  %19 = vrot.lane.b32.xlu1 %v103_v1, %s132_s11  ;;  %v104_v3 = vld [vmem:[%s207_s0 + $0xc] sm:$0x1]   ;;  %s133_s16 = smov 56   ;;  %s134_s17 = smov 48   ;;  %v105_v4 = vld [vmem:[%s207_s0 + $0xb] sm:$0x1]  }
   0x3   :  { %v106_v5 = vld [vmem:[%s207_s0 + $0xa] sm:$0x1]   ;;  %v2_v6 = vld [vmem:[%s207_s0] sm:$0x1]   ;;  %s135_s24 = smov 44   ;;  %s136_s25 = smov 40  }
   0x4   :  { %4 = vst.msk [vmem:[#allocation0] sm:$0x1] %vm3_vm0, %v2_v6   ;;  %v107_v7 = vld [vmem:[%s207_s0 + $0x9] sm:$0x1]   ;;  %v108_v8 = vld [vmem:[%s207_s0 + $0x8] sm:$0x1]  }
   0x5   :  { %s137_s30 = smov 36   ;;  %s138_s2 = smov 32   ;;  %v109_v9 = vld [vmem:[%s207_s0 + $0x7] sm:$0x1]   ;;  %v110_v10 = vld [vmem:[%s207_s0 + $0x6] sm:$0x1]  }
   0x6   :  { %13 = vrot.lane.b32.xlu0 %v102_v2, %s133_s16  ;;  %25 = vrot.lane.b32.xlu1 %v104_v3, %s134_s17  ;;  %s139_s7 = smov 28   ;;  %s140_s8 = smov 24   ;;  %v111_v11 = vld [vmem:[%s207_s0 + $0x5] sm:$0x1]   ;;  %v112_v12 = vld [vmem:[%s207_s0 + $0x4] sm:$0x1]  }
   0x7   :  { %s141_s13 = smov 20   ;;  %s142_s14 = smov 16   ;;  %v113_v13 = vld [vmem:[%s207_s0 + $0x3] sm:$0x1]   ;;  %v114_v14 = vld [vmem:[%s207_s0 + $0x2] sm:$0x1]  }
   0x8   :  { %s143_s19 = smov 12   ;;  %s144_s20 = smov 8   ;;  %v115_v15 = vld [vmem:[%s207_s0 + $0x1] sm:$0x1]   ;;  %vm27_vm4 = vcmask 425344   ;;  %vm33_vm5 = vcmask 392544  }
   0x9   :  { %s145_s0 = smov 4   ;;  %vm39_vm6 = vcmask 359744   ;;  %vm45_vm7 = vcmask 326944   ;;  %vm51_vm8 = vcmask 294144   ;;  %vm57_vm9 = vcmask 261344  }
   0xa   :  { %31 = vrot.lane.b32.xlu0 %v105_v4, %s135_s24  ;;  %37 = vrot.lane.b32.xlu1 %v106_v5, %s136_s25  ;;  %vm63_vm10 = vcmask 228544   ;;  %vm69_vm11 = vcmask 195744   ;;  %vm75_vm12 = vcmask 162944   ;;  %vm81_vm13 = vcmask 130144  }
   0xb   :  { %vm87_vm14 = vcmask 97344   ;;  %vm93_vm15 = vcmask 64544  }
   0xe   :  { %43 = vrot.lane.b32.xlu0 %v107_v7, %s137_s30  ;;  %49 = vrot.lane.b32.xlu1 %v108_v8, %s138_s2 }
  0x12   :  { %55 = vrot.lane.b32.xlu0 %v109_v9, %s139_s7  ;;  %61 = vrot.lane.b32.xlu1 %v110_v10, %s140_s8 }
  0x16   :  { %67 = vrot.lane.b32.xlu0 %v111_v11, %s141_s13  ;;  %73 = vrot.lane.b32.xlu1 %v112_v12, %s142_s14 }
  0x1a   :  { %79 = vrot.lane.b32.xlu0 %v113_v13, %s143_s19  ;;  %85 = vrot.lane.b32.xlu1 %v114_v14, %s144_s20 }
  0x1e   :  { %91 = vrot.lane.b32.xlu0 %v115_v15, %s145_s0 }
  0x74   :  { %v8_v16 = vpop.permute.xlu0 %7   ;;  %v20_v17 = vpop.permute.xlu1 %19  }
  0x75   :  { %10 = vst.msk [vmem:[#allocation0] sm:$0x1] %vm9_vm1, %v8_v16  }
  0x78   :  { %v14_v18 = vpop.permute.xlu0 %13   ;;  %v26_v19 = vpop.permute.xlu1 %25  }
  0x79   :  { %16 = vst.msk [vmem:[#allocation0] sm:$0x1] %vm15_vm2, %v14_v18  }
  0x7a   :  { %22 = vst.msk [vmem:[#allocation0] sm:$0x1] %vm21_vm3, %v20_v17  }
  0x7b   :  { %28 = vst.msk [vmem:[#allocation0] sm:$0x1] %vm27_vm4, %v26_v19  }
  0x7c   :  { %v32_v20 = vpop.permute.xlu0 %31   ;;  %v38_v21 = vpop.permute.xlu1 %37  }
  0x7d   :  { %34 = vst.msk [vmem:[#allocation0] sm:$0x1] %vm33_vm5, %v32_v20  }
  0x7e   :  { %40 = vst.msk [vmem:[#allocation0] sm:$0x1] %vm39_vm6, %v38_v21  }
  0x80   :  { %v44_v22 = vpop.permute.xlu0 %43   ;;  %v50_v23 = vpop.permute.xlu1 %49  }
  0x81   :  { %46 = vst.msk [vmem:[#allocation0] sm:$0x1] %vm45_vm7, %v44_v22  }
  0x82   :  { %52 = vst.msk [vmem:[#allocation0] sm:$0x1] %vm51_vm8, %v50_v23  }
  0x84   :  { %v56_v24 = vpop.permute.xlu0 %55   ;;  %v62_v25 = vpop.permute.xlu1 %61  }
  0x85   :  { %58 = vst.msk [vmem:[#allocation0] sm:$0x1] %vm57_vm9, %v56_v24  }
  0x86   :  { %64 = vst.msk [vmem:[#allocation0] sm:$0x1] %vm63_vm10, %v62_v25  }
  0x88   :  { %v68_v26 = vpop.permute.xlu0 %67   ;;  %v74_v27 = vpop.permute.xlu1 %73  }
  0x89   :  { %70 = vst.msk [vmem:[#allocation0] sm:$0x1] %vm69_vm11, %v68_v26  }
  0x8a   :  { %76 = vst.msk [vmem:[#allocation0] sm:$0x1] %vm75_vm12, %v74_v27  }
  0x8c   :  { %v80_v28 = vpop.permute.xlu0 %79   ;;  %v86_v29 = vpop.permute.xlu1 %85  }
  0x8d   :  { %82 = vst.msk [vmem:[#allocation0] sm:$0x1] %vm81_vm13, %v80_v28  }
  0x8e   :  { %88 = vst.msk [vmem:[#allocation0] sm:$0x1] %vm87_vm14, %v86_v29  }
  0x90   :  { %v92_v30 = vpop.permute.xlu0 %91  }
  0x91   :  { %94 = vst.msk [vmem:[#allocation0] sm:$0x1] %vm93_vm15, %v92_v30  }
  0x98   :  { %v98_v31 = vld [vmem:[#allocation0] sm:$0x1] }
  0x99   :  { %100 = vst [vmem:[%s208_s1] sm:$0x1] %v98_v31 }

// kernel: basic_block_forward.5
= control target key start
LH: loop header
LB: loop body
LE: loop exit
PB: predicated region body
PF: predicated region fallthrough
CT: control target
= control target key end

     0   :  { %s373_s15 = smov 0   ;;  %s399_s0 = inlined_call_operand.vmem [shape: f32[2,16,64], index: 0, kind: input, shape index: {}]   ;;  %s400_s1 = inlined_call_operand.vmem [shape: f32[2,16,64], index: 1, kind: input, shape index: {}]   ;;  %s401_s2 = inlined_call_operand.vmem [shape: f32[1,64], index: 2, kind: input, shape index: {}]   ;;  %s402_s3 = inlined_call_operand.vmem [shape: f32[1,64], index: 3, kind: input, shape index: {}]   ;;  %s403_s4 = inlined_call_operand.vmem [shape: f32[2,16,64], index: 4, kind: output, shape index: {}]  }
   0x1 LB: > { %s314_s16 = sadd.s32 4294967295, %s346_s15   ;;  %p318_p0 = scmp.ge.s32.totalorder %s346_s15, 1  ;;  %s346_s15 = sphi %s373_s15, %s14_s15  }
   0x2   : > { %p172_p1 = scmp.lt.s32.totalorder %s346_s15, 3 }
   0x4   : > { %p173_p2 = pnand %p318_p0, %p172_p1 }
   0x5   : > { %p203_p3 = scmp.lt.s32.totalorder (!%p173_p2), %s314_s16, 1  ;;  %v325_v0 = vld [vmem:[%s401_s2] ss:$0 sm:$0xff] (!%p173_p2)  ;;  %vm244_vm0 = vcmask (!%p173_p2), 523264  }
   0x6   : > { %176 = sbr.rel (%p173_p2) target bundleno = 26 (0x1a), region = 36  ;;  %v326_v1 = vld [vmem:[%s402_s3] ss:$0 sm:$0xff] (!%p173_p2) }
   0xd   : > { %s405_s16 = smov (!%p203_p3, %s314_s16), 1 }
   0xe   : > { %s329_s17 = sshll.u32 %s405_s16, 4 }
   0xf   : > { %s207_s22 = scalar_lea.vmem %s399_s0, %s329_s17  ;;  %s212_s25 = scalar_lea.vmem %s400_s1, %s329_s17 }
  0x10   : > { %v220_v2 = vld [vmem:[%s207_s22] sm:$0xff]  ;;  %v221_v3 = vld [vmem:[%s207_s22 + $0x8] sm:$0xff]  ;;  %s217_s30 = scalar_lea.vmem %s403_s4, %s329_s17 }
  0x11   : > { %v228_v4 = vmul.f32 %v325_v0, %v220_v2  ;;  %v229_v5 = vmul.f32 %v325_v0, %v221_v3  ;;  %v238_v6 = vld [vmem:[%s212_s25] sm:$0xff]  ;;  %v239_v7 = vld [vmem:[%s212_s25 + $0x8] sm:$0xff] }
  0x13   : > { %v236_v8 = vadd.f32 %v326_v1, %v228_v4  ;;  %v237_v9 = vadd.f32 %v326_v1, %v229_v5 }
  0x15   : > { %v240_v10 = vadd.f32 %v238_v6, %v236_v8  ;;  %v241_v11 = vadd.f32 %v239_v7, %v237_v9 }
  0x17   : > { %v242_v12 = vmax.f32 %v240_v10, 0.0  ;;  %v243_v13 = vmax.f32 %v241_v11, 0.0 }
  0x19   : > { %245 = vst.msk [vmem:[%s217_s30] sm:$0xff] %vm244_vm0, %v242_v12  ;;  %246 = vst.msk [vmem:[%s217_s30 + $0x8] sm:$0xff] %vm244_vm0, %v243_v13 }
  0x1a PF: > { %s14_s15 = sadd.s32 1, %s346_s15  }
  0x1b   : > { %p11_p4 = scmp.ge.s32.totalorder %s14_s15, 4  }
  0x1d   :  { %13 = sbr.rel (!%p11_p4) target bundleno = 1 (0x1), region = 69 }

// kernel: basic_block_forward.3
= control target key start
LH: loop header
LB: loop body
LE: loop exit
PB: predicated region body
PF: predicated region fallthrough
CT: control target
= control target key end

     0   :  { %s2703_s12 = smov 0   ;;  %s4065_s0 = inlined_call_operand.vmem [shape: f32[2,16,16,4], index: 0, kind: input, shape index: {}]   ;;  %s4066_s1 = inlined_call_operand.vmem [shape: f32[36,4], index: 1, kind: input, shape index: {}]   ;;  %s4067_s2 = inlined_call_operand.vmem [shape: f32[2,16,16,4], index: 2, kind: output, shape index: {0}]   ;;  %s4068_s3 = inlined_call_operand.vmem [shape: f32[2,2,4], index: 3, kind: output, shape index: {1}]  }
   0x1 LB: > { %s2493_s13 = sadd.s32 4294967295, %s2672_s12   ;;  %p2497_p0 = scmp.ge.s32.totalorder %s2672_s12, 1  ;;  %s2672_s12 = sphi %s2703_s12, %s14_s12  }
   0x2   : > { %p140_p1 = scmp.lt.s32.totalorder %s2672_s12, 3 }
   0x4   : > { %p141_p2 = pnand %p2497_p0, %p140_p1 }
   0x6   : > { %144 = sbr.rel (%p141_p2) target bundleno = 902 (0x386), region = 28 }
   0xd   : > { %vm182_vm0 = vcmask 31744   ;;  %p2713_p3 = scmp.lt.s32.totalorder %s2493_s13, 1  ;;  %vm186_vm1 = vcmask 24576   ;;  %v2674_v0 = vmov 0.0   ;;  %s2675_s19 = smov 4   ;;  %vm1972_vm2 = vcmask 1043456  }
   0xe   : > { %184 = vst.msk [vmem:[#allocation2 + $0x8] sm:$0xff] %vm182_vm0, %v2674_v0  ;;  %183 = vst.msk [vmem:[#allocation2] sm:$0xff] %vm182_vm0, %v2674_v0  ;;  %s2676_s20 = smov 8   ;;  %s2677_s21 = smov 12   ;;  %vm1639_vm3 = vcmask 64512   ;;  %vm1672_vm4 = vcmask 97280  }
   0xf   : > { %185 = vst.msk [vmem:[#allocation2 + $0x10] sm:$0xff] %vm182_vm0, %v2674_v0  ;;  %189 = vst.msk [vmem:[#allocation2 + $0x220] sm:$0xff] %vm182_vm0, %v2674_v0  ;;  %s4176_s13 = smov (!%p2713_p3, %s2493_s13), 1  ;;  %s2678_s26 = smov 16   ;;  %vm1705_vm5 = vcmask 130048   ;;  %vm1738_vm6 = vcmask 162816  }
  0x10   : > { %190 = vst.msk [vmem:[#allocation2 + $0x228] sm:$0xff] %vm182_vm0, %v2674_v0  ;;  %191 = vst.msk [vmem:[#allocation2 + $0x230] sm:$0xff] %vm182_vm0, %v2674_v0  ;;  %s2538_s15 = sshll.u32 %s4176_s13, 8  ;;  %s2679_s4 = smov 20   ;;  %vm1771_vm7 = vcmask 195584   ;;  %vm1804_vm8 = vcmask 228352  }
  0x11   : > { %187 = vst.msk [vmem:[#allocation2 + $0x18] sm:$0x1] %vm186_vm1, %v2674_v0  ;;  %192 = vst.msk [vmem:[#allocation2 + $0x238] sm:$0x1] %vm186_vm1, %v2674_v0  ;;  %s2773_s18 = scalar_lea.vmem %s4065_s0, %s2538_s15  ;;  %s2680_s5 = smov 24   ;;  %vm1837_vm9 = vcmask 261120  }
  0x12   : > { %194 = vst.msk [vmem:[#allocation2 + $0x27] sm:$0x1] %vm186_vm1, %v2674_v0  ;;  %195 = vst.msk [vmem:[#allocation2 + $0x47] sm:$0x1] %vm186_vm1, %v2674_v0  ;;  %v229_v1 = vld [vmem:[%s2773_s18] sm:$0xff]  ;;  %v231_v2 = vld [vmem:[%s2773_s18 + $0x10] sm:$0xff]  ;;  %s3778_s14 = scalar_lea.vmem %s4067_s2, %s2538_s15 }
  0x13   : > { %196 = vst.msk [vmem:[#allocation2 + $0x67] sm:$0x1] %vm186_vm1, %v2674_v0  ;;  %197 = vst.msk [vmem:[#allocation2 + $0x87] sm:$0x1] %vm186_vm1, %v2674_v0  ;;  %v230_v3 = vld [vmem:[%s2773_s18 + $0x8] sm:$0xff]  ;;  %v233_v4 = vld [vmem:[%s2773_s18 + $0x20] sm:$0xff] }
  0x14   : > { %198 = vst.msk [vmem:[#allocation2 + $0xa7] sm:$0x1] %vm186_vm1, %v2674_v0  ;;  %199 = vst.msk [vmem:[#allocation2 + $0xc7] sm:$0x1] %vm186_vm1, %v2674_v0  ;;  %v232_v5 = vld [vmem:[%s2773_s18 + $0x18] sm:$0xff]  ;;  %v235_v6 = vld [vmem:[%s2773_s18 + $0x30] sm:$0xff] }
  0x15   : > { %200 = vst.msk [vmem:[#allocation2 + $0xe7] sm:$0x1] %vm186_vm1, %v2674_v0  ;;  %201 = vst.msk [vmem:[#allocation2 + $0x107] sm:$0x1] %vm186_vm1, %v2674_v0  ;;  %v326_v7 = vld [vmem:[#allocation2 + $0x8] sm:$0xff]  ;;  %v237_v10 = vld [vmem:[%s2773_s18 + $0x40] sm:$0xff] }
  0x16   : > { %202 = vst.msk [vmem:[#allocation2 + $0x127] sm:$0x1] %vm186_vm1, %v2674_v0  ;;  %203 = vst.msk [vmem:[#allocation2 + $0x147] sm:$0x1] %vm186_vm1, %v2674_v0  ;;  %v327_v8 = vld [vmem:[#allocation2 + $0x10] sm:$0xff]  ;;  %v234_v9 = vld [vmem:[%s2773_s18 + $0x28] sm:$0xff]  ;;  %615 = vrot.lane.b32.xlu0 %v326_v7, %s2675_s19 }
  0x17   : > { %204 = vst.msk [vmem:[#allocation2 + $0x167] sm:$0x1] %vm186_vm1, %v2674_v0  ;;  %205 = vst.msk [vmem:[#allocation2 + $0x187] sm:$0x1] %vm186_vm1, %v2674_v0  ;;  %v236_v11 = vld [vmem:[%s2773_s18 + $0x38] sm:$0xff]  ;;  %v239_v12 = vld [vmem:[%s2773_s18 + $0x50] sm:$0xff] }
  0x18   : > { %206 = vst.msk [vmem:[#allocation2 + $0x1a7] sm:$0x1] %vm186_vm1, %v2674_v0  ;;  %207 = vst.msk [vmem:[#allocation2 + $0x1c7] sm:$0x1] %vm186_vm1, %v2674_v0  ;;  %v238_v13 = vld [vmem:[%s2773_s18 + $0x48] sm:$0xff]  ;;  %v241_v14 = vld [vmem:[%s2773_s18 + $0x60] sm:$0xff] }
  0x19   : > { %208 = vst.msk [vmem:[#allocation2 + $0x1e7] sm:$0x1] %vm186_vm1, %v2674_v0  ;;  %209 = vst.msk [vmem:[#allocation2 + $0x207] sm:$0x1] %vm186_vm1, %v2674_v0  ;;  %v240_v15 = vld [vmem:[%s2773_s18 + $0x58] sm:$0xff]  ;;  %v243_v16 = vld [vmem:[%s2773_s18 + $0x70] sm:$0xff] }
  0x1a   : > { %212 = vst.msk [vmem:[#allocation2 + $0x38] sm:$0x1] %vm186_vm1, %v2674_v0  ;;  %213 = vst.msk [vmem:[#allocation2 + $0x58] sm:$0x1] %vm186_vm1, %v2674_v0  ;;  %v242_v17 = vld [vmem:[%s2773_s18 + $0x68] sm:$0xff]  ;;  %v245_v18 = vld [vmem:[%s2773_s18 + $0x80] sm:$0xff]  ;;  %617 = vrot.lane.b32.xlu0 %v327_v8, %s2675_s19 }
  0x1b   : > { %214 = vst.msk [vmem:[#allocation2 + $0x78] sm:$0x1] %vm186_vm1, %v2674_v0  ;;  %215 = vst.msk [vmem:[#allocation2 + $0x98] sm:$0x1] %vm186_vm1, %v2674_v0  ;;  %v244_v19 = vld [vmem:[%s2773_s18 + $0x78] sm:$0xff]  ;;  %v247_v20 = vld [vmem:[%s2773_s18 + $0x90] sm:$0xff] }
  0x1c   : > { %216 = vst.msk [vmem:[#allocation2 + $0xb8] sm:$0x1] %vm186_vm1, %v2674_v0  ;;  %217 = vst.msk [vmem:[#allocation2 + $0xd8] sm:$0x1] %vm186_vm1, %v2674_v0  ;;  %v246_v21 = vld [vmem:[%s2773_s18 + $0x88] sm:$0xff]  ;;  %v249_v22 = vld [vmem:[%s2773_s18 + $0xa0] sm:$0xff] }
  0x1d   : > { %218 = vst.msk [vmem:[#allocation2 + $0xf8] sm:$0x1] %vm186_vm1, %v2674_v0  ;;  %219 = vst.msk [vmem:[#allocation2 + $0x118] sm:$0x1] %vm186_vm1, %v2674_v0  ;;  %v248_v23 = vld [vmem:[%s2773_s18 + $0x98] sm:$0xff]  ;;  %v251_v24 = vld [vmem:[%s2773_s18 + $0xb0] sm:$0xff] }
  0x1e   : > { %220 = vst.msk [vmem:[#allocation2 + $0x138] sm:$0x1] %vm186_vm1, %v2674_v0  ;;  %221 = vst.msk [vmem:[#allocation2 + $0x158] sm:$0x1] %vm186_vm1, %v2674_v0  ;;  %v250_v28 = vld [vmem:[%s2773_s18 + $0xa8] sm:$0xff]  ;;  %v253_v29 = vld [vmem:[%s2773_s18 + $0xc0] sm:$0xff] }
  0x1f   : > { %222 = vst.msk [vmem:[#allocation2 + $0x178] sm:$0x1] %vm186_vm1, %v2674_v0  ;;  %223 = vst.msk [vmem:[#allocation2 + $0x198] sm:$0x1] %vm186_vm1, %v2674_v0  ;;  %v252_v33 = vld [vmem:[%s2773_s18 + $0xb8] sm:$0xff]  ;;  %v255_v34 = vld [vmem:[%s2773_s18 + $0xd0] sm:$0xff] }
  0x20   : > { %224 = vst.msk [vmem:[#allocation2 + $0x1b8] sm:$0x1] %vm186_vm1, %v2674_v0  ;;  %225 = vst.msk [vmem:[#allocation2 + $0x1d8] sm:$0x1] %vm186_vm1, %v2674_v0  ;;  %v254_v35 = vld [vmem:[%s2773_s18 + $0xc8] sm:$0xff]  ;;  %v257_v36 = vld [vmem:[%s2773_s18 + $0xe0] sm:$0xff] }
  0x21   : > { %226 = vst.msk [vmem:[#allocation2 + $0x1f8] sm:$0x1] %vm186_vm1, %v2674_v0  ;;  %227 = vst.msk [vmem:[#allocation2 + $0x218] sm:$0x1] %vm186_vm1, %v2674_v0  ;;  %v256_v37 = vld [vmem:[%s2773_s18 + $0xd8] sm:$0xff]  ;;  %v258_v39 = vld [vmem:[%s2773_s18 + $0xe8] sm:$0xff] }
  0x22   : > { %211 = vst.msk [vmem:[#allocation2 + $0x18] sm:$0x1] %vm186_vm1, %v2674_v0  ;;  %193 = vst.msk [vmem:[#allocation2 + $0x7] sm:$0x1] %vm186_vm1, %v2674_v0  ;;  %v358_v62 = vld [vmem:[#allocation2 + $0x9] sm:$0xff]  ;;  %s2681_s8 = smov 28  }
  0x23   : > { %210 = vst.msk [vmem:[#allocation2 + $0x227] sm:$0x1] %vm186_vm1, %v2674_v0  ;;  %228 = vst.msk [vmem:[#allocation2 + $0x238] sm:$0x1] %vm186_vm1, %v2674_v0  ;;  %s2682_s9 = smov 32   ;;  %vm1875_vm10 = vcmask 293888  }
  0x24   : > { %262 = vst.msk [vmem:[#allocation2 + $0x28] sm:$0xff] %vm182_vm0, %v229_v1  ;;  %264 = vst.msk [vmem:[#allocation2 + $0x48] sm:$0xff] %vm182_vm0, %v231_v2  ;;  %s2502_s15 = sshll.u32 %s4176_s13, 1  ;;  %vm2371_vm11 = vcmask 1040384   ;;  %vm2373_vm12 = vcmask 25600  }
  0x25   : > { %263 = vst.msk [vmem:[#allocation2 + $0x30] sm:$0xff] %vm182_vm0, %v230_v3  ;;  %266 = vst.msk [vmem:[#allocation2 + $0x68] sm:$0xff] %vm182_vm0, %v233_v4 }
  0x26   : > { %265 = vst.msk [vmem:[#allocation2 + $0x50] sm:$0xff] %vm182_vm0, %v232_v5  ;;  %268 = vst.msk [vmem:[#allocation2 + $0x88] sm:$0xff] %vm182_vm0, %v235_v6 }
  0x27   : > { %267 = vst.msk [vmem:[#allocation2 + $0x70] sm:$0xff] %vm182_vm0, %v234_v9  ;;  %270 = vst.msk [vmem:[#allocation2 + $0xa8] sm:$0xff] %vm182_vm0, %v237_v10 }
  0x28   : > { %269 = vst.msk [vmem:[#allocation2 + $0x90] sm:$0xff] %vm182_vm0, %v236_v11  ;;  %272 = vst.msk [vmem:[#allocation2 + $0xc8] sm:$0xff] %vm182_vm0, %v239_v12 }
  0x29   : > { %271 = vst.msk [vmem:[#allocation2 + $0xb0] sm:$0xff] %vm182_vm0, %v238_v13  ;;  %274 = vst.msk [vmem:[#allocation2 + $0xe8] sm:$0xff] %vm182_vm0, %v241_v14  ;;  %v359_v1 = vld [vmem:[#allocation2 + $0x11] sm:$0xff] }
  0x2a   : > { %273 = vst.msk [vmem:[#allocation2 + $0xd0] sm:$0xff] %vm182_vm0, %v240_v15  ;;  %276 = vst.msk [vmem:[#allocation2 + $0x108] sm:$0xff] %vm182_vm0, %v243_v16 }
  0x2b   : > { %275 = vst.msk [vmem:[#allocation2 + $0xf0] sm:$0xff] %vm182_vm0, %v242_v17  ;;  %278 = vst.msk [vmem:[#allocation2 + $0x128] sm:$0xff] %vm182_vm0, %v245_v18  ;;  %v2818_v25 = vld [vmem:[#allocation2 + $0x28] sm:$0xff] }
  0x2c   : > { %277 = vst.msk [vmem:[#allocation2 + $0x110] sm:$0xff] %vm182_vm0, %v244_v19  ;;  %280 = vst.msk [vmem:[#allocation2 + $0x148] sm:$0xff] %vm182_vm0, %v247_v20  ;;  %v2820_v26 = vld [vmem:[#allocation2 + $0x48] sm:$0xff]  ;;  %619 = vrot.lane.b32.xlu1 %v2818_v25, %s2675_s19  ;;  %v2827_v27 = vld [vmem:[#allocation2 + $0x30] sm:$0xff] }
  0x2d   : > { %279 = vst.msk [vmem:[#allocation2 + $0x130] sm:$0xff] %vm182_vm0, %v246_v21  ;;  %282 = vst.msk [vmem:[#allocation2 + $0x168] sm:$0xff] %vm182_vm0, %v249_v22  ;;  %623 = vrot.lane.b32.xlu0 %v2820_v26, %s2675_s19  ;;  %v2835_v30 = vld [vmem:[#allocation2 + $0x68] sm:$0xff]  ;;  %v2839_v31 = vld [vmem:[#allocation2 + $0x50] sm:$0xff] }
  0x2e   : > { %281 = vst.msk [vmem:[#allocation2 + $0x150] sm:$0xff] %vm182_vm0, %v248_v23  ;;  %284 = vst.msk [vmem:[#allocation2 + $0x188] sm:$0xff] %vm182_vm0, %v251_v24  ;;  %v2843_v32 = vld [vmem:[#allocation2 + $0x88] sm:$0xff]  ;;  %v2855_v38 = vld [vmem:[#allocation2 + $0x70] sm:$0xff] }
  0x2f   : > { %283 = vst.msk [vmem:[#allocation2 + $0x170] sm:$0xff] %vm182_vm0, %v250_v28  ;;  %286 = vst.msk [vmem:[#allocation2 + $0x1a8] sm:$0xff] %vm182_vm0, %v253_v29  ;;  %v2863_v40 = vld [vmem:[#allocation2 + $0xa8] sm:$0xff]  ;;  %v2867_v41 = vld [vmem:[#allocation2 + $0x90] sm:$0xff] }
  0x30   : > { %621 = vrot.lane.b32.xlu1 %v2827_v27, %s2675_s19  ;;  %285 = vst.msk [vmem:[#allocation2 + $0x190] sm:$0xff] %vm182_vm0, %v252_v33  ;;  %288 = vst.msk [vmem:[#allocation2 + $0x1c8] sm:$0xff] %vm182_vm0, %v255_v34  ;;  %v2871_v42 = vld [vmem:[#allocation2 + $0xc8] sm:$0xff]  ;;  %v2875_v43 = vld [vmem:[#allocation2 + $0xb0] sm:$0xff] }
  0x31   : > { %627 = vrot.lane.b32.xlu0 %v2835_v30, %s2675_s19  ;;  %287 = vst.msk [vmem:[#allocation2 + $0x1b0] sm:$0xff] %vm182_vm0, %v254_v35  ;;  %290 = vst.msk [vmem:[#allocation2 + $0x1e8] sm:$0xff] %vm182_vm0, %v257_v36  ;;  %v2879_v44 = vld [vmem:[#allocation2 + $0xe8] sm:$0xff]  ;;  %v2883_v45 = vld [vmem:[#allocation2 + $0xd0] sm:$0xff] }
  0x32   : > { %289 = vst.msk [vmem:[#allocation2 + $0x1d0] sm:$0xff] %vm182_vm0, %v256_v37  ;;  %291 = vst.msk [vmem:[#allocation2 + $0x1f0] sm:$0xff] %vm182_vm0, %v258_v39  ;;  %v342_v46 = vld [vmem:[#allocation2 + $0x108] sm:$0xff]  ;;  %v2889_v47 = vld [vmem:[#allocation2 + $0xf0] sm:$0xff] }
  0x33   : > { %v344_v48 = vld [vmem:[#allocation2 + $0x128] sm:$0xff]  ;;  %v343_v49 = vld [vmem:[#allocation2 + $0x110] sm:$0xff] }
  0x34   : > { %625 = vrot.lane.b32.xlu1 %v2839_v31, %s2675_s19  ;;  %v346_v50 = vld [vmem:[#allocation2 + $0x148] sm:$0xff]  ;;  %v345_v51 = vld [vmem:[#allocation2 + $0x130] sm:$0xff] }
  0x35   : > { %631 = vrot.lane.b32.xlu0 %v2843_v32, %s2675_s19  ;;  %v348_v52 = vld [vmem:[#allocation2 + $0x168] sm:$0xff]  ;;  %v347_v53 = vld [vmem:[#allocation2 + $0x150] sm:$0xff] }
  0x36   : > { %v350_v54 = vld [vmem:[#allocation2 + $0x188] sm:$0xff]  ;;  %v349_v55 = vld [vmem:[#allocation2 + $0x170] sm:$0xff] }
  0x37   : > { %v352_v56 = vld [vmem:[#allocation2 + $0x1a8] sm:$0xff]  ;;  %v351_v57 = vld [vmem:[#allocation2 + $0x190] sm:$0xff] }
  0x38   : > { %629 = vrot.lane.b32.xlu1 %v2855_v38, %s2675_s19  ;;  %v354_v58 = vld [vmem:[#allocation2 + $0x1c8] sm:$0xff]  ;;  %v353_v59 = vld [vmem:[#allocation2 + $0x1b0] sm:$0xff] }
  0x39   : > { %635 = vrot.lane.b32.xlu0 %v2863_v40, %s2675_s19  ;;  %v356_v60 = vld [vmem:[#allocation2 + $0x1e8] sm:$0xff]  ;;  %v355_v61 = vld [vmem:[#allocation2 + $0x1d0] sm:$0xff] }
  0x3a   : > { %v357_v63 = vld [vmem:[#allocation2 + $0x1f0] sm:$0xff] }
  0x3b   : > { %v2909_v0 = vld [vmem:[#allocation2 + $0x29] sm:$0xff]  ;;  %v2917_v3 = vld [vmem:[#allocation2 + $0x31] sm:$0xff] }
  0x3c   : > { %633 = vrot.lane.b32.xlu1 %v2867_v41, %s2675_s19  ;;  %v2914_v2 = vld [vmem:[#allocation2 + $0x49] sm:$0xff]  ;;  %v2925_v5 = vld [vmem:[#allocation2 + $0x51] sm:$0xff] }
  0x3d   : > { %639 = vrot.lane.b32.xlu0 %v2871_v42, %s2675_s19  ;;  %v2921_v4 = vld [vmem:[#allocation2 + $0x69] sm:$0xff]  ;;  %v2933_v7 = vld [vmem:[#allocation2 + $0x71] sm:$0xff] }
  0x3e   : > { %v2929_v6 = vld [vmem:[#allocation2 + $0x89] sm:$0xff]  ;;  %v2941_v9 = vld [vmem:[#allocation2 + $0x91] sm:$0xff] }
  0x3f   : > { %v2937_v8 = vld [vmem:[#allocation2 + $0xa9] sm:$0xff]  ;;  %v2949_v11 = vld [vmem:[#allocation2 + $0xb1] sm:$0xff] }
  0x40   : > { %637 = vrot.lane.b32.xlu1 %v2875_v43, %s2675_s19  ;;  %v2945_v10 = vld [vmem:[#allocation2 + $0xc9] sm:$0xff]  ;;  %v2957_v13 = vld [vmem:[#allocation2 + $0xd1] sm:$0xff] }
  0x41   : > { %643 = vrot.lane.b32.xlu0 %v2879_v44, %s2675_s19  ;;  %v2953_v12 = vld [vmem:[#allocation2 + $0xe9] sm:$0xff]  ;;  %v2965_v15 = vld [vmem:[#allocation2 + $0xf1] sm:$0xff] }
  0x42   : > { %v2961_v14 = vld [vmem:[#allocation2 + $0x109] sm:$0xff]  ;;  %v2973_v17 = vld [vmem:[#allocation2 + $0x111] sm:$0xff] }
  0x43   : > { %v2969_v16 = vld [vmem:[#allocation2 + $0x129] sm:$0xff]  ;;  %v2979_v19 = vld [vmem:[#allocation2 + $0x131] sm:$0xff] }
  0x44   : > { %641 = vrot.lane.b32.xlu1 %v2883_v45, %s2675_s19  ;;  %v378_v18 = vld [vmem:[#allocation2 + $0x149] sm:$0xff]  ;;  %v379_v21 = vld [vmem:[#allocation2 + $0x151] sm:$0xff] }
  0x45   : > { %647 = vrot.lane.b32.xlu0 %v342_v46, %s2675_s19  ;;  %v380_v20 = vld [vmem:[#allocation2 + $0x169] sm:$0xff]  ;;  %v381_v23 = vld [vmem:[#allocation2 + $0x171] sm:$0xff] }
  0x46   : > { %v382_v22 = vld [vmem:[#allocation2 + $0x189] sm:$0xff]  ;;  %v383_v29 = vld [vmem:[#allocation2 + $0x191] sm:$0xff] }
  0x47   : > { %v384_v24 = vld [vmem:[#allocation2 + $0x1a9] sm:$0xff]  ;;  %v385_v35 = vld [vmem:[#allocation2 + $0x1b1] sm:$0xff] }
  0x48   : > { %645 = vrot.lane.b32.xlu1 %v2889_v47, %s2675_s19  ;;  %v386_v33 = vld [vmem:[#allocation2 + $0x1c9] sm:$0xff]  ;;  %v387_v46 = vld [vmem:[#allocation2 + $0x1d1] sm:$0xff] }
  0x49   : > { %651 = vrot.lane.b32.xlu0 %v344_v48, %s2675_s19  ;;  %v388_v37 = vld [vmem:[#allocation2 + $0x1e9] sm:$0xff] }
  0x4c   : > { %649 = vrot.lane.b32.xlu1 %v343_v49, %s2675_s19 }
  0x4d   : > { %655 = vrot.lane.b32.xlu0 %v346_v50, %s2675_s19  ;;  %v3006_v50 = vld [vmem:[#allocation2 + $0x27] sm:$0xff] }
  0x50   : > { %653 = vrot.lane.b32.xlu1 %v345_v51, %s2675_s19  ;;  %v389_v51 = vld [vmem:[#allocation2 + $0x1f1] sm:$0xff] }
  0x51   : > { %659 = vrot.lane.b32.xlu0 %v348_v52, %s2675_s19 }
  0x54   : > { %657 = vrot.lane.b32.xlu1 %v347_v53, %s2675_s19 }
  0x55   : > { %663 = vrot.lane.b32.xlu0 %v350_v54, %s2675_s19  ;;  %v3015_v54 = vld [vmem:[#allocation2 + $0x47] sm:$0xff] }
  0x58   : > { %661 = vrot.lane.b32.xlu1 %v349_v55, %s2675_s19 }
  0x59   : > { %667 = vrot.lane.b32.xlu0 %v352_v56, %s2675_s19  ;;  %v3021_v56 = vld [vmem:[#allocation2 + $0x2f] sm:$0xff] }
  0x5c   : > { %665 = vrot.lane.b32.xlu1 %v351_v57, %s2675_s19 }
  0x5d   : > { %671 = vrot.lane.b32.xlu0 %v354_v58, %s2675_s19  ;;  %v3027_v58 = vld [vmem:[#allocation2 + $0x67] sm:$0xff] }
  0x60   : > { %669 = vrot.lane.b32.xlu1 %v353_v59, %s2675_s19 }
  0x61   : > { %675 = vrot.lane.b32.xlu0 %v356_v60, %s2675_s19  ;;  %v3033_v60 = vld [vmem:[#allocation2 + $0x4f] sm:$0xff] }
  0x64   : > { %673 = vrot.lane.b32.xlu1 %v355_v61, %s2675_s19 }
  0x65   : > { %743 = vrot.lane.b32.xlu0 %v358_v62, %s2676_s20  ;;  %v3039_v62 = vld [vmem:[#allocation2 + $0x87] sm:$0xff] }
  0x68   : > { %677 = vrot.lane.b32.xlu1 %v357_v63, %s2675_s19 }
  0x69   : > { %747 = vrot.lane.b32.xlu0 %v2909_v0, %s2676_s20 }
  0x6c   : > { %745 = vrot.lane.b32.xlu1 %v359_v1, %s2676_s20  ;;  %v3045_v1 = vld [vmem:[#allocation2 + $0x6f] sm:$0xff] }
  0x6d   : > { %751 = vrot.lane.b32.xlu0 %v2914_v2, %s2676_s20 }
  0x70   : > { %749 = vrot.lane.b32.xlu1 %v2917_v3, %s2676_s20 }
  0x71   : > { %755 = vrot.lane.b32.xlu0 %v2921_v4, %s2676_s20 }
  0x74   : > { %753 = vrot.lane.b32.xlu1 %v2925_v5, %s2676_s20 }
  0x75   : > { %759 = vrot.lane.b32.xlu0 %v2929_v6, %s2676_s20 }
  0x78   : > { %757 = vrot.lane.b32.xlu1 %v2933_v7, %s2676_s20 }
  0x79   : > { %763 = vrot.lane.b32.xlu0 %v2937_v8, %s2676_s20 }
  0x7c   : > { %761 = vrot.lane.b32.xlu1 %v2941_v9, %s2676_s20 }
  0x7d   : > { %767 = vrot.lane.b32.xlu0 %v2945_v10, %s2676_s20 }
  0x80   : > { %765 = vrot.lane.b32.xlu1 %v2949_v11, %s2676_s20 }
  0x81   : > { %771 = vrot.lane.b32.xlu0 %v2953_v12, %s2676_s20 }
  0x84   : > { %769 = vrot.lane.b32.xlu1 %v2957_v13, %s2676_s20 }
  0x85   : > { %775 = vrot.lane.b32.xlu0 %v2961_v14, %s2676_s20 }
  0x88   : > { %773 = vrot.lane.b32.xlu1 %v2965_v15, %s2676_s20  ;;  %v2987_v28 = vpop.permute.xlu0 %615 }
  0x89   : > { %779 = vrot.lane.b32.xlu0 %v2969_v16, %s2676_s20 }
  0x8c   : > { %777 = vrot.lane.b32.xlu1 %v2973_v17, %s2676_s20  ;;  %v2991_v34 = vpop.permute.xlu0 %617 }
  0x8d   : > { %783 = vrot.lane.b32.xlu0 %v378_v18, %s2676_s20 }
  0x90   : > { %781 = vrot.lane.b32.xlu1 %v2979_v19, %s2676_s20 }
  0x91   : > { %787 = vrot.lane.b32.xlu0 %v380_v20, %s2676_s20  ;;  %v3051_v20 = vld [vmem:[#allocation2 + $0xa7] sm:$0xff] }
  0x94   : > { %785 = vrot.lane.b32.xlu1 %v379_v21, %s2676_s20 }
  0x95   : > { %791 = vrot.lane.b32.xlu0 %v382_v22, %s2676_s20  ;;  %v3057_v22 = vld [vmem:[#allocation2 + $0x8f] sm:$0xff] }
  0x98   : > { %789 = vrot.lane.b32.xlu1 %v381_v23, %s2676_s20 }
  0x99   : > { %795 = vrot.lane.b32.xlu0 %v384_v24, %s2676_s20  ;;  %v3063_v24 = vld [vmem:[#allocation2 + $0xc7] sm:$0xff] }
  0x9a   : > { %4079 = vst [vmem:[#allocation7_spill] sm:$0xff] %v3063_v24 }
  0x9c   : > { %793 = vrot.lane.b32.xlu1 %v383_v29, %s2676_s20 }
  0x9d   : > { %799 = vrot.lane.b32.xlu0 %v386_v33, %s2676_s20  ;;  %v3069_v33 = vld [vmem:[#allocation2 + $0xaf] sm:$0xff] }
  0x9e   : > { %v2995_v36 = vpop.permute.xlu1 %619  ;;  %4081 = vst [vmem:[#allocation9_spill] sm:$0xff] %v3069_v33 }
  0x9f   : > { %v2997_v39 = vpop.permute.xlu0 %623 }
  0xa0   : > { %797 = vrot.lane.b32.xlu1 %v385_v35, %s2676_s20 }
  0xa1   : > { %803 = vrot.lane.b32.xlu0 %v388_v37, %s2676_s20  ;;  %v3075_v37 = vld [vmem:[#allocation2 + $0xe7] sm:$0xff] }
  0xa2   : > { %v3001_v48 = vpop.permute.xlu1 %621  ;;  %4083 = vst [vmem:[#allocation11_spill] sm:$0xff] %v3075_v37 }
  0xa3   : > { %v3003_v49 = vpop.permute.xlu0 %627 }
  0xa4   : > { %801 = vrot.lane.b32.xlu1 %v387_v46, %s2676_s20 }
  0xa5   : > { %871 = vrot.lane.b32.xlu0 %v3006_v50, %s2677_s21 }
  0xa6   : > { %v3010_v52 = vpop.permute.xlu1 %625 }
  0xa7   : > { %v3012_v53 = vpop.permute.xlu0 %631 }
  0xa8   : > { %805 = vrot.lane.b32.xlu1 %v389_v51, %s2676_s20  ;;  %v3081_v51 = vld [vmem:[#allocation2 + $0xcf] sm:$0xff] }
  0xa9   : > { %875 = vrot.lane.b32.xlu0 %v3015_v54, %s2677_s21  ;;  %4085 = vst [vmem:[#allocation13_spill] sm:$0xff] %v3081_v51 }
  0xaa   : > { %v3019_v55 = vpop.permute.xlu1 %629 }
  0xab   : > { %v3023_v57 = vpop.permute.xlu0 %635 }
  0xac   : > { %873 = vrot.lane.b32.xlu1 %v3021_v56, %s2677_s21 }
  0xad   : > { %879 = vrot.lane.b32.xlu0 %v3027_v58, %s2677_s21 }
  0xae   : > { %v3031_v59 = vpop.permute.xlu1 %633 }
  0xaf   : > { %v3035_v61 = vpop.permute.xlu0 %639 }
  0xb0   : > { %4075 = vst [vmem:[#allocation3_spill] sm:$0xff] %v3035_v61  ;;  %877 = vrot.lane.b32.xlu1 %v3033_v60, %s2677_s21  ;;  %v1872_v61 = vld [vmem:[%s4066_s1 + $0x10] sm:$0xff] }
  0xb1   : > { %883 = vrot.lane.b32.xlu0 %v3039_v62, %s2677_s21 }
  0xb2   : > { %v3043_v63 = vpop.permute.xlu1 %637 }
  0xb3   : > { %v3047_v18 = vpop.permute.xlu0 %643 }
  0xb4   : > { %4076 = vst [vmem:[#allocation4_spill] sm:$0xff] %v3047_v18  ;;  %881 = vrot.lane.b32.xlu1 %v3045_v1, %s2677_s21 }
  0xb5   : > { %887 = vrot.lane.b32.xlu0 %v3051_v20, %s2677_s21 }
  0xb6   : > { %v3055_v21 = vpop.permute.xlu1 %641 }
  0xb7   : > { %4077 = vst [vmem:[#allocation5_spill] sm:$0xff] %v3055_v21  ;;  %v3059_v23 = vpop.permute.xlu0 %647  ;;  %v3097_v21 = vld [vmem:[#allocation2 + $0xef] sm:$0xff] }
  0xb8   : > { %4078 = vst [vmem:[#allocation6_spill] sm:$0xff] %v3059_v23  ;;  %885 = vrot.lane.b32.xlu1 %v3057_v22, %s2677_s21  ;;  %4088 = vst [vmem:[#allocation16_spill] sm:$0xff] %v3097_v21 }
  0xb9   : > { %891 = vrot.lane.b32.xlu0 %v3063_v24, %s2677_s21 }
  0xba   : > { %v3067_v29 = vpop.permute.xlu1 %645 }
  0xbb   : > { %4080 = vst [vmem:[#allocation8_spill] sm:$0xff] %v3067_v29  ;;  %v3071_v35 = vpop.permute.xlu0 %651  ;;  %v1871_v29 = vld [vmem:[%s4066_s1 + $0x8] sm:$0xff] }
  0xbc   : > { %4082 = vst [vmem:[#allocation10_spill] sm:$0xff] %v3071_v35  ;;  %889 = vrot.lane.b32.xlu1 %v3069_v33, %s2677_s21  ;;  %v1870_v35 = vld [vmem:[%s4066_s1] sm:$0xff] }
  0xbd   : > { %895 = vrot.lane.b32.xlu0 %v3075_v37, %s2677_s21  ;;  %v2635_v18 = vpack.c.bf16 %v1871_v29, %v1870_v35 }
  0xbe   : > { %v3079_v46 = vpop.permute.xlu1 %649 }
  0xbf   : > { %4084 = vst [vmem:[#allocation12_spill] sm:$0xff] %v3079_v46  ;;  %v3083_v23 = vpop.permute.xlu0 %655  ;;  %2636 = vmatprep.subr.bf16.mxu0 %v2635_v18  ;;  %2643 = vmatprep.subr.bf16.mxu1 %v2635_v18 }
  0xc0   : > { %4086 = vst [vmem:[#allocation14_spill] sm:$0xff] %v3083_v23  ;;  %893 = vrot.lane.b32.xlu1 %v3081_v51, %s2677_s21  ;;  %2638 = vmatpush3.bf16.msra.mxu0 %v2635_v18 }
  0xc1   : > { %999 = vrot.lane.b32.xlu0 %v2818_v25, %s2678_s26  ;;  %v1873_v25 = vld [vmem:[%s4066_s1 + $0x18] sm:$0xff]  ;;  %2646 = vmatpush3.bf16.msra.mxu1 %v2635_v18 }
  0xc2   : > { %v3095_v46 = vpop.permute.xlu1 %653  ;;  %v2639_v35 = vpack.c.bf16 %v1873_v25, %v1872_v61 }
  0xc3   : > { %4087 = vst [vmem:[#allocation15_spill] sm:$0xff] %v3095_v46  ;;  %v3099_v23 = vpop.permute.xlu0 %659 }
  0xc4   : > { %4089 = vst [vmem:[#allocation17_spill] sm:$0xff] %v3099_v23  ;;  %897 = vrot.lane.b32.xlu1 %v3097_v21, %s2677_s21  ;;  %2640 = vmatprep.subr.bf16.mxu0 %v2639_v35 }
  0xc5   : > { %1127 = vrot.lane.b32.xlu0 %v2909_v0, %s2679_s4  ;;  %2642 = vmatpush3.bf16.msra.mxu0 %v2639_v35  ;;  %v1874_v0 = vld [vmem:[%s4066_s1 + $0x20] sm:$0xf] }
  0xc6   : > { %v3111_v29 = vpop.permute.xlu1 %657  ;;  %2644 = vmatprep.subr.bf16.mxu1 %v2639_v35  ;;  %2585 = vmatprep.subr.msk.mxu0 %vm1972_vm2, %v1874_v0 }
  0xc7   : > { %4090 = vst [vmem:[#allocation18_spill] sm:$0xff] %v3111_v29  ;;  %v3113_v23 = vpop.permute.xlu0 %663  ;;  %2647 = vmatpush3.bf16.msra.mxu1 %v2639_v35 }
  0xc8   : > { %4091 = vst [vmem:[#allocation19_spill] sm:$0xff] %v3113_v23  ;;  %1001 = vrot.lane.b32.xlu1 %v2827_v27, %s2678_s26  ;;  %2645 = vmatprep.subr.msk.mxu1 %vm1972_vm2, %v1874_v0 }
  0xc9   : > { %1255 = vrot.lane.b32.xlu0 %v3015_v54, %s2680_s5  ;;  %2586 = vmatpush3.msk.msra.mxu0 %vm1972_vm2, %v1874_v0 }
  0xca   : > { %v3119_v46 = vpop.permute.xlu1 %661 }
  0xcb   : > { %4092 = vst [vmem:[#allocation20_spill] sm:$0xff] %v3119_v46  ;;  %v3124_v61 = vpop.permute.xlu0 %667  ;;  %2648 = vmatpush3.msk.msra.mxu1 %vm1972_vm2, %v1874_v0 }
  0xcc   : > { %4093 = vst [vmem:[#allocation21_spill] sm:$0xff] %v3124_v61  ;;  %1129 = vrot.lane.b32.xlu1 %v2917_v3, %s2679_s4 }
  0xcd   : > { %1383 = vrot.lane.b32.xlu0 %v2820_v26, %s2681_s8 }
  0xce   : > { %v3130_v27 = vpop.permute.xlu1 %665 }
  0xcf   : > { %4094 = vst [vmem:[#allocation22_spill] sm:$0xff] %v3130_v27  ;;  %v3132_v18 = vpop.permute.xlu0 %671 }
  0xd0   : > { %4095 = vst [vmem:[#allocation23_spill] sm:$0xff] %v3132_v18  ;;  %1257 = vrot.lane.b32.xlu1 %v3033_v60, %s2680_s5 }
  0xd1   : > { %1385 = vrot.lane.b32.xlu0 %v2839_v31, %s2681_s8 }
  0xd2   : > { %v3138_v25 = vpop.permute.xlu1 %669 }
  0xd3   : > { %4096 = vst [vmem:[#allocation24_spill] sm:$0xff] %v3138_v25  ;;  %v3140_v35 = vpop.permute.xlu0 %675 }
  0xd4   : > { %4097 = vst [vmem:[#allocation25_spill] sm:$0xff] %v3140_v35  ;;  %1003 = vrot.lane.b32.xlu1 %v2820_v26, %s2678_s26 }
  0xd5   : > { %1005 = vrot.lane.b32.xlu0 %v2839_v31, %s2678_s26 }
  0xd6   : > { %v3146_v3 = vpop.permute.xlu1 %673 }
  0xd7   : > { %4098 = vst [vmem:[#allocation26_spill] sm:$0xff] %v3146_v3  ;;  %v3148_v0 = vpop.permute.xlu0 %743 }
  0xd8   : > { %1511 = vrot.lane.b32.xlu1 %v2914_v2, %s2682_s9 }
  0xd9   : > { %1513 = vrot.lane.b32.xlu0 %v2925_v5, %s2682_s9 }
  0xda   : > { %v3154_v18 = vpop.permute.xlu1 %677 }
  0xdb   : > { %4099 = vst [vmem:[#allocation27_spill] sm:$0xff] %v3154_v18  ;;  %v3156_v35 = vpop.permute.xlu0 %747 }
  0xdc   : > { %1131 = vrot.lane.b32.xlu1 %v2914_v2, %s2679_s4 }
  0xdd   : > { %1259 = vrot.lane.b32.xlu0 %v3027_v58, %s2680_s5 }
  0xde   : > { %v3162_v26 = vpop.permute.xlu1 %745 }
  0xdf   : > { %v3164_v31 = vpop.permute.xlu0 %751 }
  0xe0   : > { %1133 = vrot.lane.b32.xlu1 %v2925_v5, %s2679_s4 }
  0xe1   : > { %1387 = vrot.lane.b32.xlu0 %v2835_v30, %s2681_s8 }
  0xe2   : > { %v3170_v3 = vpop.permute.xlu1 %749 }
  0xe3   : > { %v3172_v18 = vpop.permute.xlu0 %755 }
  0xe4   : > { %1261 = vrot.lane.b32.xlu1 %v3045_v1, %s2680_s5 }
  0xe5   : > { %1389 = vrot.lane.b32.xlu0 %v2855_v38, %s2681_s8 }
  0xe6   : > { %v3178_v2 = vpop.permute.xlu1 %753 }
  0xe7   : > { %v3180_v25 = vpop.permute.xlu0 %759 }
  0xe8   : > { %1007 = vrot.lane.b32.xlu1 %v2835_v30, %s2678_s26 }
  0xe9   : > { %1009 = vrot.lane.b32.xlu0 %v2855_v38, %s2678_s26 }
  0xea   : > { %v3186_v5 = vpop.permute.xlu1 %757 }
  0xeb   : > { %v3188_v61 = vpop.permute.xlu0 %763 }
  0xec   : > { %1515 = vrot.lane.b32.xlu1 %v2921_v4, %s2682_s9 }
  0xed   : > { %1517 = vrot.lane.b32.xlu0 %v2933_v7, %s2682_s9 }
  0xee   : > { %v3194_v27 = vpop.permute.xlu1 %761 }
  0xef   : > { %v3196_v23 = vpop.permute.xlu0 %767 }
  0xf0   : > { %4100 = vst [vmem:[#allocation28_spill] sm:$0xff] %v3196_v23  ;;  %1135 = vrot.lane.b32.xlu1 %v2921_v4, %s2679_s4 }
  0xf1   : > { %1263 = vrot.lane.b32.xlu0 %v3039_v62, %s2680_s5 }
  0xf2   : > { %v3202_v30 = vpop.permute.xlu1 %765 }
  0xf3   : > { %4101 = vst [vmem:[#allocation29_spill] sm:$0xff] %v3202_v30  ;;  %v3204_v38 = vpop.permute.xlu0 %771 }
  0xf4   : > { %4102 = vst [vmem:[#allocation30_spill] sm:$0xff] %v3204_v38  ;;  %1137 = vrot.lane.b32.xlu1 %v2933_v7, %s2679_s4 }
  0xf5   : > { %1391 = vrot.lane.b32.xlu0 %v2843_v32, %s2681_s8 }
  0xf6   : > { %v3210_v46 = vpop.permute.xlu1 %769 }
  0xf7   : > { %4103 = vst [vmem:[#allocation31_spill] sm:$0xff] %v3210_v46  ;;  %v3212_v29 = vpop.permute.xlu0 %775 }
  0xf8   : > { %4104 = vst [vmem:[#allocation32_spill] sm:$0xff] %v3212_v29  ;;  %1265 = vrot.lane.b32.xlu1 %v3057_v22, %s2680_s5 }
  0xf9   : > { %1393 = vrot.lane.b32.xlu0 %v2867_v41, %s2681_s8 }
  0xfa   : > { %v3218_v4 = vpop.permute.xlu1 %773 }
  0xfb   : > { %4105 = vst [vmem:[#allocation33_spill] sm:$0xff] %v3218_v4  ;;  %v3220_v23 = vpop.permute.xlu0 %779 }
  0xfc   : > { %4106 = vst [vmem:[#allocation34_spill] sm:$0xff] %v3220_v23  ;;  %1011 = vrot.lane.b32.xlu1 %v2843_v32, %s2678_s26 }
  0xfd   : > { %1013 = vrot.lane.b32.xlu0 %v2867_v41, %s2678_s26 }
  0xfe   : > { %v3226_v7 = vpop.permute.xlu1 %777 }
  0xff   : > { %4107 = vst [vmem:[#allocation35_spill] sm:$0xff] %v3226_v7  ;;  %v3228_v38 = vpop.permute.xlu0 %783 }
 0x100   : > { %4108 = vst [vmem:[#allocation36_spill] sm:$0xff] %v3228_v38  ;;  %1519 = vrot.lane.b32.xlu1 %v2929_v6, %s2682_s9 }
 0x101   : > { %1521 = vrot.lane.b32.xlu0 %v2941_v9, %s2682_s9 }
 0x102   : > { %v3234_v29 = vpop.permute.xlu1 %781 }
 0x103   : > { %4109 = vst [vmem:[#allocation37_spill] sm:$0xff] %v3234_v29  ;;  %v3236_v4 = vpop.permute.xlu0 %787 }
 0x104   : > { %4110 = vst [vmem:[#allocation38_spill] sm:$0xff] %v3236_v4  ;;  %1139 = vrot.lane.b32.xlu1 %v2929_v6, %s2679_s4 }
 0x105   : > { %1267 = vrot.lane.b32.xlu0 %v3051_v20, %s2680_s5 }
 0x106   : > { %v3242_v32 = vpop.permute.xlu1 %785 }
 0x107   : > { %4111 = vst [vmem:[#allocation39_spill] sm:$0xff] %v3242_v32  ;;  %v3244_v41 = vpop.permute.xlu0 %791 }
 0x108   : > { %4112 = vst [vmem:[#allocation40_spill] sm:$0xff] %v3244_v41  ;;  %1141 = vrot.lane.b32.xlu1 %v2941_v9, %s2679_s4 }
 0x109   : > { %1395 = vrot.lane.b32.xlu0 %v2863_v40, %s2681_s8 }
 0x10a   : > { %v3250_v38 = vpop.permute.xlu1 %789 }
 0x10b   : > { %4113 = vst [vmem:[#allocation41_spill] sm:$0xff] %v3250_v38  ;;  %v3252_v29 = vpop.permute.xlu0 %795 }
 0x10c   : > { %4114 = vst [vmem:[#allocation42_spill] sm:$0xff] %v3252_v29  ;;  %1269 = vrot.lane.b32.xlu1 %v3069_v33, %s2680_s5 }
 0x10d   : > { %1397 = vrot.lane.b32.xlu0 %v2875_v43, %s2681_s8 }
 0x10e   : > { %v3258_v6 = vpop.permute.xlu1 %793 }
 0x10f   : > { %4115 = vst [vmem:[#allocation43_spill] sm:$0xff] %v3258_v6  ;;  %v3260_v4 = vpop.permute.xlu0 %799 }
 0x110   : > { %4116 = vst [vmem:[#allocation44_spill] sm:$0xff] %v3260_v4  ;;  %1015 = vrot.lane.b32.xlu1 %v2863_v40, %s2678_s26 }
 0x111   : > { %1017 = vrot.lane.b32.xlu0 %v2875_v43, %s2678_s26 }
 0x112   : > { %v3266_v9 = vpop.permute.xlu1 %797 }
 0x113   : > { %4117 = vst [vmem:[#allocation45_spill] sm:$0xff] %v3266_v9  ;;  %v3268_v41 = vpop.permute.xlu0 %803 }
 0x114   : > { %4118 = vst [vmem:[#allocation46_spill] sm:$0xff] %v3268_v41  ;;  %1523 = vrot.lane.b32.xlu1 %v2937_v8, %s2682_s9 }
 0x115   : > { %1525 = vrot.lane.b32.xlu0 %v2949_v11, %s2682_s9 }
 0x116   : > { %v3274_v29 = vpop.permute.xlu1 %801 }
 0x117   : > { %4119 = vst [vmem:[#allocation47_spill] sm:$0xff] %v3274_v29  ;;  %v872_v6 = vpop.permute.xlu0 %871 }
 0x118   : > { %1143 = vrot.lane.b32.xlu1 %v2937_v8, %s2679_s4 }
 0x119   : > { %1271 = vrot.lane.b32.xlu0 %v3063_v24, %s2680_s5 }
 0x11a   : > { %v3280_v40 = vpop.permute.xlu1 %805 }
 0x11b   : > { %4120 = vst [vmem:[#allocation48_spill] sm:$0xff] %v3280_v40  ;;  %v3282_v43 = vpop.permute.xlu0 %875 }
 0x11c   : > { %1145 = vrot.lane.b32.xlu1 %v2949_v11, %s2679_s4 }
 0x11d   : > { %1399 = vrot.lane.b32.xlu0 %v2871_v42, %s2681_s8 }
 0x11e   : > { %v874_v41 = vpop.permute.xlu1 %873 }
 0x11f   : > { %v3288_v4 = vpop.permute.xlu0 %879 }
 0x120   : > { %1273 = vrot.lane.b32.xlu1 %v3081_v51, %s2680_s5  ;;  %v3342_v51 = vld [vmem:[#allocation2 + $0x107] sm:$0xff] }
 0x121   : > { %1401 = vrot.lane.b32.xlu0 %v2883_v45, %s2681_s8 }
 0x122   : > { %v3294_v8 = vpop.permute.xlu1 %877 }
 0x123   : > { %v3296_v40 = vpop.permute.xlu0 %883 }
 0x124   : > { %1019 = vrot.lane.b32.xlu1 %v2871_v42, %s2678_s26 }
 0x125   : > { %1021 = vrot.lane.b32.xlu0 %v2883_v45, %s2678_s26 }
 0x126   : > { %v3302_v11 = vpop.permute.xlu1 %881 }
 0x127   : > { %v3304_v29 = vpop.permute.xlu0 %887 }
 0x128   : > { %1527 = vrot.lane.b32.xlu1 %v2945_v10, %s2682_s9 }
 0x129   : > { %1529 = vrot.lane.b32.xlu0 %v2957_v13, %s2682_s9 }
 0x12a   : > { %v3310_v9 = vpop.permute.xlu1 %885 }
 0x12b   : > { %v3312_v38 = vpop.permute.xlu0 %891 }
 0x12c   : > { %4121 = vst [vmem:[#allocation49_spill] sm:$0xff] %v3312_v38  ;;  %1147 = vrot.lane.b32.xlu1 %v2945_v10, %s2679_s4  ;;  %v434_v10 = vld [vmem:[#allocation2 + $0xe8] sm:$0xff] }
 0x12d   : > { %1275 = vrot.lane.b32.xlu0 %v3075_v37, %s2680_s5  ;;  %v435_v37 = vld [vmem:[#allocation2 + $0xf0] sm:$0xff] }
 0x12e   : > { %v3318_v42 = vpop.permute.xlu1 %889 }
 0x12f   : > { %v3320_v45 = vpop.permute.xlu0 %895 }
 0x130   : > { %4122 = vst [vmem:[#allocation50_spill] sm:$0xff] %v3320_v45  ;;  %1149 = vrot.lane.b32.xlu1 %v2957_v13, %s2679_s4 }
 0x131   : > { %1403 = vrot.lane.b32.xlu0 %v2879_v44, %s2681_s8 }
 0x132   : > { %v3326_v32 = vpop.permute.xlu1 %893 }
 0x133   : > { %4123 = vst [vmem:[#allocation51_spill] sm:$0xff] %v3326_v32  ;;  %v1000_v23 = vpop.permute.xlu0 %999 }
 0x134   : > { %1277 = vrot.lane.b32.xlu1 %v3097_v21, %s2680_s5 }
 0x135   : > { %1405 = vrot.lane.b32.xlu0 %v2889_v47, %s2681_s8  ;;  %v294_v47 = vld [vmem:[#allocation2 + $0x7] sm:$0xff] }
 0x136   : > { %v3332_v7 = vpop.permute.xlu1 %897 }
 0x137   : > { %4124 = vst [vmem:[#allocation52_spill] sm:$0xff] %v3332_v7  ;;  %v1128_v46 = vpop.permute.xlu0 %1127  ;;  %v295_v7 = vld [vmem:[#allocation2 + $0xf] sm:$0xff] }
 0x138   : > { %1023 = vrot.lane.b32.xlu1 %v434_v10, %s2678_s26  ;;  %v1607_v10 = vsel %vm182_vm0, %v294_v47, %v2987_v28  ;;  %v1608_v24 = vsel %vm182_vm0, %v295_v7, %v2991_v34 }
 0x139   : > { %1025 = vrot.lane.b32.xlu0 %v435_v37, %s2678_s26  ;;  %v1640_v30 = vsel %vm1639_vm3, %v1607_v10, %v3148_v0  ;;  %v1641_v38 = vsel %vm1639_vm3, %v1608_v24, %v3162_v26 }
 0x13a   : > { %v1002_v13 = vpop.permute.xlu1 %1001  ;;  %v1673_v33 = vsel %vm1672_vm4, %v1640_v30, %v872_v6  ;;  %v1674_v28 = vsel %vm1672_vm4, %v1641_v38, %v874_v41  ;;  %v531_v38 = vld [vmem:[#allocation2 + $0x108] sm:$0xff] }
 0x13b   : > { %v1256_v44 = vpop.permute.xlu0 %1255  ;;  %v1707_v7 = vsel %vm1705_vm5, %v1674_v28, %v1002_v13 }
 0x13c   : > { %1531 = vrot.lane.b32.xlu1 %v2953_v12, %s2682_s9 }
 0x13d   : > { %1533 = vrot.lane.b32.xlu0 %v2965_v15, %s2682_s9 }
 0x13e   : > { %v1130_v21 = vpop.permute.xlu1 %1129 }
 0x13f   : > { %v1384_v45 = vpop.permute.xlu0 %1383  ;;  %v1740_v47 = vsel %vm1738_vm6, %v1707_v7, %v1130_v21  ;;  %v532_v21 = vld [vmem:[#allocation2 + $0x110] sm:$0xff]  ;;  %v1610_v7 = vsel %vm182_vm0, %v3021_v56, %v3001_v48 }
 0x140   : > { %1151 = vrot.lane.b32.xlu1 %v2953_v12, %s2679_s4  ;;  %v3352_v12 = vld [vmem:[#allocation2 + $0x10f] sm:$0xff] }
 0x141   : > { %1279 = vrot.lane.b32.xlu0 %v3342_v51, %s2680_s5 }
 0x142   : > { %v1258_v37 = vpop.permute.xlu1 %1257 }
 0x143   : > { %v1386_v32 = vpop.permute.xlu0 %1385  ;;  %v1773_v30 = vsel %vm1771_vm7, %v1740_v47, %v1258_v37 }
 0x144   : > { %1153 = vrot.lane.b32.xlu1 %v2965_v15, %s2679_s4  ;;  %v1706_v15 = vsel %vm1705_vm5, %v1673_v33, %v1000_v23  ;;  %v1806_v41 = vsel %vm1804_vm8, %v1773_v30, %v1386_v32  ;;  %v1609_v32 = vsel %vm182_vm0, %v3006_v50, %v2995_v36  ;;  %v1643_v36 = vsel %vm1639_vm3, %v1610_v7, %v3170_v3  ;;  %v3412_v3 = vld [vmem:[#allocation2 + $0x12f] sm:$0xff] }
 0x145   : > { %1281 = vrot.lane.b32.xlu0 %v3352_v12, %s2680_s5  ;;  %v1739_v0 = vsel %vm1738_vm6, %v1706_v15, %v1128_v46  ;;  %v1642_v15 = vsel %vm1639_vm3, %v1609_v32, %v3156_v35  ;;  %v1676_v35 = vsel %vm1672_vm4, %v1643_v36, %v3294_v8 }
 0x146   : > { %v1004_v34 = vpop.permute.xlu1 %1003  ;;  %v1772_v26 = vsel %vm1771_vm7, %v1739_v0, %v1256_v44  ;;  %v1675_v0 = vsel %vm1672_vm4, %v1642_v15, %v3282_v43 }
 0x147   : > { %v1006_v24 = vpop.permute.xlu0 %1005  ;;  %v1805_v23 = vsel %vm1804_vm8, %v1772_v26, %v1384_v45  ;;  %v3398_v26 = vld [vmem:[#allocation2 + $0x127] sm:$0xff]  ;;  %v1708_v50 = vsel %vm1705_vm5, %v1675_v0, %v1004_v34 }
 0x148   : > { %899 = vrot.lane.b32.xlu1 %v3342_v51, %s2677_s21  ;;  %v1709_v56 = vsel %vm1705_vm5, %v1676_v35, %v1006_v24 }
 0x149   : > { %901 = vrot.lane.b32.xlu0 %v3352_v12, %s2677_s21 }
 0x14a   : > { %v1512_v33 = vpop.permute.xlu1 %1511 }
 0x14b   : > { %v1838_v46 = vsel %vm1837_vm9, %v1805_v23, %v1512_v33  ;;  %v1514_v6 = vpop.permute.xlu0 %1513 }
 0x14c   : > { %1407 = vrot.lane.b32.xlu1 %v531_v38, %s2681_s8  ;;  %2587 = vmatprep.mubr.msk.f32.mxu0 %vm1875_vm10, %v1838_v46  ;;  %v1839_v13 = vsel %vm1837_vm9, %v1806_v41, %v1514_v6  ;;  %v534_v6 = vld [vmem:[#allocation2 + $0x130] sm:$0xff] }
 0x14d   : > { %1409 = vrot.lane.b32.xlu0 %v532_v21, %s2681_s8  ;;  %2588 = vmatmul.mubr.msk.f32.vlgmr.msra.gmra.mrb[0].mxu0 %vm1875_vm10, %v1839_v13 }
 0x14e   : > { %v1132_v45 = vpop.permute.xlu1 %1131 }
 0x14f   : > { %v1260_v44 = vpop.permute.xlu0 %1259  ;;  %v1741_v30 = vsel %vm1738_vm6, %v1708_v50, %v1132_v45 }
 0x150   : > { %1027 = vrot.lane.b32.xlu1 %v531_v38, %s2678_s26  ;;  %v1774_v34 = vsel %vm1771_vm7, %v1741_v30, %v1260_v44 }
 0x151   : > { %1029 = vrot.lane.b32.xlu0 %v532_v21, %s2678_s26  ;;  %v533_v21 = vld [vmem:[#allocation2 + $0x128] sm:$0xff] }
 0x152   : > { %v1134_v37 = vpop.permute.xlu1 %1133 }
 0x153   : > { %v1388_v10 = vpop.permute.xlu0 %1387 }
 0x154   : > { %1535 = vrot.lane.b32.xlu1 %v2961_v14, %s2682_s9  ;;  %v1807_v38 = vsel %vm1804_vm8, %v1774_v34, %v1388_v10 }
 0x155   : > { %1537 = vrot.lane.b32.xlu0 %v2973_v17, %s2682_s9 }
 0x156   : > { %v1262_v28 = vpop.permute.xlu1 %1261 }
 0x157   : > { %v1390_v47 = vpop.permute.xlu0 %1389 }
 0x158   : > { %1155 = vrot.lane.b32.xlu1 %v2961_v14, %s2679_s4  ;;  %v1742_v14 = vsel %vm1738_vm6, %v1709_v56, %v1134_v37  ;;  %v1611_v37 = vsel %vm182_vm0, %v3015_v54, %v2997_v39 }
 0x159   : > { %1283 = vrot.lane.b32.xlu0 %v3398_v26, %s2680_s5  ;;  %v1775_v8 = vsel %vm1771_vm7, %v1742_v14, %v1262_v28  ;;  %v1644_v32 = vsel %vm1639_vm3, %v1611_v37, %v3164_v31  ;;  %v1612_v28 = vsel %vm182_vm0, %v3033_v60, %v3010_v52 }
 0x15a   : > { %v1008_v48 = vpop.permute.xlu1 %1007  ;;  %v1808_v33 = vsel %vm1804_vm8, %v1775_v8, %v1390_v47  ;;  %v1677_v15 = vsel %vm1672_vm4, %v1644_v32, %v3288_v4  ;;  %v1645_v39 = vsel %vm1639_vm3, %v1612_v28, %v3178_v2  ;;  %v3456_v2 = vld [vmem:[#allocation2 + $0x147] sm:$0xff] }
 0x15b   : > { %v1010_v43 = vpop.permute.xlu0 %1009  ;;  %v1710_v54 = vsel %vm1705_vm5, %v1677_v15, %v1008_v48  ;;  %v1678_v0 = vsel %vm1672_vm4, %v1645_v39, %v3302_v11  ;;  %v535_v8 = vld [vmem:[#allocation2 + $0x148] sm:$0xff] }
 0x15c   : > { %1157 = vrot.lane.b32.xlu1 %v2973_v17, %s2679_s4  ;;  %v1711_v60 = vsel %vm1705_vm5, %v1678_v0, %v1010_v43 }
 0x15d   : > { %1285 = vrot.lane.b32.xlu0 %v3412_v3, %s2680_s5 }
 0x15e   : > { %v1516_v23 = vpop.permute.xlu1 %1515 }
 0x15f   : > { %v1840_v24 = vsel %vm1837_vm9, %v1807_v38, %v1516_v23  ;;  %v1518_v46 = vpop.permute.xlu0 %1517  ;;  %v259_v38 = vld [vmem:[%s2773_s18 + $0xf0] sm:$0xff] }
 0x160   : > { %903 = vrot.lane.b32.xlu1 %v3398_v26, %s2677_s21  ;;  %2590 = vmatprep.mubr.msk.f32.mxu0 %vm1875_vm10, %v1840_v24  ;;  %v1841_v17 = vsel %vm1837_vm9, %v1808_v33, %v1518_v46  ;;  %292 = vst.msk [vmem:[#allocation2 + $0x208] sm:$0xff] %vm182_vm0, %v259_v38  ;;  %v536_v23 = vld [vmem:[#allocation2 + $0x150] sm:$0xff]  ;;  %v260_v33 = vld [vmem:[%s2773_s18 + $0xf8] sm:$0xff]  ;;  %v1613_v46 = vsel %vm182_vm0, %v3027_v58, %v3003_v49  ;;  %s181_s18 = scalar_lea.vmem %s4068_s3, %s2502_s15 }
 0x161   : > { %905 = vrot.lane.b32.xlu0 %v3412_v3, %s2677_s21  ;;  %2591 = vmatmul.mubr.msk.f32.gmra.mrb[2].mxu0 %vm1875_vm10, %v1841_v17  ;;  %293 = vst.msk [vmem:[#allocation2 + $0x210] sm:$0xff] %vm182_vm0, %v260_v33  ;;  %v569_v38 = vld [vmem:[#allocation2 + $0x169] sm:$0xff] }
 0x162   : > { %v1136_v41 = vpop.permute.xlu1 %1135 }
 0x163   : > { %v1264_v13 = vpop.permute.xlu0 %1263  ;;  %v1743_v31 = vsel %vm1738_vm6, %v1710_v54, %v1136_v41  ;;  %v1614_v41 = vsel %vm182_vm0, %v3045_v1, %v3019_v55  ;;  %v3513_v54 = vld [vmem:[#allocation2 + $0x167] sm:$0xff] }
 0x164   : > { %1411 = vrot.lane.b32.xlu1 %v533_v21, %s2681_s8  ;;  %v1776_v36 = vsel %vm1771_vm7, %v1743_v31, %v1264_v13  ;;  %v1647_v49 = vsel %vm1639_vm3, %v1614_v41, %v3186_v5 }
 0x165   : > { %1413 = vrot.lane.b32.xlu0 %v534_v6, %s2681_s8 }
 0x166   : > { %v1138_v45 = vpop.permute.xlu1 %1137 }
 0x167   : > { %v1392_v44 = vpop.permute.xlu0 %1391  ;;  %v1744_v4 = vsel %vm1738_vm6, %v1711_v60, %v1138_v45  ;;  %v567_v45 = vld [vmem:[#allocation2 + $0x149] sm:$0xff] }
 0x168   : > { %1031 = vrot.lane.b32.xlu1 %v533_v21, %s2678_s26  ;;  %v1809_v50 = vsel %vm1804_vm8, %v1776_v36, %v1392_v44  ;;  %v1646_v21 = vsel %vm1639_vm3, %v1613_v46, %v3172_v18  ;;  %v1680_v44 = vsel %vm1672_vm4, %v1647_v49, %v3310_v9  ;;  %v3520_v60 = vld [vmem:[#allocation2 + $0x16f] sm:$0xff] }
 0x169   : > { %1033 = vrot.lane.b32.xlu0 %v534_v6, %s2678_s26  ;;  %v1679_v6 = vsel %vm1672_vm4, %v1646_v21, %v3296_v40  ;;  %v568_v40 = vld [vmem:[#allocation2 + $0x151] sm:$0xff]  ;;  %v537_v36 = vld [vmem:[#allocation2 + $0x168] sm:$0xff] }
 0x16a   : > { %v1266_v10 = vpop.permute.xlu1 %1265 }
 0x16b   : > { %v1394_v7 = vpop.permute.xlu0 %1393  ;;  %v1777_v11 = vsel %vm1771_vm7, %v1744_v4, %v1266_v10 }
 0x16c   : > { %1539 = vrot.lane.b32.xlu1 %v2969_v16, %s2682_s9  ;;  %v1810_v48 = vsel %vm1804_vm8, %v1777_v11, %v1394_v7  ;;  %v1615_v11 = vsel %vm182_vm0, %v3039_v62, %v3012_v53 }
 0x16d   : > { %1541 = vrot.lane.b32.xlu0 %v2979_v19, %s2682_s9 }
 0x16e   : > { %v1012_v52 = vpop.permute.xlu1 %1011 }
 0x16f   : > { %v1014_v47 = vpop.permute.xlu0 %1013  ;;  %v1712_v58 = vsel %vm1705_vm5, %v1679_v6, %v1012_v52  ;;  %v3561_v6 = vld [vmem:[#allocation2 + $0x187] sm:$0xff] }
 0x170   : > { %1159 = vrot.lane.b32.xlu1 %v2969_v16, %s2679_s4  ;;  %v3468_v16 = vld [vmem:[#allocation2 + $0x14f] sm:$0xff]  ;;  %v1713_v1 = vsel %vm1705_vm5, %v1680_v44, %v1014_v47 }
 0x171   : > { %1287 = vrot.lane.b32.xlu0 %v3456_v2, %s2680_s5 }
 0x172   : > { %v1520_v35 = vpop.permute.xlu1 %1519 }
 0x173   : > { %v1842_v30 = vsel %vm1837_vm9, %v1809_v50, %v1520_v35  ;;  %v1522_v56 = vpop.permute.xlu0 %1521  ;;  %v1648_v35 = vsel %vm1639_vm3, %v1615_v11, %v3180_v25 }
 0x174   : > { %1161 = vrot.lane.b32.xlu1 %v2979_v19, %s2679_s4  ;;  %2593 = vmatprep.mubr.msk.f32.mxu0 %vm1875_vm10, %v1842_v30  ;;  %v1843_v14 = vsel %vm1837_vm9, %v1810_v48, %v1522_v56  ;;  %v538_v30 = vld [vmem:[#allocation2 + $0x170] sm:$0xff]  ;;  %v1616_v48 = vsel %vm182_vm0, %v3057_v22, %v3031_v59  ;;  %v1681_v56 = vsel %vm1672_vm4, %v1648_v35, %v3304_v29 }
 0x175   : > { %1289 = vrot.lane.b32.xlu0 %v3468_v16, %s2680_s5  ;;  %2594 = vmatmul.mubr.msk.f32.gmra.mrb[4].mxu0 %vm1875_vm10, %v1843_v14  ;;  %v1649_v53 = vsel %vm1639_vm3, %v1616_v48, %v3194_v27 }
 0x176   : > { %v1140_v43 = vpop.permute.xlu1 %1139 }
 0x177   : > { %v1268_v34 = vpop.permute.xlu0 %1267  ;;  %v1745_v18 = vsel %vm1738_vm6, %v1712_v58, %v1140_v43  ;;  %v1682_v43 = vsel %vm1672_vm4, %v1649_v53, %v3318_v42  ;;  %v3566_v58 = vld [vmem:[#allocation2 + $0x18f] sm:$0xff] }
 0x178   : > { %907 = vrot.lane.b32.xlu1 %v3456_v2, %s2677_s21  ;;  %v1778_v5 = vsel %vm1771_vm7, %v1745_v18, %v1268_v34 }
 0x179   : > { %909 = vrot.lane.b32.xlu0 %v3468_v16, %s2677_s21 }
 0x17a   : > { %v1142_v19 = vpop.permute.xlu1 %1141 }
 0x17b   : > { %v1396_v24 = vpop.permute.xlu0 %1395  ;;  %v1746_v37 = vsel %vm1738_vm6, %v1713_v1, %v1142_v19 }
 0x17c   : > { %1415 = vrot.lane.b32.xlu1 %v535_v8, %s2681_s8  ;;  %v1811_v28 = vsel %vm1804_vm8, %v1778_v5, %v1396_v24  ;;  %v570_v24 = vld [vmem:[#allocation2 + $0x171] sm:$0xff] }
 0x17d   : > { %1417 = vrot.lane.b32.xlu0 %v536_v23, %s2681_s8  ;;  %v4127_v5 = vld [vmem:[#allocation29_spill] sm:$0xff] }
 0x17e   : > { %v1270_v17 = vpop.permute.xlu1 %1269 }
 0x17f   : > { %v1398_v13 = vpop.permute.xlu0 %1397  ;;  %v1779_v32 = vsel %vm1771_vm7, %v1746_v37, %v1270_v17 }
 0x180   : > { %1035 = vrot.lane.b32.xlu1 %v535_v8, %s2678_s26  ;;  %v1812_v7 = vsel %vm1804_vm8, %v1779_v32, %v1398_v13  ;;  %v539_v32 = vld [vmem:[#allocation2 + $0x188] sm:$0xff] }
 0x181   : > { %1037 = vrot.lane.b32.xlu0 %v536_v23, %s2678_s26 }
 0x182   : > { %v1016_v55 = vpop.permute.xlu1 %1015 }
 0x183   : > { %v1018_v10 = vpop.permute.xlu0 %1017  ;;  %v1714_v62 = vsel %vm1705_vm5, %v1681_v56, %v1016_v55  ;;  %v4125_v55 = vld [vmem:[#allocation9_spill] sm:$0xff] }
 0x184   : > { %1543 = vrot.lane.b32.xlu1 %v567_v45, %s2682_s9  ;;  %v1715_v59 = vsel %vm1705_vm5, %v1682_v43, %v1018_v10  ;;  %v1618_v1 = vsel %vm182_vm0, %v4125_v55, %v3043_v63  ;;  %v572_v56 = vld [vmem:[#allocation2 + $0x191] sm:$0xff] }
 0x185   : > { %1545 = vrot.lane.b32.xlu0 %v568_v40, %s2682_s9 }
 0x186   : > { %v1524_v9 = vpop.permute.xlu1 %1523 }
 0x187   : > { %v1844_v15 = vsel %vm1837_vm9, %v1811_v28, %v1524_v9  ;;  %v1526_v39 = vpop.permute.xlu0 %1525  ;;  %v4128_v28 = vld [vmem:[#allocation51_spill] sm:$0xff] }
 0x188   : > { %1163 = vrot.lane.b32.xlu1 %v567_v45, %s2679_s4  ;;  %2596 = vmatprep.mubr.msk.f32.mxu0 %vm1875_vm10, %v1844_v15  ;;  %v1845_v0 = vsel %vm1837_vm9, %v1812_v7, %v1526_v39  ;;  %v1617_v45 = vsel %vm182_vm0, %v3051_v20, %v3023_v57  ;;  %v1651_v57 = vsel %vm1639_vm3, %v1618_v1, %v4127_v5  ;;  %v540_v7 = vld [vmem:[#allocation2 + $0x190] sm:$0xff] }
 0x189   : > { %1291 = vrot.lane.b32.xlu0 %v3513_v54, %s2680_s5  ;;  %2597 = vmatmul.mubr.msk.f32.gmra.mrb[6].mxu0 %vm1875_vm10, %v1845_v0  ;;  %v1650_v18 = vsel %vm1639_vm3, %v1617_v45, %v3188_v61  ;;  %v1684_v61 = vsel %vm1672_vm4, %v1651_v57, %v4128_v28  ;;  %v541_v45 = vld [vmem:[#allocation2 + $0x1a8] sm:$0xff] }
 0x18a   : > { %v1144_v31 = vpop.permute.xlu1 %1143 }
 0x18b   : > { %v1272_v52 = vpop.permute.xlu0 %1271  ;;  %v1747_v25 = vsel %vm1738_vm6, %v1714_v62, %v1144_v31  ;;  %v509_v62 = vld [vmem:[#allocation2 + $0x1a7] sm:$0xff] }
 0x18c   : > { %1165 = vrot.lane.b32.xlu1 %v568_v40, %s2679_s4  ;;  %v1780_v8 = vsel %vm1771_vm7, %v1747_v25, %v1272_v52  ;;  %v4126_v40 = vld [vmem:[#allocation49_spill] sm:$0xff] }
 0x18d   : > { %1293 = vrot.lane.b32.xlu0 %v3520_v60, %s2680_s5  ;;  %v1683_v37 = vsel %vm1672_vm4, %v1650_v18, %v4126_v40 }
 0x18e   : > { %v1146_v4 = vpop.permute.xlu1 %1145 }
 0x18f   : > { %v1400_v47 = vpop.permute.xlu0 %1399  ;;  %v1748_v22 = vsel %vm1738_vm6, %v1715_v59, %v1146_v4  ;;  %v3611_v59 = vld [vmem:[#allocation2 + $0x1af] sm:$0xff] }
 0x190   : > { %911 = vrot.lane.b32.xlu1 %v3513_v54, %s2677_s21  ;;  %v1813_v19 = vsel %vm1804_vm8, %v1780_v8, %v1400_v47 }
 0x191   : > { %913 = vrot.lane.b32.xlu0 %v3520_v60, %s2677_s21 }
 0x192   : > { %v1274_v50 = vpop.permute.xlu1 %1273 }
 0x193   : > { %v1402_v14 = vpop.permute.xlu0 %1401  ;;  %v1781_v27 = vsel %vm1771_vm7, %v1748_v22, %v1274_v50  ;;  %v4129_v22 = vld [vmem:[#allocation3_spill] sm:$0xff] }
 0x194   : > { %1419 = vrot.lane.b32.xlu1 %v537_v36, %s2681_s8  ;;  %v1814_v33 = vsel %vm1804_vm8, %v1781_v27, %v1402_v14 }
 0x195   : > { %1421 = vrot.lane.b32.xlu0 %v538_v30, %s2681_s8 }
 0x196   : > { %v1020_v34 = vpop.permute.xlu1 %1019 }
 0x197   : > { %v1022_v29 = vpop.permute.xlu0 %1021  ;;  %v1716_v20 = vsel %vm1705_vm5, %v1683_v37, %v1020_v34  ;;  %v542_v37 = vld [vmem:[#allocation2 + $0x1b0] sm:$0xff] }
 0x198   : > { %1039 = vrot.lane.b32.xlu1 %v537_v36, %s2678_s26  ;;  %v1717_v15 = vsel %vm1705_vm5, %v1684_v61, %v1022_v29  ;;  %v4130_v29 = vld [vmem:[#allocation7_spill] sm:$0xff] }
 0x199   : > { %1041 = vrot.lane.b32.xlu0 %v538_v30, %s2678_s26  ;;  %v571_v30 = vld [vmem:[#allocation2 + $0x189] sm:$0xff]  ;;  %v1619_v8 = vsel %vm182_vm0, %v4130_v29, %v4129_v22 }
 0x19a   : > { %v1528_v42 = vpop.permute.xlu1 %1527 }
 0x19b   : > { %v1846_v23 = vsel %vm1837_vm9, %v1813_v19, %v1528_v42  ;;  %v1530_v46 = vpop.permute.xlu0 %1529  ;;  %v415_v42 = vld [vmem:[#allocation2 + $0x1af] sm:$0xff] }
 0x19c   : > { %1547 = vrot.lane.b32.xlu1 %v569_v38, %s2682_s9  ;;  %2599 = vmatprep.mubr.msk.f32.mxu0 %vm1875_vm10, %v1846_v23  ;;  %v1847_v17 = vsel %vm1837_vm9, %v1814_v33, %v1530_v46  ;;  %v4132_v23 = vld [vmem:[#allocation5_spill] sm:$0xff]  ;;  %v4134_v46 = vld [vmem:[#allocation50_spill] sm:$0xff] }
 0x19d   : > { %1549 = vrot.lane.b32.xlu0 %v570_v24, %s2682_s9  ;;  %2600 = vmatmul.mubr.msk.f32.gmra.mrb[8].mxu0 %vm1875_vm10, %v1847_v17 }
 0x19e   : > { %v1148_v21 = vpop.permute.xlu1 %1147 }
 0x19f   : > { %v1276_v41 = vpop.permute.xlu0 %1275  ;;  %v1749_v9 = vsel %vm1738_vm6, %v1716_v20, %v1148_v21 }
 0x1a0   : > { %1167 = vrot.lane.b32.xlu1 %v569_v38, %s2679_s4  ;;  %v1782_v31 = vsel %vm1771_vm7, %v1749_v9, %v1276_v41  ;;  %v4131_v38 = vld [vmem:[#allocation28_spill] sm:$0xff]  ;;  %v4135_v41 = vld [vmem:[#allocation31_spill] sm:$0xff] }
 0x1a1   : > { %1295 = vrot.lane.b32.xlu0 %v3561_v6, %s2680_s5  ;;  %v1652_v19 = vsel %vm1639_vm3, %v1619_v8, %v4131_v38 }
 0x1a2   : > { %v1150_v13 = vpop.permute.xlu1 %1149  ;;  %v1685_v17 = vsel %vm1672_vm4, %v1652_v19, %v4134_v46 }
 0x1a3   : > { %v1404_v49 = vpop.permute.xlu0 %1403  ;;  %v1750_v39 = vsel %vm1738_vm6, %v1717_v15, %v1150_v13 }
 0x1a4   : > { %1169 = vrot.lane.b32.xlu1 %v570_v24, %s2679_s4  ;;  %v1815_v4 = vsel %vm1804_vm8, %v1782_v31, %v1404_v49  ;;  %v4133_v24 = vld [vmem:[#allocation13_spill] sm:$0xff] }
 0x1a5   : > { %1297 = vrot.lane.b32.xlu0 %v3566_v58, %s2680_s5  ;;  %v1620_v33 = vsel %vm182_vm0, %v4133_v24, %v4132_v23 }
 0x1a6   : > { %v1278_v44 = vpop.permute.xlu1 %1277  ;;  %v1653_v13 = vsel %vm1639_vm3, %v1620_v33, %v4135_v41 }
 0x1a7   : > { %v1406_v10 = vpop.permute.xlu0 %1405  ;;  %v1783_v52 = vsel %vm1771_vm7, %v1750_v39, %v1278_v44  ;;  %v4136_v44 = vld [vmem:[#allocation52_spill] sm:$0xff] }
 0x1a8   : > { %915 = vrot.lane.b32.xlu1 %v3561_v6, %s2677_s21  ;;  %v1816_v11 = vsel %vm1804_vm8, %v1783_v52, %v1406_v10  ;;  %v1686_v18 = vsel %vm1672_vm4, %v1653_v13, %v4136_v44 }
 0x1a9   : > { %917 = vrot.lane.b32.xlu0 %v3566_v58, %s2677_s21 }
 0x1aa   : > { %v1024_v63 = vpop.permute.xlu1 %1023 }
 0x1ab   : > { %v1026_v0 = vpop.permute.xlu0 %1025  ;;  %v1718_v49 = vsel %vm1705_vm5, %v1685_v17, %v1024_v63 }
 0x1ac   : > { %1423 = vrot.lane.b32.xlu1 %v539_v32, %s2681_s8  ;;  %v1719_v40 = vsel %vm1705_vm5, %v1686_v18, %v1026_v0  ;;  %v574_v0 = vld [vmem:[#allocation2 + $0x1b1] sm:$0xff] }
 0x1ad   : > { %1425 = vrot.lane.b32.xlu0 %v540_v7, %s2681_s8 }
 0x1ae   : > { %v1532_v47 = vpop.permute.xlu1 %1531 }
 0x1af   : > { %v1848_v36 = vsel %vm1837_vm9, %v1815_v4, %v1532_v47  ;;  %v1534_v50 = vpop.permute.xlu0 %1533  ;;  %v511_v4 = vld [vmem:[#allocation2 + $0x1c7] sm:$0xff] }
 0x1b0   : > { %1043 = vrot.lane.b32.xlu1 %v539_v32, %s2678_s26  ;;  %2602 = vmatprep.mubr.msk.f32.mxu0 %vm1875_vm10, %v1848_v36  ;;  %v1849_v35 = vsel %vm1837_vm9, %v1816_v11, %v1534_v50  ;;  %v512_v11 = vld [vmem:[#allocation2 + $0x1cf] sm:$0xff] }
 0x1b1   : > { %1045 = vrot.lane.b32.xlu0 %v540_v7, %s2678_s26  ;;  %2603 = vmatmul.mubr.msk.f32.gmra.mrb[10].mxu0 %vm1875_vm10, %v1849_v35  ;;  %v573_v7 = vld [vmem:[#allocation2 + $0x1a9] sm:$0xff] }
 0x1b2   : > { %v1152_v48 = vpop.permute.xlu1 %1151  ;;  %v4137_v35 = vld [vmem:[#allocation4_spill] sm:$0xff] }
 0x1b3   : > { %v1280_v14 = vpop.permute.xlu0 %1279  ;;  %v1751_v55 = vsel %vm1738_vm6, %v1718_v49, %v1152_v48 }
 0x1b4   : > { %1551 = vrot.lane.b32.xlu1 %v571_v30, %s2682_s9  ;;  %v1784_v57 = vsel %vm1771_vm7, %v1751_v55, %v1280_v14  ;;  %v4139_v14 = vld [vmem:[#allocation30_spill] sm:$0xff] }
 0x1b5   : > { %1553 = vrot.lane.b32.xlu0 %v572_v56, %s2682_s9 }
 0x1b6   : > { %v1154_v53 = vpop.permute.xlu1 %1153 }
 0x1b7   : > { %v1282_v43 = vpop.permute.xlu0 %1281  ;;  %v1752_v10 = vsel %vm1738_vm6, %v1719_v40, %v1154_v53 }
 0x1b8   : > { %1171 = vrot.lane.b32.xlu1 %v571_v30, %s2679_s4  ;;  %v1785_v28 = vsel %vm1771_vm7, %v1752_v10, %v1282_v43  ;;  %v4138_v30 = vld [vmem:[#allocation11_spill] sm:$0xff]  ;;  %v4141_v43 = vld [vmem:[#allocation16_spill] sm:$0xff] }
 0x1b9   : > { %1299 = vrot.lane.b32.xlu0 %v509_v62, %s2680_s5  ;;  %v1621_v48 = vsel %vm182_vm0, %v4138_v30, %v4137_v35  ;;  %v545_v35 = vld [vmem:[#allocation2 + $0x1e8] sm:$0xff] }
 0x1ba   : > { %v900_v25 = vpop.permute.xlu1 %899  ;;  %v1654_v53 = vsel %vm1639_vm3, %v1621_v48, %v4139_v14  ;;  %v546_v14 = vld [vmem:[#allocation2 + $0x1f0] sm:$0xff] }
 0x1bb   : > { %v3608_v34 = vpop.permute.xlu0 %901  ;;  %v1687_v29 = vsel %vm1672_vm4, %v1654_v53, %v900_v25  ;;  %v544_v25 = vld [vmem:[#allocation2 + $0x1d0] sm:$0xff] }
 0x1bc   : > { %1173 = vrot.lane.b32.xlu1 %v572_v56, %s2679_s4 }
 0x1bd   : > { %1301 = vrot.lane.b32.xlu0 %v3611_v59, %s2680_s5 }
 0x1be   : > { %v1408_v27 = vpop.permute.xlu1 %1407 }
 0x1bf   : > { %v1410_v21 = vpop.permute.xlu0 %1409  ;;  %v1817_v20 = vsel %vm1804_vm8, %v1784_v57, %v1408_v27  ;;  %v4142_v27 = vld [vmem:[#allocation33_spill] sm:$0xff]  ;;  %v513_v57 = vld [vmem:[#allocation2 + $0x1e7] sm:$0xff] }
 0x1c0   : > { %919 = vrot.lane.b32.xlu1 %v509_v62, %s2677_s21  ;;  %v1818_v9 = vsel %vm1804_vm8, %v1785_v28, %v1410_v21  ;;  %v4140_v62 = vld [vmem:[#allocation8_spill] sm:$0xff] }
 0x1c1   : > { %921 = vrot.lane.b32.xlu0 %v415_v42, %s2677_s21  ;;  %v1622_v22 = vsel %vm182_vm0, %v4141_v43, %v4140_v62  ;;  %v543_v42 = vld [vmem:[#allocation2 + $0x1c8] sm:$0xff] }
 0x1c2   : > { %v1028_v1 = vpop.permute.xlu1 %1027  ;;  %v1655_v38 = vsel %vm1639_vm3, %v1622_v22, %v4142_v27  ;;  %v514_v28 = vld [vmem:[#allocation2 + $0x1ef] sm:$0xff] }
 0x1c3   : > { %v1030_v5 = vpop.permute.xlu0 %1029  ;;  %v1720_v19 = vsel %vm1705_vm5, %v1687_v29, %v1028_v1  ;;  %v1688_v23 = vsel %vm1672_vm4, %v1655_v38, %v3608_v34  ;;  %v575_v1 = vld [vmem:[#allocation2 + $0x1c9] sm:$0xff] }
 0x1c4   : > { %1427 = vrot.lane.b32.xlu1 %v541_v45, %s2681_s8  ;;  %v1721_v46 = vsel %vm1705_vm5, %v1688_v23, %v1030_v5  ;;  %v578_v23 = vld [vmem:[#allocation2 + $0x1f1] sm:$0xff] }
 0x1c5   : > { %1429 = vrot.lane.b32.xlu0 %v542_v37, %s2681_s8 }
 0x1c6   : > { %v1536_v32 = vpop.permute.xlu1 %1535 }
 0x1c7   : > { %v1850_v61 = vsel %vm1837_vm9, %v1817_v20, %v1536_v32  ;;  %v1538_v63 = vpop.permute.xlu0 %1537 }
 0x1c8   : > { %1047 = vrot.lane.b32.xlu1 %v541_v45, %s2678_s26  ;;  %2605 = vmatprep.mubr.msk.f32.mxu0 %vm1875_vm10, %v1850_v61  ;;  %v1851_v15 = vsel %vm1837_vm9, %v1818_v9, %v1538_v63  ;;  %v4143_v9 = vld [vmem:[#allocation6_spill] sm:$0xff] }
 0x1c9   : > { %1049 = vrot.lane.b32.xlu0 %v542_v37, %s2678_s26  ;;  %2606 = vmatmul.mubr.msk.f32.gmra.mrb[12].mxu0 %vm1875_vm10, %v1851_v15  ;;  %v576_v37 = vld [vmem:[#allocation2 + $0x1d1] sm:$0xff]  ;;  %v1623_v63 = vsel %vm182_vm0, %v3342_v51, %v4143_v9 }
 0x1ca   : > { %v1156_v39 = vpop.permute.xlu1 %1155  ;;  %v548_v9 = vld [vmem:[#allocation2 + $0x210] sm:$0xff] }
 0x1cb   : > { %v1284_v31 = vpop.permute.xlu0 %1283  ;;  %v1753_v24 = vsel %vm1738_vm6, %v1720_v19, %v1156_v39  ;;  %v577_v19 = vld [vmem:[#allocation2 + $0x1e9] sm:$0xff] }
 0x1cc   : > { %1555 = vrot.lane.b32.xlu1 %v573_v7, %s2682_s9  ;;  %v1786_v41 = vsel %vm1771_vm7, %v1753_v24, %v1284_v31 }
 0x1cd   : > { %1557 = vrot.lane.b32.xlu0 %v574_v0, %s2682_s9 }
 0x1ce   : > { %v1158_v52 = vpop.permute.xlu1 %1157 }
 0x1cf   : > { %v1286_v47 = vpop.permute.xlu0 %1285  ;;  %v1754_v17 = vsel %vm1738_vm6, %v1721_v46, %v1158_v52  ;;  %v515_v46 = vld [vmem:[#allocation2 + $0x207] sm:$0xff] }
 0x1d0   : > { %1175 = vrot.lane.b32.xlu1 %v573_v7, %s2679_s4  ;;  %v1787_v49 = vsel %vm1771_vm7, %v1754_v17, %v1286_v47  ;;  %v4144_v7 = vld [vmem:[#allocation32_spill] sm:$0xff]  ;;  %v4146_v47 = vld [vmem:[#allocation35_spill] sm:$0xff] }
 0x1d1   : > { %1303 = vrot.lane.b32.xlu0 %v511_v4, %s2680_s5  ;;  %v1656_v39 = vsel %vm1639_vm3, %v1623_v63, %v4144_v7 }
 0x1d2   : > { %v904_v36 = vpop.permute.xlu1 %903 }
 0x1d3   : > { %v906_v50 = vpop.permute.xlu0 %905  ;;  %v1689_v52 = vsel %vm1672_vm4, %v1656_v39, %v904_v36 }
 0x1d4   : > { %1177 = vrot.lane.b32.xlu1 %v574_v0, %s2679_s4  ;;  %v4145_v0 = vld [vmem:[#allocation12_spill] sm:$0xff] }
 0x1d5   : > { %1305 = vrot.lane.b32.xlu0 %v512_v11, %s2680_s5  ;;  %v1624_v31 = vsel %vm182_vm0, %v3352_v12, %v4145_v0 }
 0x1d6   : > { %v1412_v56 = vpop.permute.xlu1 %1411 }
 0x1d7   : > { %v1414_v8 = vpop.permute.xlu0 %1413  ;;  %v1819_v13 = vsel %vm1804_vm8, %v1786_v41, %v1412_v56 }
 0x1d8   : > { %923 = vrot.lane.b32.xlu1 %v511_v4, %s2677_s21  ;;  %v1820_v44 = vsel %vm1804_vm8, %v1787_v49, %v1414_v8 }
 0x1d9   : > { %925 = vrot.lane.b32.xlu0 %v512_v11, %s2677_s21  ;;  %v1657_v11 = vsel %vm1639_vm3, %v1624_v31, %v4146_v47  ;;  %v579_v47 = vld [vmem:[#allocation2 + $0x209] sm:$0xff] }
 0x1da   : > { %v1032_v33 = vpop.permute.xlu1 %1031  ;;  %v1690_v30 = vsel %vm1672_vm4, %v1657_v11, %v906_v50 }
 0x1db   : > { %v1034_v21 = vpop.permute.xlu0 %1033  ;;  %v1722_v51 = vsel %vm1705_vm5, %v1689_v52, %v1032_v33 }
 0x1dc   : > { %1431 = vrot.lane.b32.xlu1 %v543_v42, %s2681_s8  ;;  %v1723_v12 = vsel %vm1705_vm5, %v1690_v30, %v1034_v21  ;;  %v516_v21 = vld [vmem:[#allocation2 + $0x20f] sm:$0xff] }
 0x1dd   : > { %1433 = vrot.lane.b32.xlu0 %v544_v25, %s2681_s8 }
 0x1de   : > { %v1540_v34 = vpop.permute.xlu1 %1539 }
 0x1df   : > { %v1852_v45 = vsel %vm1837_vm9, %v1819_v13, %v1540_v34  ;;  %v1542_v18 = vpop.permute.xlu0 %1541  ;;  %v4147_v13 = vld [vmem:[#allocation10_spill] sm:$0xff] }
 0x1e0   : > { %1051 = vrot.lane.b32.xlu1 %v543_v42, %s2678_s26  ;;  %2608 = vmatprep.mubr.msk.f32.mxu0 %vm1875_vm10, %v1852_v45  ;;  %v1853_v55 = vsel %vm1837_vm9, %v1820_v44, %v1542_v18  ;;  %v1625_v34 = vsel %vm182_vm0, %v3398_v26, %v4147_v13  ;;  %v4148_v45 = vld [vmem:[#allocation34_spill] sm:$0xff]  ;;  %v4149_v18 = vld [vmem:[#allocation15_spill] sm:$0xff] }
 0x1e1   : > { %1053 = vrot.lane.b32.xlu0 %v544_v25, %s2678_s26  ;;  %2609 = vmatmul.mubr.msk.f32.gmra.mrb[14].mxu0 %vm1875_vm10, %v1853_v55  ;;  %v1658_v44 = vsel %vm1639_vm3, %v1625_v34, %v4148_v45  ;;  %v1626_v55 = vsel %vm182_vm0, %v3412_v3, %v4149_v18 }
 0x1e2   : > { %v1160_v40 = vpop.permute.xlu1 %1159 }
 0x1e3   : > { %v1288_v10 = vpop.permute.xlu0 %1287  ;;  %v1755_v48 = vsel %vm1738_vm6, %v1722_v51, %v1160_v40  ;;  %v580_v51 = vld [vmem:[#allocation2 + $0x211] sm:$0xff] }
 0x1e4   : > { %1559 = vrot.lane.b32.xlu1 %v575_v1, %s2682_s9  ;;  %v1788_v62 = vsel %vm1771_vm7, %v1755_v48, %v1288_v10  ;;  %v517_v48 = vld [vmem:[#allocation2 + $0x227] sm:$0xff] }
 0x1e5   : > { %1561 = vrot.lane.b32.xlu0 %v576_v37, %s2682_s9 }
 0x1e6   : > { %v1162_v5 = vpop.permute.xlu1 %1161 }
 0x1e7   : > { %v1290_v20 = vpop.permute.xlu0 %1289  ;;  %v1756_v36 = vsel %vm1738_vm6, %v1723_v12, %v1162_v5  ;;  %v547_v5 = vld [vmem:[#allocation2 + $0x208] sm:$0xff] }
 0x1e8   : > { %1179 = vrot.lane.b32.xlu1 %v575_v1, %s2679_s4  ;;  %v1789_v22 = vsel %vm1771_vm7, %v1756_v36, %v1290_v20 }
 0x1e9   : > { %1307 = vrot.lane.b32.xlu0 %v513_v57, %s2680_s5 }
 0x1ea   : > { %v908_v32 = vpop.permute.xlu1 %907 }
 0x1eb   : > { %v910_v61 = vpop.permute.xlu0 %909  ;;  %v1691_v1 = vsel %vm1672_vm4, %v1658_v44, %v908_v32 }
 0x1ec   : > { %1181 = vrot.lane.b32.xlu1 %v576_v37, %s2679_s4  ;;  %v4150_v37 = vld [vmem:[#allocation37_spill] sm:$0xff] }
 0x1ed   : > { %1309 = vrot.lane.b32.xlu0 %v514_v28, %s2680_s5  ;;  %v1659_v10 = vsel %vm1639_vm3, %v1626_v55, %v4150_v37 }
 0x1ee   : > { %v1416_v15 = vpop.permute.xlu1 %1415 }
 0x1ef   : > { %v1418_v4 = vpop.permute.xlu0 %1417  ;;  %v1821_v43 = vsel %vm1804_vm8, %v1788_v62, %v1416_v15  ;;  %v4151_v62 = vld [vmem:[#allocation14_spill] sm:$0xff] }
 0x1f0   : > { %927 = vrot.lane.b32.xlu1 %v513_v57, %s2677_s21  ;;  %v1822_v8 = vsel %vm1804_vm8, %v1789_v22, %v1418_v4  ;;  %v1692_v57 = vsel %vm1672_vm4, %v1659_v10, %v910_v61  ;;  %v4152_v22 = vld [vmem:[#allocation36_spill] sm:$0xff]  ;;  %v582_v10 = vld [vmem:[#allocation2 + $0x231] sm:$0xff] }
 0x1f1   : > { %929 = vrot.lane.b32.xlu0 %v514_v28, %s2677_s21 }
 0x1f2   : > { %v1036_v56 = vpop.permute.xlu1 %1035 }
 0x1f3   : > { %v1038_v53 = vpop.permute.xlu0 %1037  ;;  %v1724_v26 = vsel %vm1705_vm5, %v1691_v1, %v1036_v56 }
 0x1f4   : > { %1435 = vrot.lane.b32.xlu1 %v545_v35, %s2681_s8  ;;  %v1725_v3 = vsel %vm1705_vm5, %v1692_v57, %v1038_v53  ;;  %v518_v53 = vld [vmem:[#allocation2 + $0x22f] sm:$0xff] }
 0x1f5   : > { %1437 = vrot.lane.b32.xlu0 %v546_v14, %s2681_s8 }
 0x1f6   : > { %v1544_v50 = vpop.permute.xlu1 %1543 }
 0x1f7   : > { %v1854_v29 = vsel %vm1837_vm9, %v1821_v43, %v1544_v50  ;;  %v1546_v27 = vpop.permute.xlu0 %1545  ;;  %v1627_v43 = vsel %vm182_vm0, %v3456_v2, %v4151_v62 }
 0x1f8   : > { %1055 = vrot.lane.b32.xlu1 %v545_v35, %s2678_s26  ;;  %2611 = vmatprep.mubr.msk.f32.mxu1 %vm1875_vm10, %v1854_v29  ;;  %v1855_v38 = vsel %vm1837_vm9, %v1822_v8, %v1546_v27  ;;  %v1660_v29 = vsel %vm1639_vm3, %v1627_v43, %v4152_v22  ;;  %v581_v8 = vld [vmem:[#allocation2 + $0x229] sm:$0xff]  ;;  %v4153_v27 = vld [vmem:[#allocation18_spill] sm:$0xff] }
 0x1f9   : > { %1057 = vrot.lane.b32.xlu0 %v546_v14, %s2678_s26  ;;  %2612 = vmatmul.mubr.msk.f32.vlgmr.msra.gmra.mrb[0].mxu1 %vm1875_vm10, %v1855_v38  ;;  %v549_v14 = vld [vmem:[#allocation2 + $0x228] sm:$0xff]  ;;  %v1628_v38 = vsel %vm182_vm0, %v3468_v16, %v4153_v27 }
 0x1fa   : > { %v1164_v42 = vpop.permute.xlu1 %1163 }
 0x1fb   : > { %v1292_v24 = vpop.permute.xlu0 %1291  ;;  %v1757_v20 = vsel %vm1738_vm6, %v1724_v26, %v1164_v42  ;;  %v4154_v42 = vld [vmem:[#allocation39_spill] sm:$0xff] }
 0x1fc   : > { %1563 = vrot.lane.b32.xlu1 %v577_v19, %s2682_s9  ;;  %v1790_v15 = vsel %vm1771_vm7, %v1757_v20, %v1292_v24 }
 0x1fd   : > { %1565 = vrot.lane.b32.xlu0 %v578_v23, %s2682_s9 }
 0x1fe   : > { %v1166_v33 = vpop.permute.xlu1 %1165 }
 0x1ff   : > { %v1294_v25 = vpop.permute.xlu0 %1293  ;;  %v1758_v32 = vsel %vm1738_vm6, %v1725_v3, %v1166_v33 }
 0x200   : > { %1183 = vrot.lane.b32.xlu1 %v577_v19, %s2679_s4  ;;  %v1791_v39 = vsel %vm1771_vm7, %v1758_v32, %v1294_v25 }
 0x201   : > { %1311 = vrot.lane.b32.xlu0 %v515_v46, %s2680_s5 }
 0x202   : > { %v912_v17 = vpop.permute.xlu1 %911 }
 0x203   : > { %v3724_v41 = vpop.permute.xlu0 %913  ;;  %v1693_v2 = vsel %vm1672_vm4, %v1660_v29, %v912_v17 }
 0x204   : > { %1185 = vrot.lane.b32.xlu1 %v578_v23, %s2679_s4  ;;  %v1661_v23 = vsel %vm1639_vm3, %v1628_v38, %v4154_v42 }
 0x205   : > { %1313 = vrot.lane.b32.xlu0 %v516_v21, %s2680_s5  ;;  %v1694_v25 = vsel %vm1672_vm4, %v1661_v23, %v3724_v41 }
 0x206   : > { %v1420_v49 = vpop.permute.xlu1 %1419 }
 0x207   : > { %v1422_v40 = vpop.permute.xlu0 %1421  ;;  %v1823_v7 = vsel %vm1804_vm8, %v1790_v15, %v1420_v49 }
 0x208   : > { %931 = vrot.lane.b32.xlu1 %v515_v46, %s2677_s21  ;;  %v1824_v31 = vsel %vm1804_vm8, %v1791_v39, %v1422_v40  ;;  %v550_v46 = vld [vmem:[#allocation2 + $0x230] sm:$0xff] }
 0x209   : > { %933 = vrot.lane.b32.xlu0 %v516_v21, %s2677_s21 }
 0x20a   : > { %v1040_v28 = vpop.permute.xlu1 %1039 }
 0x20b   : > { %v1042_v63 = vpop.permute.xlu0 %1041  ;;  %v1726_v24 = vsel %vm1705_vm5, %v1693_v2, %v1040_v28 }
 0x20c   : > { %1439 = vrot.lane.b32.xlu1 %v547_v5, %s2681_s8  ;;  %v1727_v49 = vsel %vm1705_vm5, %v1694_v25, %v1042_v63 }
 0x20d   : > { %1441 = vrot.lane.b32.xlu0 %v548_v9, %s2681_s8 }
 0x20e   : > { %v1548_v61 = vpop.permute.xlu1 %1547 }
 0x20f   : > { %v1856_v0 = vsel %vm1837_vm9, %v1823_v7, %v1548_v61  ;;  %v1550_v52 = vpop.permute.xlu0 %1549 }
 0x210   : > { %1059 = vrot.lane.b32.xlu1 %v547_v5, %s2678_s26  ;;  %2614 = vmatprep.mubr.msk.f32.mxu1 %vm1875_vm10, %v1856_v0  ;;  %v1857_v4 = vsel %vm1837_vm9, %v1824_v31, %v1550_v52  ;;  %v4155_v52 = vld [vmem:[#allocation17_spill] sm:$0xff] }
 0x211   : > { %1061 = vrot.lane.b32.xlu0 %v548_v9, %s2678_s26  ;;  %2615 = vmatmul.mubr.msk.f32.gmra.mrb[2].mxu1 %vm1875_vm10, %v1857_v4  ;;  %v1629_v4 = vsel %vm182_vm0, %v3513_v54, %v4155_v52  ;;  %v4161_v52 = vld [vmem:[#allocation22_spill] sm:$0xff] }
 0x212   : > { %v1168_v11 = vpop.permute.xlu1 %1167 }
 0x213   : > { %v1296_v35 = vpop.permute.xlu0 %1295  ;;  %v1759_v21 = vsel %vm1738_vm6, %v1726_v24, %v1168_v11 }
 0x214   : > { %1567 = vrot.lane.b32.xlu1 %v579_v47, %s2682_s9  ;;  %v1792_v40 = vsel %vm1771_vm7, %v1759_v21, %v1296_v35 }
 0x215   : > { %1569 = vrot.lane.b32.xlu0 %v580_v51, %s2682_s9 }
 0x216   : > { %v1170_v30 = vpop.permute.xlu1 %1169 }
 0x217   : > { %v1298_v56 = vpop.permute.xlu0 %1297  ;;  %v1760_v41 = vsel %vm1738_vm6, %v1727_v49, %v1170_v30 }
 0x218   : > { %1187 = vrot.lane.b32.xlu1 %v579_v47, %s2679_s4  ;;  %v1793_v20 = vsel %vm1771_vm7, %v1760_v41, %v1298_v56 }
 0x219   : > { %1315 = vrot.lane.b32.xlu0 %v517_v48, %s2680_s5 }
 0x21a   : > { %v3762_v12 = vpop.permute.xlu1 %915 }
 0x21b   : > { %v3764_v36 = vpop.permute.xlu0 %917 }
 0x21c   : > { %1189 = vrot.lane.b32.xlu1 %v580_v51, %s2679_s4  ;;  %v4156_v51 = vld [vmem:[#allocation38_spill] sm:$0xff] }
 0x21d   : > { %1443 = vrot.lane.b32.xlu0 %v549_v14, %s2681_s8  ;;  %v1662_v35 = vsel %vm1639_vm3, %v1629_v4, %v4156_v51  ;;  %v4157_v14 = vld [vmem:[#allocation20_spill] sm:$0xff]  ;;  %v1632_v4 = vsel %vm182_vm0, %v3566_v58, %v4161_v52 }
 0x21e   : > { %v1424_v50 = vpop.permute.xlu1 %1423  ;;  %v1695_v54 = vsel %vm1672_vm4, %v1662_v35, %v3762_v12  ;;  %v4162_v35 = vld [vmem:[#allocation43_spill] sm:$0xff] }
 0x21f   : > { %v1426_v19 = vpop.permute.xlu0 %1425  ;;  %v1825_v26 = vsel %vm1804_vm8, %v1792_v40, %v1424_v50  ;;  %v4158_v50 = vld [vmem:[#allocation41_spill] sm:$0xff] }
 0x220   : > { %1317 = vrot.lane.b32.xlu1 %v518_v53, %s2680_s5  ;;  %v2589_v33 = vpop.f32.mrb[0].mxu0  ;;  %v1826_v3 = vsel %vm1804_vm8, %v1793_v20, %v1426_v19  ;;  %v1630_v53 = vsel %vm182_vm0, %v3520_v60, %v4157_v14 }
 0x221   : > { %v2202_v16 = vsel %vm182_vm0, %v2589_v33, 0.0  ;;  %v2271_v13 = vmul.f32 %v2589_v33, %v2589_v33  ;;  %2376 = vst.msk [vmem:[%s3778_s14 + $0x8] sm:$0xff] %vm182_vm0, %v2589_v33  ;;  %1571 = vrot.lane.b32.xlu0 %v581_v8, %s2682_s9  ;;  %v2042_v17 = vpop.f32.mrb[1].mxu0  ;;  %v1663_v22 = vsel %vm1639_vm3, %v1630_v53, %v4158_v50 }
 0x222   : > { %v1044_v34 = vpop.permute.xlu1 %1043  ;;  %v2201_v45 = vsel %vm182_vm0, %v2042_v17, 0.0  ;;  %v2270_v44 = vmul.f32 %v2042_v17, %v2042_v17  ;;  %2375 = vst.msk [vmem:[%s3778_s14] sm:$0xff] %vm182_vm0, %v2042_v17  ;;  %v1696_v38 = vsel %vm1672_vm4, %v1663_v22, %v3764_v36 }
 0x223   : > { %v2303_v18 = vsel %vm182_vm0, %v2271_v13, 0.0  ;;  %v2203_v55 = vadd.f32 %v2202_v16, %v2201_v45  ;;  %v1046_v1 = vpop.permute.xlu0 %1045  ;;  %v1728_v29 = vsel %vm1705_vm5, %v1695_v54, %v1044_v34 }
 0x224   : > { %1445 = vrot.lane.b32.xlu1 %v550_v46, %s2681_s8  ;;  %v2302_v37 = vsel %vm182_vm0, %v2270_v44, 0.0  ;;  %v1729_v12 = vsel %vm1705_vm5, %v1696_v38, %v1046_v1 }
 0x225   : > { %v2304_v5 = vadd.f32 %v2303_v18, %v2302_v37 }
 0x226   : > { %v1552_v57 = vpop.permute.xlu1 %1551 }
 0x227   : > { %v1858_v28 = vsel %vm1837_vm9, %v1825_v26, %v1552_v57  ;;  %v1554_v9 = vpop.permute.xlu0 %1553 }
 0x228   : > { %1573 = vrot.lane.b32.xlu1 %v582_v10, %s2682_s9  ;;  %2617 = vmatprep.mubr.msk.f32.mxu1 %vm1875_vm10, %v1858_v28  ;;  %v1859_v32 = vsel %vm1837_vm9, %v1826_v3, %v1554_v9  ;;  %v4159_v3 = vld [vmem:[#allocation19_spill] sm:$0xff] }
 0x229   : > { %2618 = vmatmul.mubr.msk.f32.gmra.mrb[4].mxu1 %vm1875_vm10, %v1859_v32  ;;  %v1631_v9 = vsel %vm182_vm0, %v3561_v6, %v4159_v3  ;;  %v1665_v6 = vsel %vm1639_vm3, %v1632_v4, %v4162_v35 }
 0x22a   : > { %v1172_v63 = vpop.permute.xlu1 %1171 }
 0x22b   : > { %v1300_v15 = vpop.permute.xlu0 %1299  ;;  %v1761_v2 = vsel %vm1738_vm6, %v1728_v29, %v1172_v63 }
 0x22c   : > { %v1794_v25 = vsel %vm1771_vm7, %v1761_v2, %v1300_v15 }
 0x22e   : > { %v1174_v7 = vpop.permute.xlu1 %1173 }
 0x22f   : > { %v1302_v61 = vpop.permute.xlu0 %1301  ;;  %v1762_v24 = vsel %vm1738_vm6, %v1729_v12, %v1174_v7  ;;  %v4160_v7 = vld [vmem:[#allocation40_spill] sm:$0xff] }
 0x230   : > { %v1795_v36 = vsel %vm1771_vm7, %v1762_v24, %v1302_v61  ;;  %v1664_v61 = vsel %vm1639_vm3, %v1631_v9, %v4160_v7 }
 0x232   : > { %v3812_v39 = vpop.permute.xlu1 %919 }
 0x233   : > { %v3814_v0 = vpop.permute.xlu0 %921 }
 0x234   : > { %v2592_v31 = vpop.f32.mrb[2].mxu0 }
 0x235   : > { %2378 = vst.msk [vmem:[%s3778_s14 + $0x18] sm:$0xff] %vm182_vm0, %v2592_v31  ;;  %v2052_v11 = vpop.f32.mrb[3].mxu0  ;;  %v2273_v30 = vmul.f32 %v2592_v31, %v2592_v31  ;;  %v2206_v8 = vsel %vm182_vm0, %v2592_v31, 0.0 }
 0x236   : > { %v1428_v47 = vpop.permute.xlu1 %1427  ;;  %v2204_v48 = vsel %vm182_vm0, %v2052_v11, 0.0  ;;  %v2272_v56 = vmul.f32 %v2052_v11, %v2052_v11  ;;  %2377 = vst.msk [vmem:[%s3778_s14 + $0x10] sm:$0xff] %vm182_vm0, %v2052_v11 }
 0x237   : > { %v2205_v62 = vadd.f32 %v2204_v48, %v2203_v55  ;;  %v1430_v43 = vpop.permute.xlu0 %1429  ;;  %v2307_v23 = vsel %vm182_vm0, %v2273_v30, 0.0  ;;  %v1827_v21 = vsel %vm1804_vm8, %v1794_v25, %v1428_v47  ;;  %v1697_v47 = vsel %vm1672_vm4, %v1664_v61, %v3812_v39 }
 0x238   : > { %v2305_v27 = vsel %vm182_vm0, %v2272_v56, 0.0  ;;  %v1828_v17 = vsel %vm1804_vm8, %v1795_v36, %v1430_v43  ;;  %v1698_v48 = vsel %vm1672_vm4, %v1665_v6, %v3814_v0 }
 0x239   : > { %v2306_v60 = vadd.f32 %v2305_v27, %v2304_v5  ;;  %v2207_v42 = vadd.f32 %v2206_v8, %v2205_v62 }
 0x23a   : > { %v1048_v19 = vpop.permute.xlu1 %1047 }
 0x23b   : > { %v1050_v33 = vpop.permute.xlu0 %1049  ;;  %v2308_v46 = vadd.f32 %v2307_v23, %v2306_v60  ;;  %v1730_v30 = vsel %vm1705_vm5, %v1697_v47, %v1048_v19 }
 0x23c   : > { %v1731_v53 = vsel %vm1705_vm5, %v1698_v48, %v1050_v33 }
 0x23e   : > { %v1556_v16 = vpop.permute.xlu1 %1555 }
 0x23f   : > { %v1860_v13 = vsel %vm1837_vm9, %v1827_v21, %v1556_v16  ;;  %v1558_v34 = vpop.permute.xlu0 %1557 }
 0x240   : > { %2620 = vmatprep.mubr.msk.f32.mxu1 %vm1875_vm10, %v1860_v13  ;;  %v1861_v49 = vsel %vm1837_vm9, %v1828_v17, %v1558_v34  ;;  %v320_v13 = vld [vmem:[#allocation2 + $0x1a7] sm:$0xff] }
 0x241   : > { %2621 = vmatmul.mubr.msk.f32.gmra.mrb[6].mxu1 %vm1875_vm10, %v1861_v49 }
 0x242   : > { %v1176_v45 = vpop.permute.xlu1 %1175 }
 0x243   : > { %v1304_v44 = vpop.permute.xlu0 %1303  ;;  %v1763_v56 = vsel %vm1738_vm6, %v1730_v30, %v1176_v45  ;;  %v4163_v45 = vld [vmem:[#allocation21_spill] sm:$0xff] }
 0x244   : > { %v1796_v39 = vsel %vm1771_vm7, %v1763_v56, %v1304_v44  ;;  %v1633_v44 = vsel %vm182_vm0, %v320_v13, %v4163_v45 }
 0x246   : > { %v1178_v41 = vpop.permute.xlu1 %1177 }
 0x247   : > { %v1306_v18 = vpop.permute.xlu0 %1305  ;;  %v1764_v58 = vsel %vm1738_vm6, %v1731_v53, %v1178_v41 }
 0x248   : > { %v2595_v55 = vpop.f32.mrb[4].mxu0  ;;  %v1797_v50 = vsel %vm1771_vm7, %v1764_v58, %v1306_v18  ;;  %v4164_v18 = vld [vmem:[#allocation42_spill] sm:$0xff] }
 0x249   : > { %2380 = vst.msk [vmem:[%s3778_s14 + $0x28] sm:$0xff] %vm182_vm0, %v2595_v55  ;;  %v2062_v40 = vpop.f32.mrb[5].mxu0  ;;  %v2275_v37 = vmul.f32 %v2595_v55, %v2595_v55  ;;  %v2210_v20 = vsel %vm182_vm0, %v2595_v55, 0.0  ;;  %v1666_v55 = vsel %vm1639_vm3, %v1633_v44, %v4164_v18 }
 0x24a   : > { %v3852_v1 = vpop.permute.xlu1 %923  ;;  %v2208_v10 = vsel %vm182_vm0, %v2062_v40, 0.0  ;;  %v2274_v26 = vmul.f32 %v2062_v40, %v2062_v40  ;;  %2379 = vst.msk [vmem:[%s3778_s14 + $0x20] sm:$0xff] %vm182_vm0, %v2062_v40  ;;  %v4165_v40 = vld [vmem:[#allocation24_spill] sm:$0xff] }
 0x24b   : > { %v2209_v5 = vadd.f32 %v2208_v10, %v2207_v42  ;;  %v926_v57 = vpop.permute.xlu0 %925  ;;  %v2311_v31 = vsel %vm182_vm0, %v2275_v37, 0.0  ;;  %v1634_v37 = vsel %vm182_vm0, %v3611_v59, %v4165_v40  ;;  %v1699_v10 = vsel %vm1672_vm4, %v1666_v55, %v3852_v1 }
 0x24c   : > { %v2309_v28 = vsel %vm182_vm0, %v2274_v26, 0.0 }
 0x24d   : > { %v2310_v32 = vadd.f32 %v2309_v28, %v2308_v46  ;;  %v2211_v15 = vadd.f32 %v2210_v20, %v2209_v5  ;;  %v4166_v5 = vld [vmem:[#allocation45_spill] sm:$0xff] }
 0x24e   : > { %v1432_v63 = vpop.permute.xlu1 %1431  ;;  %v1667_v20 = vsel %vm1639_vm3, %v1634_v37, %v4166_v5 }
 0x24f   : > { %v1434_v11 = vpop.permute.xlu0 %1433  ;;  %v2312_v51 = vadd.f32 %v2311_v31, %v2310_v32  ;;  %v1829_v62 = vsel %vm1804_vm8, %v1796_v39, %v1432_v63  ;;  %v1700_v3 = vsel %vm1672_vm4, %v1667_v20, %v926_v57 }
 0x250   : > { %v1830_v0 = vsel %vm1804_vm8, %v1797_v50, %v1434_v11 }
 0x252   : > { %v1052_v14 = vpop.permute.xlu1 %1051 }
 0x253   : > { %v1054_v54 = vpop.permute.xlu0 %1053  ;;  %v1732_v28 = vsel %vm1705_vm5, %v1699_v10, %v1052_v14 }
 0x254   : > { %v1733_v63 = vsel %vm1705_vm5, %v1700_v3, %v1054_v54 }
 0x256   : > { %v1560_v43 = vpop.permute.xlu1 %1559 }
 0x257   : > { %v1862_v22 = vsel %vm1837_vm9, %v1829_v62, %v1560_v43  ;;  %v1562_v29 = vpop.permute.xlu0 %1561 }
 0x258   : > { %2623 = vmatprep.mubr.msk.f32.mxu1 %vm1875_vm10, %v1862_v22  ;;  %v1863_v8 = vsel %vm1837_vm9, %v1830_v0, %v1562_v29  ;;  %v322_v29 = vld [vmem:[#allocation2 + $0x1c7] sm:$0xff] }
 0x259   : > { %2624 = vmatmul.mubr.msk.f32.gmra.mrb[8].mxu1 %vm1875_vm10, %v1863_v8  ;;  %v323_v8 = vld [vmem:[#allocation2 + $0x1cf] sm:$0xff] }
 0x25a   : > { %v1180_v27 = vpop.permute.xlu1 %1179 }
 0x25b   : > { %v1308_v38 = vpop.permute.xlu0 %1307  ;;  %v1765_v9 = vsel %vm1738_vm6, %v1732_v28, %v1180_v27 }
 0x25c   : > { %v2598_v2 = vpop.f32.mrb[6].mxu0  ;;  %v1798_v7 = vsel %vm1771_vm7, %v1765_v9, %v1308_v38  ;;  %v4167_v38 = vld [vmem:[#allocation23_spill] sm:$0xff] }
 0x25d   : > { %2382 = vst.msk [vmem:[%s3778_s14 + $0x38] sm:$0xff] %vm182_vm0, %v2598_v2  ;;  %v2072_v19 = vpop.f32.mrb[7].mxu0  ;;  %v2277_v42 = vmul.f32 %v2598_v2, %v2598_v2  ;;  %v2214_v46 = vsel %vm182_vm0, %v2598_v2, 0.0  ;;  %v1635_v2 = vsel %vm182_vm0, %v322_v29, %v4167_v38  ;;  %v324_v9 = vld [vmem:[#allocation2 + $0x1e7] sm:$0xff] }
 0x25e   : > { %v1182_v60 = vpop.permute.xlu1 %1181  ;;  %v2212_v12 = vsel %vm182_vm0, %v2072_v19, 0.0  ;;  %v2276_v23 = vmul.f32 %v2072_v19, %v2072_v19  ;;  %2381 = vst.msk [vmem:[%s3778_s14 + $0x30] sm:$0xff] %vm182_vm0, %v2072_v19  ;;  %v4168_v19 = vld [vmem:[#allocation26_spill] sm:$0xff] }
 0x25f   : > { %v2213_v24 = vadd.f32 %v2212_v12, %v2211_v15  ;;  %v1310_v33 = vpop.permute.xlu0 %1309  ;;  %v2315_v17 = vsel %vm182_vm0, %v2277_v42, 0.0  ;;  %v1766_v15 = vsel %vm1738_vm6, %v1733_v63, %v1182_v60  ;;  %v1636_v42 = vsel %vm182_vm0, %v323_v8, %v4168_v19  ;;  %v4169_v12 = vld [vmem:[#allocation44_spill] sm:$0xff] }
 0x260   : > { %v2313_v25 = vsel %vm182_vm0, %v2276_v23, 0.0  ;;  %v1799_v31 = vsel %vm1771_vm7, %v1766_v15, %v1310_v33  ;;  %v1668_v23 = vsel %vm1639_vm3, %v1635_v2, %v4169_v12 }
 0x261   : > { %v2314_v21 = vadd.f32 %v2313_v25, %v2312_v51  ;;  %v2215_v36 = vadd.f32 %v2214_v46, %v2213_v24  ;;  %v4170_v24 = vld [vmem:[#allocation47_spill] sm:$0xff] }
 0x262   : > { %v928_v16 = vpop.permute.xlu1 %927  ;;  %v1669_v33 = vsel %vm1639_vm3, %v1636_v42, %v4170_v24 }
 0x263   : > { %v930_v34 = vpop.permute.xlu0 %929  ;;  %v2316_v49 = vadd.f32 %v2315_v17, %v2314_v21  ;;  %v1701_v46 = vsel %vm1672_vm4, %v1668_v23, %v928_v16 }
 0x264   : > { %v1702_v21 = vsel %vm1672_vm4, %v1669_v33, %v930_v34 }
 0x266   : > { %v1436_v41 = vpop.permute.xlu1 %1435 }
 0x267   : > { %v1438_v26 = vpop.permute.xlu0 %1437  ;;  %v1831_v1 = vsel %vm1804_vm8, %v1798_v7, %v1436_v41 }
 0x268   : > { %v1832_v57 = vsel %vm1804_vm8, %v1799_v31, %v1438_v26  ;;  %v4171_v31 = vld [vmem:[#allocation25_spill] sm:$0xff] }
 0x26a   : > { %v1056_v32 = vpop.permute.xlu1 %1055 }
 0x26b   : > { %v1058_v59 = vpop.permute.xlu0 %1057 }
 0x26c   : > { %v1735_v13 = vsel %vm1705_vm5, %v1702_v21, %v1058_v59 }
 0x26e   : > { %v1564_v61 = vpop.permute.xlu1 %1563 }
 0x26f   : > { %v1864_v52 = vsel %vm1837_vm9, %v1831_v1, %v1564_v61  ;;  %v1566_v4 = vpop.permute.xlu0 %1565 }
 0x270   : > { %2626 = vmatprep.mubr.msk.f32.mxu1 %vm1875_vm10, %v1864_v52  ;;  %v1865_v47 = vsel %vm1837_vm9, %v1832_v57, %v1566_v4  ;;  %v2601_v11 = vpop.f32.mrb[8].mxu0  ;;  %v1637_v52 = vsel %vm182_vm0, %v324_v9, %v4171_v31 }
 0x271   : > { %2384 = vst.msk [vmem:[%s3778_s14 + $0x48] sm:$0xff] %vm182_vm0, %v2601_v11  ;;  %2627 = vmatmul.mubr.msk.f32.gmra.mrb[10].mxu1 %vm1875_vm10, %v1865_v47  ;;  %v2082_v35 = vpop.f32.mrb[9].mxu0  ;;  %v2279_v6 = vmul.f32 %v2601_v11, %v2601_v11  ;;  %v2218_v53 = vsel %vm182_vm0, %v2601_v11, 0.0  ;;  %v4172_v47 = vld [vmem:[#allocation46_spill] sm:$0xff] }
 0x272   : > { %v1184_v51 = vpop.permute.xlu1 %1183  ;;  %v2216_v30 = vsel %vm182_vm0, %v2082_v35, 0.0  ;;  %v2278_v48 = vmul.f32 %v2082_v35, %v2082_v35  ;;  %2383 = vst.msk [vmem:[%s3778_s14 + $0x40] sm:$0xff] %vm182_vm0, %v2082_v35  ;;  %v1670_v11 = vsel %vm1639_vm3, %v1637_v52, %v4172_v47 }
 0x273   : > { %v2217_v56 = vadd.f32 %v2216_v30, %v2215_v36  ;;  %v1312_v14 = vpop.permute.xlu0 %1311  ;;  %v2319_v43 = vsel %vm182_vm0, %v2279_v6, 0.0  ;;  %v1734_v36 = vsel %vm1705_vm5, %v1701_v46, %v1056_v32 }
 0x274   : > { %v2317_v58 = vsel %vm182_vm0, %v2278_v48, 0.0  ;;  %v1767_v17 = vsel %vm1738_vm6, %v1734_v36, %v1184_v51 }
 0x275   : > { %v2318_v54 = vadd.f32 %v2317_v58, %v2316_v49  ;;  %v2219_v62 = vadd.f32 %v2218_v53, %v2217_v56  ;;  %v1800_v41 = vsel %vm1771_vm7, %v1767_v17, %v1312_v14  ;;  %v325_v56 = vld [vmem:[#allocation2 + $0x1ef] sm:$0xff]  ;;  %v4173_v58 = vld [vmem:[#allocation27_spill] sm:$0xff] }
 0x276   : > { %v1186_v39 = vpop.permute.xlu1 %1185 }
 0x277   : > { %v1314_v50 = vpop.permute.xlu0 %1313  ;;  %v2320_v22 = vadd.f32 %v2319_v43, %v2318_v54  ;;  %v1768_v45 = vsel %vm1738_vm6, %v1735_v13, %v1186_v39  ;;  %v1638_v54 = vsel %vm182_vm0, %v325_v56, %v4173_v58  ;;  %v4174_v43 = vld [vmem:[#allocation48_spill] sm:$0xff] }
 0x278   : > { %v1801_v55 = vsel %vm1771_vm7, %v1768_v45, %v1314_v50  ;;  %v1671_v50 = vsel %vm1639_vm3, %v1638_v54, %v4174_v43 }
 0x27a   : > { %v932_v0 = vpop.permute.xlu1 %931 }
 0x27b   : > { %v934_v27 = vpop.permute.xlu0 %933  ;;  %v1703_v51 = vsel %vm1672_vm4, %v1670_v11, %v932_v0 }
 0x27c   : > { %v1704_v0 = vsel %vm1672_vm4, %v1671_v50, %v934_v27 }
 0x27e   : > { %v1440_v60 = vpop.permute.xlu1 %1439 }
 0x27f   : > { %v1442_v25 = vpop.permute.xlu0 %1441  ;;  %v1833_v16 = vsel %vm1804_vm8, %v1800_v41, %v1440_v60 }
 0x280   : > { %v1834_v20 = vsel %vm1804_vm8, %v1801_v55, %v1442_v25 }
 0x282   : > { %v1060_v49 = vpop.permute.xlu1 %1059 }
 0x283   : > { %v1062_v44 = vpop.permute.xlu0 %1061  ;;  %v1736_v6 = vsel %vm1705_vm5, %v1703_v51, %v1060_v49 }
 0x284   : > { %v2604_v18 = vpop.f32.mrb[10].mxu0  ;;  %v1737_v8 = vsel %vm1705_vm5, %v1704_v0, %v1062_v44 }
 0x285   : > { %2386 = vst.msk [vmem:[%s3778_s14 + $0x58] sm:$0xff] %vm182_vm0, %v2604_v18  ;;  %v2092_v40 = vpop.f32.mrb[11].mxu0  ;;  %v2281_v37 = vmul.f32 %v2604_v18, %v2604_v18  ;;  %v2222_v32 = vsel %vm182_vm0, %v2604_v18, 0.0 }
 0x286   : > { %v1568_v34 = vpop.permute.xlu1 %1567  ;;  %v2220_v26 = vsel %vm182_vm0, %v2092_v40, 0.0  ;;  %v2280_v5 = vmul.f32 %v2092_v40, %v2092_v40  ;;  %2385 = vst.msk [vmem:[%s3778_s14 + $0x50] sm:$0xff] %vm182_vm0, %v2092_v40 }
 0x287   : > { %v1866_v10 = vsel %vm1837_vm9, %v1833_v16, %v1568_v34  ;;  %v2221_v28 = vadd.f32 %v2220_v26, %v2219_v62  ;;  %v1570_v3 = vpop.permute.xlu0 %1569  ;;  %v2323_v61 = vsel %vm182_vm0, %v2281_v37, 0.0 }
 0x288   : > { %2629 = vmatprep.mubr.msk.f32.mxu1 %vm1875_vm10, %v1866_v10  ;;  %v2321_v63 = vsel %vm182_vm0, %v2280_v5, 0.0  ;;  %v1867_v15 = vsel %vm1837_vm9, %v1834_v20, %v1570_v3 }
 0x289   : > { %v2322_v59 = vadd.f32 %v2321_v63, %v2320_v22  ;;  %2630 = vmatmul.mubr.msk.f32.gmra.mrb[12].mxu1 %vm1875_vm10, %v1867_v15  ;;  %v2223_v1 = vadd.f32 %v2222_v32, %v2221_v28 }
 0x28a   : > { %v1188_v7 = vpop.permute.xlu1 %1187 }
 0x28b   : > { %v1316_v57 = vpop.permute.xlu0 %1315  ;;  %v2324_v4 = vadd.f32 %v2323_v61, %v2322_v59  ;;  %v1769_v30 = vsel %vm1738_vm6, %v1736_v6, %v1188_v7 }
 0x28c   : > { %v1802_v53 = vsel %vm1771_vm7, %v1769_v30, %v1316_v57 }
 0x28e   : > { %v1190_v35 = vpop.permute.xlu1 %1189 }
 0x28f   : > { %v1444_v48 = vpop.permute.xlu0 %1443  ;;  %v1770_v38 = vsel %vm1738_vm6, %v1737_v8, %v1190_v35 }
 0x290   : > { %v1835_v39 = vsel %vm1804_vm8, %v1802_v53, %v1444_v48 }
 0x292   : > { %v1318_v14 = vpop.permute.xlu1 %1317 }
 0x293   : > { %v1572_v62 = vpop.permute.xlu0 %1571  ;;  %v1803_v2 = vsel %vm1771_vm7, %v1770_v38, %v1318_v14 }
 0x294   : > { %v1868_v22 = vsel %vm1837_vm9, %v1835_v39, %v1572_v62 }
 0x295   : > { %2632 = vmatprep.mubr.msk.f32.mxu1 %vm1875_vm10, %v1868_v22 }
 0x296   : > { %v1446_v29 = vpop.permute.xlu1 %1445 }
 0x297   : > { %v1836_v60 = vsel %vm1804_vm8, %v1803_v2, %v1446_v29 }
 0x29a   : > { %v1574_v19 = vpop.permute.xlu1 %1573 }
 0x29b   : > { %v1869_v42 = vsel %vm1837_vm9, %v1836_v60, %v1574_v19 }
 0x29c   : > { %2633 = vmatmul.mubr.msk.f32.gmra.mrb[14].mxu1 %vm1875_vm10, %v1869_v42  ;;  %v2607_v12 = vpop.f32.mrb[12].mxu0 }
 0x29d   : > { %2388 = vst.msk [vmem:[%s3778_s14 + $0x68] sm:$0xff] %vm182_vm0, %v2607_v12  ;;  %v2102_v27 = vpop.f32.mrb[13].mxu0  ;;  %v2283_v23 = vmul.f32 %v2607_v12, %v2607_v12  ;;  %v2226_v25 = vsel %vm182_vm0, %v2607_v12, 0.0 }
 0x29e   : > { %v2224_v24 = vsel %vm182_vm0, %v2102_v27, 0.0  ;;  %v2282_v33 = vmul.f32 %v2102_v27, %v2102_v27  ;;  %2387 = vst.msk [vmem:[%s3778_s14 + $0x60] sm:$0xff] %vm182_vm0, %v2102_v27 }
 0x29f   : > { %v2225_v46 = vadd.f32 %v2224_v24, %v2223_v1  ;;  %v2327_v17 = vsel %vm182_vm0, %v2283_v23, 0.0 }
 0x2a0   : > { %v2325_v21 = vsel %vm182_vm0, %v2282_v33, 0.0 }
 0x2a1   : > { %v2326_v36 = vadd.f32 %v2325_v21, %v2324_v4  ;;  %v2227_v13 = vadd.f32 %v2226_v25, %v2225_v46 }
 0x2a3   : > { %v2328_v49 = vadd.f32 %v2327_v17, %v2326_v36 }
 0x2b4   : > { %v2610_v45 = vpop.f32.mrb[14].mxu0 }
 0x2b5   : > { %2390 = vst.msk [vmem:[%s3778_s14 + $0x78] sm:$0xff] %vm182_vm0, %v2610_v45  ;;  %v2112_v44 = vpop.f32.mrb[15].mxu0  ;;  %v2285_v41 = vmul.f32 %v2610_v45, %v2610_v45  ;;  %v2230_v34 = vsel %vm182_vm0, %v2610_v45, 0.0 }
 0x2b6   : > { %v2228_v18 = vsel %vm182_vm0, %v2112_v44, 0.0  ;;  %v2284_v55 = vmul.f32 %v2112_v44, %v2112_v44  ;;  %2389 = vst.msk [vmem:[%s3778_s14 + $0x70] sm:$0xff] %vm182_vm0, %v2112_v44 }
 0x2b7   : > { %v2229_v16 = vadd.f32 %v2228_v18, %v2227_v13  ;;  %v2331_v26 = vsel %vm182_vm0, %v2285_v41, 0.0 }
 0x2b8   : > { %v2329_v40 = vsel %vm182_vm0, %v2284_v55, 0.0 }
 0x2b9   : > { %v2231_v37 = vadd.f32 %v2230_v34, %v2229_v16  ;;  %v2330_v10 = vadd.f32 %v2329_v40, %v2328_v49 }
 0x2bb   : > { %v2332_v5 = vadd.f32 %v2331_v26, %v2330_v10 }
 0x2cc   : > { %v2613_v20 = vpop.f32.mrb[0].mxu1 }
 0x2cd   : > { %2392 = vst.msk [vmem:[%s3778_s14 + $0x88] sm:$0xff] %vm182_vm0, %v2613_v20  ;;  %v2122_v28 = vpop.f32.mrb[1].mxu1  ;;  %v2287_v3 = vmul.f32 %v2613_v20, %v2613_v20  ;;  %v2234_v15 = vsel %vm182_vm0, %v2613_v20, 0.0 }
 0x2ce   : > { %v2232_v9 = vsel %vm182_vm0, %v2122_v28, 0.0  ;;  %v2286_v32 = vmul.f32 %v2122_v28, %v2122_v28  ;;  %2391 = vst.msk [vmem:[%s3778_s14 + $0x80] sm:$0xff] %vm182_vm0, %v2122_v28 }
 0x2cf   : > { %v2233_v63 = vadd.f32 %v2232_v9, %v2231_v37  ;;  %v2335_v61 = vsel %vm182_vm0, %v2287_v3, 0.0 }
 0x2d0   : > { %v2333_v59 = vsel %vm182_vm0, %v2286_v32, 0.0 }
 0x2d1   : > { %v2334_v7 = vadd.f32 %v2333_v59, %v2332_v5  ;;  %v2235_v1 = vadd.f32 %v2234_v15, %v2233_v63 }
 0x2d3   : > { %v2336_v31 = vadd.f32 %v2335_v61, %v2334_v7 }
 0x2e4   : > { %v2616_v52 = vpop.f32.mrb[2].mxu1 }
 0x2e5   : > { %2394 = vst.msk [vmem:[%s3778_s14 + $0x98] sm:$0xff] %vm182_vm0, %v2616_v52  ;;  %v2132_v57 = vpop.f32.mrb[3].mxu1  ;;  %v2289_v4 = vmul.f32 %v2616_v52, %v2616_v52  ;;  %v2238_v35 = vsel %vm182_vm0, %v2616_v52, 0.0 }
 0x2e6   : > { %v2236_v47 = vsel %vm182_vm0, %v2132_v57, 0.0  ;;  %v2288_v11 = vmul.f32 %v2132_v57, %v2132_v57  ;;  %2393 = vst.msk [vmem:[%s3778_s14 + $0x90] sm:$0xff] %vm182_vm0, %v2132_v57 }
 0x2e7   : > { %v2237_v51 = vadd.f32 %v2236_v47, %v2235_v1  ;;  %v2339_v56 = vsel %vm182_vm0, %v2289_v4, 0.0 }
 0x2e8   : > { %v2337_v6 = vsel %vm182_vm0, %v2288_v11, 0.0 }
 0x2e9   : > { %v2338_v30 = vadd.f32 %v2337_v6, %v2336_v31  ;;  %v2239_v48 = vadd.f32 %v2238_v35, %v2237_v51 }
 0x2eb   : > { %v2340_v14 = vadd.f32 %v2339_v56, %v2338_v30 }
 0x2fc   : > { %v2619_v53 = vpop.f32.mrb[4].mxu1 }
 0x2fd   : > { %2396 = vst.msk [vmem:[%s3778_s14 + $0xa8] sm:$0xff] %vm182_vm0, %v2619_v53  ;;  %v2142_v58 = vpop.f32.mrb[5].mxu1  ;;  %v2291_v54 = vmul.f32 %v2619_v53, %v2619_v53  ;;  %v2242_v50 = vsel %vm182_vm0, %v2619_v53, 0.0 }
 0x2fe   : > { %v2240_v39 = vsel %vm182_vm0, %v2142_v58, 0.0  ;;  %v2290_v62 = vmul.f32 %v2142_v58, %v2142_v58  ;;  %2395 = vst.msk [vmem:[%s3778_s14 + $0xa0] sm:$0xff] %vm182_vm0, %v2142_v58 }
 0x2ff   : > { %v2241_v43 = vadd.f32 %v2240_v39, %v2239_v48  ;;  %v2343_v8 = vsel %vm182_vm0, %v2291_v54, 0.0 }
 0x300   : > { %v2341_v22 = vsel %vm182_vm0, %v2290_v62, 0.0 }
 0x301   : > { %v2342_v0 = vadd.f32 %v2341_v22, %v2340_v14  ;;  %v2243_v29 = vadd.f32 %v2242_v50, %v2241_v43 }
 0x303   : > { %v2344_v38 = vadd.f32 %v2343_v8, %v2342_v0 }
 0x314   : > { %v2622_v2 = vpop.f32.mrb[6].mxu1 }
 0x315   : > { %2398 = vst.msk [vmem:[%s3778_s14 + $0xb8] sm:$0xff] %vm182_vm0, %v2622_v2  ;;  %v2152_v60 = vpop.f32.mrb[7].mxu1  ;;  %v2293_v19 = vmul.f32 %v2622_v2, %v2622_v2  ;;  %v2246_v23 = vsel %vm182_vm0, %v2622_v2, 0.0 }
 0x316   : > { %v2244_v42 = vsel %vm182_vm0, %v2152_v60, 0.0  ;;  %v2292_v12 = vmul.f32 %v2152_v60, %v2152_v60  ;;  %2397 = vst.msk [vmem:[%s3778_s14 + $0xb0] sm:$0xff] %vm182_vm0, %v2152_v60 }
 0x317   : > { %v2245_v27 = vadd.f32 %v2244_v42, %v2243_v29  ;;  %v2347_v25 = vsel %vm182_vm0, %v2293_v19, 0.0 }
 0x318   : > { %v2345_v24 = vsel %vm182_vm0, %v2292_v12, 0.0 }
 0x319   : > { %v2346_v33 = vadd.f32 %v2345_v24, %v2344_v38  ;;  %v2247_v46 = vadd.f32 %v2246_v23, %v2245_v27 }
 0x31b   : > { %v2348_v21 = vadd.f32 %v2347_v25, %v2346_v33 }
 0x32c   : > { %v2625_v36 = vpop.f32.mrb[8].mxu1 }
 0x32d   : > { %2400 = vst.msk [vmem:[%s3778_s14 + $0xc8] sm:$0xff] %vm182_vm0, %v2625_v36  ;;  %v2162_v13 = vpop.f32.mrb[9].mxu1  ;;  %v2295_v17 = vmul.f32 %v2625_v36, %v2625_v36  ;;  %v2250_v41 = vsel %vm182_vm0, %v2625_v36, 0.0 }
 0x32e   : > { %v2248_v49 = vsel %vm182_vm0, %v2162_v13, 0.0  ;;  %v2294_v45 = vmul.f32 %v2162_v13, %v2162_v13  ;;  %2399 = vst.msk [vmem:[%s3778_s14 + $0xc0] sm:$0xff] %vm182_vm0, %v2162_v13 }
 0x32f   : > { %v2249_v44 = vadd.f32 %v2248_v49, %v2247_v46  ;;  %v2351_v34 = vsel %vm182_vm0, %v2295_v17, 0.0 }
 0x330   : > { %v2349_v18 = vsel %vm182_vm0, %v2294_v45, 0.0 }
 0x331   : > { %v2350_v55 = vadd.f32 %v2349_v18, %v2348_v21  ;;  %v2251_v16 = vadd.f32 %v2250_v41, %v2249_v44 }
 0x333   : > { %v2352_v40 = vadd.f32 %v2351_v34, %v2350_v55 }
 0x344   : > { %v2628_v37 = vpop.f32.mrb[10].mxu1 }
 0x345   : > { %2402 = vst.msk [vmem:[%s3778_s14 + $0xd8] sm:$0xff] %vm182_vm0, %v2628_v37  ;;  %v2172_v10 = vpop.f32.mrb[11].mxu1  ;;  %v2297_v26 = vmul.f32 %v2628_v37, %v2628_v37  ;;  %v2254_v3 = vsel %vm182_vm0, %v2628_v37, 0.0 }
 0x346   : > { %v2252_v5 = vsel %vm182_vm0, %v2172_v10, 0.0  ;;  %v2296_v20 = vmul.f32 %v2172_v10, %v2172_v10  ;;  %2401 = vst.msk [vmem:[%s3778_s14 + $0xd0] sm:$0xff] %vm182_vm0, %v2172_v10 }
 0x347   : > { %v2253_v28 = vadd.f32 %v2252_v5, %v2251_v16  ;;  %v2355_v15 = vsel %vm182_vm0, %v2297_v26, 0.0 }
 0x348   : > { %v2353_v9 = vsel %vm182_vm0, %v2296_v20, 0.0 }
 0x349   : > { %v2354_v32 = vadd.f32 %v2353_v9, %v2352_v40  ;;  %v2255_v63 = vadd.f32 %v2254_v3, %v2253_v28 }
 0x34b   : > { %v2356_v59 = vadd.f32 %v2355_v15, %v2354_v32 }
 0x35c   : > { %v2631_v7 = vpop.f32.mrb[12].mxu1 }
 0x35d   : > { %2404 = vst.msk [vmem:[%s3778_s14 + $0xe8] sm:$0xff] %vm182_vm0, %v2631_v7  ;;  %v2182_v1 = vpop.f32.mrb[13].mxu1  ;;  %v2299_v61 = vmul.f32 %v2631_v7, %v2631_v7  ;;  %v2258_v4 = vsel %vm182_vm0, %v2631_v7, 0.0 }
 0x35e   : > { %v2256_v31 = vsel %vm182_vm0, %v2182_v1, 0.0  ;;  %v2298_v52 = vmul.f32 %v2182_v1, %v2182_v1  ;;  %2403 = vst.msk [vmem:[%s3778_s14 + $0xe0] sm:$0xff] %vm182_vm0, %v2182_v1 }
 0x35f   : > { %v2257_v57 = vadd.f32 %v2256_v31, %v2255_v63  ;;  %v2359_v35 = vsel %vm182_vm0, %v2299_v61, 0.0 }
 0x360   : > { %v2357_v47 = vsel %vm182_vm0, %v2298_v52, 0.0 }
 0x361   : > { %v2358_v11 = vadd.f32 %v2357_v47, %v2356_v59  ;;  %v2259_v51 = vadd.f32 %v2258_v4, %v2257_v57 }
 0x363   : > { %v2360_v6 = vadd.f32 %v2359_v35, %v2358_v11 }
 0x36f   : > { %v2634_v30 = vpop.f32.mrb[14].mxu1 }
 0x370   : > { %2406 = vst.msk [vmem:[%s3778_s14 + $0xf8] sm:$0xff] %vm182_vm0, %v2634_v30  ;;  %v2192_v48 = vpop.f32.mrb[15].mxu1  ;;  %v2301_v56 = vmul.f32 %v2634_v30, %v2634_v30  ;;  %v2262_v54 = vsel %vm182_vm0, %v2634_v30, 0.0 }
 0x371   : > { %v2260_v14 = vsel %vm182_vm0, %v2192_v48, 0.0  ;;  %v2300_v53 = vmul.f32 %v2192_v48, %v2192_v48  ;;  %2405 = vst.msk [vmem:[%s3778_s14 + $0xf0] sm:$0xff] %vm182_vm0, %v2192_v48 }
 0x372   : > { %v2261_v58 = vadd.f32 %v2260_v14, %v2259_v51  ;;  %v2363_v50 = vsel %vm182_vm0, %v2301_v56, 0.0 }
 0x373   : > { %v2361_v39 = vsel %vm182_vm0, %v2300_v53, 0.0 }
 0x374   : > { %v2263_v62 = vadd.f32 %v2262_v54, %v2261_v58  ;;  %v2362_v43 = vadd.f32 %v2361_v39, %v2360_v6 }
 0x376   : > { %v2264_v22 = vrot.slane %v2263_v62, 4  ;;  %v2364_v0 = vadd.f32 %v2363_v50, %v2362_v43 }
 0x378   : > { %v2265_v29 = vadd.f32 %v2264_v22, %v2263_v62  ;;  %v2365_v8 = vrot.slane %v2364_v0, 4 }
 0x37a   : > { %v2266_v38 = vrot.slane %v2265_v29, 2  ;;  %v2366_v2 = vadd.f32 %v2365_v8, %v2364_v0 }
 0x37c   : > { %v2267_v60 = vadd.f32 %v2266_v38, %v2265_v29  ;;  %v2367_v19 = vrot.slane %v2366_v2, 2 }
 0x37e   : > { %v2268_v42 = vrot.slane %v2267_v60, 1  ;;  %v2368_v12 = vadd.f32 %v2367_v19, %v2366_v2 }
 0x380   : > { %v2369_v27 = vrot.slane %v2368_v12, 1  ;;  %v2269_v23 = vadd.f32 %v2268_v42, %v2267_v60 }
 0x382   : > { %v2370_v24 = vadd.f32 %v2369_v27, %v2368_v12 }
 0x384   : > { %v2372_v33 = vsel %vm2371_vm11, %v2269_v23, %v2370_v24 }
 0x385   : > { %2374 = vst.msk [vmem:[%s181_s18] sm:$0x3] %vm2373_vm12, %v2372_v33 }
 0x386 PF: > { %s14_s12 = sadd.s32 1, %s2672_s12  }
 0x387   : > { %p11_p4 = scmp.ge.s32.totalorder %s14_s12, 4  }
 0x389   :  { %13 = sbr.rel (!%p11_p4) target bundleno = 1 (0x1), region = 73 }

// kernel: basic_block_forward.4
= control target key start
LH: loop header
LB: loop body
LE: loop exit
PB: predicated region body
PF: predicated region fallthrough
CT: control target
= control target key end

     0   :  { %s2881_s18 = smov 0   ;;  %s4286_s0 = inlined_call_operand.vmem [shape: f32[2,16,16,4], index: 0, kind: input, shape index: {}]   ;;  %s4287_s1 = inlined_call_operand.vmem [shape: f32[1,4], index: 1, kind: input, shape index: {}]   ;;  %s4288_s2 = inlined_call_operand.vmem [shape: f32[1,4], index: 2, kind: input, shape index: {}]   ;;  %s4289_s3 = inlined_call_operand.vmem [shape: f32[36,4], index: 3, kind: input, shape index: {}]   ;;  %s4290_s4 = inlined_call_operand.vmem [shape: f32[2,16,16,4], index: 4, kind: output, shape index: {0}]   ;;  %s4291_s5 = inlined_call_operand.vmem [shape: f32[2,2,4], index: 5, kind: output, shape index: {1}]  }
   0x1 LB: > { %s2657_s19 = sadd.s32 4294967295, %s2840_s18   ;;  %p2661_p0 = scmp.ge.s32.totalorder %s2840_s18, 1  ;;  %s2840_s18 = sphi %s2881_s18, %s16_s18  }
   0x2   : > { %p190_p1 = scmp.lt.s32.totalorder %s2840_s18, 3 }
   0x4   : > { %p191_p2 = pnand %p2661_p0, %p190_p1 }
   0x6   : > { %194 = sbr.rel (%p191_p2) target bundleno = 903 (0x387), region = 36 }
   0xd   : > { %vm378_vm0 = vcmask 31744   ;;  %p222_p3 = scmp.lt.s32.totalorder %s2657_s19, 1  ;;  %v2842_v0 = vmov 0.0   ;;  %vm382_vm1 = vcmask 24576   ;;  %v2939_v1 = vld [vmem:[%s4287_s1] ss:$0 sm:$0xff] }
   0xe   : > { %380 = vst.msk [vmem:[#allocation2 + $0x8] sm:$0xff] %vm378_vm0, %v2842_v0  ;;  %379 = vst.msk [vmem:[#allocation2] sm:$0xff] %vm378_vm0, %v2842_v0  ;;  %v2951_v2 = vld [vmem:[%s4288_s2] ss:$0 sm:$0xff]  ;;  %s2843_s28 = smov 4   ;;  %s2844_s29 = smov 8  }
   0xf   : > { %381 = vst.msk [vmem:[#allocation2 + $0x10] sm:$0xff] %vm378_vm0, %v2842_v0  ;;  %385 = vst.msk [vmem:[#allocation2 + $0x220] sm:$0xff] %vm378_vm0, %v2842_v0  ;;  %s4397_s19 = smov (!%p222_p3, %s2657_s19), 1  ;;  %s2845_s30 = smov 12   ;;  %vm2136_vm2 = vcmask 1043456   ;;  %vm1803_vm3 = vcmask 64512  }
  0x10   : > { %386 = vst.msk [vmem:[#allocation2 + $0x228] sm:$0xff] %vm378_vm0, %v2842_v0  ;;  %387 = vst.msk [vmem:[#allocation2 + $0x230] sm:$0xff] %vm378_vm0, %v2842_v0  ;;  %s2704_s20 = sshll.u32 %s4397_s19, 8  ;;  %s2846_s6 = smov 16   ;;  %vm1836_vm4 = vcmask 97280   ;;  %vm1869_vm5 = vcmask 130048  }
  0x11   : > { %383 = vst.msk [vmem:[#allocation2 + $0x18] sm:$0x1] %vm382_vm1, %v2842_v0  ;;  %388 = vst.msk [vmem:[#allocation2 + $0x238] sm:$0x1] %vm382_vm1, %v2842_v0  ;;  %s2946_s25 = scalar_lea.vmem %s4286_s0, %s2704_s20  ;;  %s2847_s11 = smov 20   ;;  %vm1902_vm6 = vcmask 162816  }
  0x12   : > { %389 = vst.msk [vmem:[#allocation2 + $0x7] sm:$0x1] %vm382_vm1, %v2842_v0  ;;  %390 = vst.msk [vmem:[#allocation2 + $0x27] sm:$0x1] %vm382_vm1, %v2842_v0  ;;  %v240_v3 = vld [vmem:[%s2946_s25 + $0x10] sm:$0xff]  ;;  %v238_v4 = vld [vmem:[%s2946_s25] sm:$0xff] }
  0x13   : > { %391 = vst.msk [vmem:[#allocation2 + $0x47] sm:$0x1] %vm382_vm1, %v2842_v0  ;;  %392 = vst.msk [vmem:[#allocation2 + $0x67] sm:$0x1] %vm382_vm1, %v2842_v0  ;;  %v242_v5 = vld [vmem:[%s2946_s25 + $0x20] sm:$0xff]  ;;  %v278_v6 = vmul.f32 %v2939_v1, %v240_v3  ;;  %v276_v7 = vmul.f32 %v2939_v1, %v238_v4  ;;  %v239_v9 = vld [vmem:[%s2946_s25 + $0x8] sm:$0xff] }
  0x14   : > { %393 = vst.msk [vmem:[#allocation2 + $0x87] sm:$0x1] %vm382_vm1, %v2842_v0  ;;  %394 = vst.msk [vmem:[#allocation2 + $0xa7] sm:$0x1] %vm382_vm1, %v2842_v0  ;;  %v280_v8 = vmul.f32 %v2939_v1, %v242_v5  ;;  %v244_v10 = vld [vmem:[%s2946_s25 + $0x30] sm:$0xff]  ;;  %v241_v11 = vld [vmem:[%s2946_s25 + $0x18] sm:$0xff]  ;;  %v277_v13 = vmul.f32 %v2939_v1, %v239_v9 }
  0x15   : > { %395 = vst.msk [vmem:[#allocation2 + $0xc7] sm:$0x1] %vm382_vm1, %v2842_v0  ;;  %396 = vst.msk [vmem:[#allocation2 + $0xe7] sm:$0x1] %vm382_vm1, %v2842_v0  ;;  %v490_v12 = vld [vmem:[#allocation2 + $0x8] sm:$0xff]  ;;  %v282_v14 = vmul.f32 %v2939_v1, %v244_v10  ;;  %v279_v15 = vmul.f32 %v2939_v1, %v241_v11  ;;  %v246_v16 = vld [vmem:[%s2946_s25 + $0x40] sm:$0xff]  ;;  %v316_v18 = vadd.f32 %v2951_v2, %v278_v6 }
  0x16   : > { %397 = vst.msk [vmem:[#allocation2 + $0x107] sm:$0x1] %vm382_vm1, %v2842_v0  ;;  %398 = vst.msk [vmem:[#allocation2 + $0x127] sm:$0x1] %vm382_vm1, %v2842_v0  ;;  %779 = vrot.lane.b32.xlu0 %v490_v12, %s2843_s28  ;;  %v491_v17 = vld [vmem:[#allocation2 + $0x10] sm:$0xff]  ;;  %v314_v19 = vadd.f32 %v2951_v2, %v276_v7  ;;  %v318_v20 = vadd.f32 %v2951_v2, %v280_v8  ;;  %v284_v21 = vmul.f32 %v2939_v1, %v246_v16  ;;  %v243_v22 = vld [vmem:[%s2946_s25 + $0x28] sm:$0xff] }
  0x17   : > { %399 = vst.msk [vmem:[#allocation2 + $0x147] sm:$0x1] %vm382_vm1, %v2842_v0  ;;  %400 = vst.msk [vmem:[#allocation2 + $0x167] sm:$0x1] %vm382_vm1, %v2842_v0  ;;  %v315_v23 = vadd.f32 %v2951_v2, %v277_v13  ;;  %v320_v24 = vadd.f32 %v2951_v2, %v282_v14  ;;  %v317_v25 = vadd.f32 %v2951_v2, %v279_v15  ;;  %v248_v27 = vld [vmem:[%s2946_s25 + $0x50] sm:$0xff]  ;;  %v245_v28 = vld [vmem:[%s2946_s25 + $0x38] sm:$0xff] }
  0x18   : > { %401 = vst.msk [vmem:[#allocation2 + $0x187] sm:$0x1] %vm382_vm1, %v2842_v0  ;;  %402 = vst.msk [vmem:[#allocation2 + $0x1a7] sm:$0x1] %vm382_vm1, %v2842_v0  ;;  %v281_v26 = vmul.f32 %v2939_v1, %v243_v22  ;;  %v250_v29 = vld [vmem:[%s2946_s25 + $0x60] sm:$0xff]  ;;  %v348_v30 = vmax.f32 %v316_v18, 0.0  ;;  %v322_v33 = vadd.f32 %v2951_v2, %v284_v21  ;;  %v286_v43 = vmul.f32 %v2939_v1, %v248_v27 }
  0x19   : > { %403 = vst.msk [vmem:[#allocation2 + $0x1c7] sm:$0x1] %vm382_vm1, %v2842_v0  ;;  %404 = vst.msk [vmem:[#allocation2 + $0x1e7] sm:$0x1] %vm382_vm1, %v2842_v0  ;;  %v346_v31 = vmax.f32 %v314_v19, 0.0  ;;  %v350_v32 = vmax.f32 %v318_v20, 0.0  ;;  %v283_v44 = vmul.f32 %v2939_v1, %v245_v28  ;;  %v288_v45 = vmul.f32 %v2939_v1, %v250_v29 }
  0x1a   : > { %405 = vst.msk [vmem:[#allocation2 + $0x207] sm:$0x1] %vm382_vm1, %v2842_v0  ;;  %406 = vst.msk [vmem:[#allocation2 + $0x227] sm:$0x1] %vm382_vm1, %v2842_v0  ;;  %v247_v34 = vld [vmem:[%s2946_s25 + $0x48] sm:$0xff]  ;;  %v252_v35 = vld [vmem:[%s2946_s25 + $0x70] sm:$0xff]  ;;  %v319_v40 = vadd.f32 %v2951_v2, %v281_v26  ;;  %781 = vrot.lane.b32.xlu0 %v491_v17, %s2843_s28  ;;  %v324_v51 = vadd.f32 %v2951_v2, %v286_v43 }
  0x1b   : > { %408 = vst.msk [vmem:[#allocation2 + $0x38] sm:$0x1] %vm382_vm1, %v2842_v0  ;;  %409 = vst.msk [vmem:[#allocation2 + $0x58] sm:$0x1] %vm382_vm1, %v2842_v0  ;;  %v249_v36 = vld [vmem:[%s2946_s25 + $0x58] sm:$0xff]  ;;  %v347_v37 = vmax.f32 %v315_v23, 0.0  ;;  %v285_v48 = vmul.f32 %v2939_v1, %v247_v34  ;;  %v290_v49 = vmul.f32 %v2939_v1, %v252_v35  ;;  %v321_v52 = vadd.f32 %v2951_v2, %v283_v44 }
  0x1c   : > { %410 = vst.msk [vmem:[#allocation2 + $0x78] sm:$0x1] %vm382_vm1, %v2842_v0  ;;  %411 = vst.msk [vmem:[#allocation2 + $0x98] sm:$0x1] %vm382_vm1, %v2842_v0  ;;  %v352_v38 = vmax.f32 %v320_v24, 0.0  ;;  %v349_v39 = vmax.f32 %v317_v25, 0.0  ;;  %v287_v50 = vmul.f32 %v2939_v1, %v249_v36  ;;  %v326_v53 = vadd.f32 %v2951_v2, %v288_v45 }
  0x1d   : > { %412 = vst.msk [vmem:[#allocation2 + $0xb8] sm:$0x1] %vm382_vm1, %v2842_v0  ;;  %413 = vst.msk [vmem:[#allocation2 + $0xd8] sm:$0x1] %vm382_vm1, %v2842_v0  ;;  %v254_v41 = vld [vmem:[%s2946_s25 + $0x80] sm:$0xff]  ;;  %v354_v42 = vmax.f32 %v322_v33, 0.0  ;;  %v323_v55 = vadd.f32 %v2951_v2, %v285_v48  ;;  %v328_v56 = vadd.f32 %v2951_v2, %v290_v49 }
  0x1e   : > { %414 = vst.msk [vmem:[#allocation2 + $0xf8] sm:$0x1] %vm382_vm1, %v2842_v0  ;;  %415 = vst.msk [vmem:[#allocation2 + $0x118] sm:$0x1] %vm382_vm1, %v2842_v0  ;;  %v251_v46 = vld [vmem:[%s2946_s25 + $0x68] sm:$0xff]  ;;  %v351_v47 = vmax.f32 %v319_v40, 0.0  ;;  %v292_v54 = vmul.f32 %v2939_v1, %v254_v41  ;;  %v325_v57 = vadd.f32 %v2951_v2, %v287_v50 }
  0x1f   : > { %416 = vst.msk [vmem:[#allocation2 + $0x138] sm:$0x1] %vm382_vm1, %v2842_v0  ;;  %417 = vst.msk [vmem:[#allocation2 + $0x158] sm:$0x1] %vm382_vm1, %v2842_v0  ;;  %v289_v58 = vmul.f32 %v2939_v1, %v251_v46  ;;  %v256_v59 = vld [vmem:[%s2946_s25 + $0x90] sm:$0xff]  ;;  %v253_v60 = vld [vmem:[%s2946_s25 + $0x78] sm:$0xff] }
  0x20   : > { %418 = vst.msk [vmem:[#allocation2 + $0x178] sm:$0x1] %vm382_vm1, %v2842_v0  ;;  %419 = vst.msk [vmem:[#allocation2 + $0x198] sm:$0x1] %vm382_vm1, %v2842_v0  ;;  %v258_v61 = vld [vmem:[%s2946_s25 + $0xa0] sm:$0xff]  ;;  %v356_v62 = vmax.f32 %v324_v51, 0.0  ;;  %v330_v3 = vadd.f32 %v2951_v2, %v292_v54  ;;  %v294_v12 = vmul.f32 %v2939_v1, %v256_v59  ;;  %v291_v13 = vmul.f32 %v2939_v1, %v253_v60 }
  0x21   : > { %420 = vst.msk [vmem:[#allocation2 + $0x1b8] sm:$0x1] %vm382_vm1, %v2842_v0  ;;  %421 = vst.msk [vmem:[#allocation2 + $0x1d8] sm:$0x1] %vm382_vm1, %v2842_v0  ;;  %v353_v63 = vmax.f32 %v321_v52, 0.0  ;;  %v255_v4 = vld [vmem:[%s2946_s25 + $0x88] sm:$0xff]  ;;  %v327_v10 = vadd.f32 %v2951_v2, %v289_v58  ;;  %v296_v14 = vmul.f32 %v2939_v1, %v258_v61 }
  0x22   : > { %422 = vst.msk [vmem:[#allocation2 + $0x1f8] sm:$0x1] %vm382_vm1, %v2842_v0  ;;  %423 = vst.msk [vmem:[#allocation2 + $0x218] sm:$0x1] %vm382_vm1, %v2842_v0  ;;  %v260_v5 = vld [vmem:[%s2946_s25 + $0xb0] sm:$0xff]  ;;  %v257_v6 = vld [vmem:[%s2946_s25 + $0x98] sm:$0xff]  ;;  %v293_v19 = vmul.f32 %v2939_v1, %v255_v4  ;;  %v332_v23 = vadd.f32 %v2951_v2, %v294_v12  ;;  %v329_v24 = vadd.f32 %v2951_v2, %v291_v13 }
  0x23   : > { %407 = vst.msk [vmem:[#allocation2 + $0x18] sm:$0x1] %vm382_vm1, %v2842_v0  ;;  %424 = vst.msk [vmem:[#allocation2 + $0x238] sm:$0x1] %vm382_vm1, %v2842_v0  ;;  %v358_v0 = vmax.f32 %v326_v53, 0.0  ;;  %v355_v7 = vmax.f32 %v323_v55, 0.0  ;;  %v298_v20 = vmul.f32 %v2939_v1, %v260_v5  ;;  %v295_v21 = vmul.f32 %v2939_v1, %v257_v6 }
  0x24   : > { %428 = vst.msk [vmem:[#allocation2 + $0x48] sm:$0xff] %vm378_vm0, %v348_v30  ;;  %426 = vst.msk [vmem:[#allocation2 + $0x28] sm:$0xff] %vm378_vm0, %v346_v31  ;;  %v360_v8 = vmax.f32 %v328_v56, 0.0  ;;  %v357_v9 = vmax.f32 %v325_v57, 0.0  ;;  %v362_v11 = vmax.f32 %v330_v3, 0.0  ;;  %v262_v15 = vld [vmem:[%s2946_s25 + $0xc0] sm:$0xff]  ;;  %v334_v25 = vadd.f32 %v2951_v2, %v296_v14 }
  0x25   : > { %430 = vst.msk [vmem:[#allocation2 + $0x68] sm:$0xff] %vm378_vm0, %v350_v32  ;;  %427 = vst.msk [vmem:[#allocation2 + $0x30] sm:$0xff] %vm378_vm0, %v347_v37  ;;  %v359_v18 = vmax.f32 %v327_v10, 0.0  ;;  %v259_v22 = vld [vmem:[%s2946_s25 + $0xa8] sm:$0xff]  ;;  %v264_v26 = vld [vmem:[%s2946_s25 + $0xd0] sm:$0xff]  ;;  %v331_v29 = vadd.f32 %v2951_v2, %v293_v19  ;;  %v336_v30 = vadd.f32 %v2951_v2, %v298_v20  ;;  %v333_v31 = vadd.f32 %v2951_v2, %v295_v21  ;;  %s2848_s16 = smov 24  }
  0x26   : > { %432 = vst.msk [vmem:[#allocation2 + $0x88] sm:$0xff] %vm378_vm0, %v352_v38  ;;  %429 = vst.msk [vmem:[#allocation2 + $0x50] sm:$0xff] %vm378_vm0, %v349_v39  ;;  %v300_v32 = vmul.f32 %v2939_v1, %v262_v15  ;;  %v261_v33 = vld [vmem:[%s2946_s25 + $0xb8] sm:$0xff]  ;;  %v364_v34 = vmax.f32 %v332_v23, 0.0  ;;  %v361_v35 = vmax.f32 %v329_v24, 0.0  ;;  %v366_v36 = vmax.f32 %v334_v25, 0.0 }
  0x27   : > { %434 = vst.msk [vmem:[#allocation2 + $0xa8] sm:$0xff] %vm378_vm0, %v354_v42  ;;  %431 = vst.msk [vmem:[#allocation2 + $0x70] sm:$0xff] %vm378_vm0, %v351_v47  ;;  %v297_v37 = vmul.f32 %v2939_v1, %v259_v22  ;;  %v266_v38 = vld [vmem:[%s2946_s25 + $0xe0] sm:$0xff]  ;;  %v263_v39 = vld [vmem:[%s2946_s25 + $0xc8] sm:$0xff]  ;;  %v363_v41 = vmax.f32 %v331_v29, 0.0  ;;  %v368_v42 = vmax.f32 %v336_v30, 0.0  ;;  %v302_v47 = vmul.f32 %v2939_v1, %v264_v26 }
  0x28   : > { %436 = vst.msk [vmem:[#allocation2 + $0xc8] sm:$0xff] %vm378_vm0, %v356_v62  ;;  %433 = vst.msk [vmem:[#allocation2 + $0x90] sm:$0xff] %vm378_vm0, %v353_v63  ;;  %v265_v40 = vld [vmem:[%s2946_s25 + $0xd8] sm:$0xff]  ;;  %v365_v43 = vmax.f32 %v333_v31, 0.0  ;;  %v338_v44 = vadd.f32 %v2951_v2, %v300_v32  ;;  %v267_v45 = vld [vmem:[%s2946_s25 + $0xe8] sm:$0xff]  ;;  %v299_v48 = vmul.f32 %v2939_v1, %v261_v33  ;;  %v304_v52 = vmul.f32 %v2939_v1, %v266_v38  ;;  %s2849_s22 = smov 28  }
  0x29   : > { %438 = vst.msk [vmem:[#allocation2 + $0xe8] sm:$0xff] %vm378_vm0, %v358_v0  ;;  %435 = vst.msk [vmem:[#allocation2 + $0xb0] sm:$0xff] %vm378_vm0, %v355_v7  ;;  %v335_v46 = vadd.f32 %v2951_v2, %v297_v37  ;;  %v301_v53 = vmul.f32 %v2939_v1, %v263_v39  ;;  %v303_v54 = vmul.f32 %v2939_v1, %v265_v40  ;;  %v522_v31 = vld [vmem:[#allocation2 + $0x9] sm:$0xff]  ;;  %s2850_s23 = smov 32   ;;  %vm1935_vm7 = vcmask 195584  }
  0x2a   : > { %440 = vst.msk [vmem:[#allocation2 + $0x108] sm:$0xff] %vm378_vm0, %v360_v8  ;;  %437 = vst.msk [vmem:[#allocation2 + $0xd0] sm:$0xff] %vm378_vm0, %v357_v9  ;;  %v370_v51 = vmax.f32 %v338_v44, 0.0  ;;  %v340_v56 = vadd.f32 %v2951_v2, %v302_v47  ;;  %v337_v57 = vadd.f32 %v2951_v2, %v299_v48  ;;  %v305_v58 = vmul.f32 %v2939_v1, %v267_v45 }
  0x2b   : > { %v3024_v16 = vld [vmem:[#allocation2 + $0x48] sm:$0xff]  ;;  %442 = vst.msk [vmem:[#allocation2 + $0x128] sm:$0xff] %vm378_vm0, %v362_v11  ;;  %439 = vst.msk [vmem:[#allocation2 + $0xf0] sm:$0xff] %vm378_vm0, %v359_v18  ;;  %v367_v55 = vmax.f32 %v335_v46, 0.0  ;;  %v342_v59 = vadd.f32 %v2951_v2, %v304_v52  ;;  %v339_v60 = vadd.f32 %v2951_v2, %v301_v53  ;;  %v341_v61 = vadd.f32 %v2951_v2, %v303_v54 }
  0x2c   : > { %v3026_v17 = vld [vmem:[#allocation2 + $0x28] sm:$0xff]  ;;  %787 = vrot.lane.b32.xlu0 %v3024_v16, %s2843_s28  ;;  %v3046_v28 = vld [vmem:[#allocation2 + $0x30] sm:$0xff]  ;;  %444 = vst.msk [vmem:[#allocation2 + $0x148] sm:$0xff] %vm378_vm0, %v364_v34  ;;  %441 = vst.msk [vmem:[#allocation2 + $0x110] sm:$0xff] %vm378_vm0, %v361_v35  ;;  %v372_v62 = vmax.f32 %v340_v56, 0.0  ;;  %v369_v63 = vmax.f32 %v337_v57, 0.0  ;;  %v343_v1 = vadd.f32 %v2951_v2, %v305_v58 }
  0x2d   : > { %783 = vrot.lane.b32.xlu1 %v3026_v17, %s2843_s28  ;;  %v3044_v27 = vld [vmem:[#allocation2 + $0x68] sm:$0xff]  ;;  %446 = vst.msk [vmem:[#allocation2 + $0x168] sm:$0xff] %vm378_vm0, %v366_v36  ;;  %v3072_v50 = vld [vmem:[#allocation2 + $0x50] sm:$0xff]  ;;  %443 = vst.msk [vmem:[#allocation2 + $0x130] sm:$0xff] %vm378_vm0, %v363_v41  ;;  %v374_v4 = vmax.f32 %v342_v59, 0.0  ;;  %v371_v5 = vmax.f32 %v339_v60, 0.0 }
  0x2e   : > { %v3070_v49 = vld [vmem:[#allocation2 + $0x88] sm:$0xff]  ;;  %448 = vst.msk [vmem:[#allocation2 + $0x188] sm:$0xff] %vm378_vm0, %v368_v42  ;;  %445 = vst.msk [vmem:[#allocation2 + $0x150] sm:$0xff] %vm378_vm0, %v365_v43  ;;  %v3093_v3 = vld [vmem:[#allocation2 + $0x70] sm:$0xff]  ;;  %v373_v6 = vmax.f32 %v341_v61, 0.0  ;;  %v375_v7 = vmax.f32 %v343_v1, 0.0 }
  0x2f   : > { %450 = vst.msk [vmem:[#allocation2 + $0x1a8] sm:$0xff] %vm378_vm0, %v370_v51  ;;  %447 = vst.msk [vmem:[#allocation2 + $0x170] sm:$0xff] %vm378_vm0, %v367_v55  ;;  %v500_v0 = vld [vmem:[#allocation2 + $0xa8] sm:$0xff]  ;;  %v3104_v8 = vld [vmem:[#allocation2 + $0x90] sm:$0xff]  ;;  %vm1968_vm8 = vcmask 228352   ;;  %vm2001_vm9 = vcmask 261120  }
  0x30   : > { %791 = vrot.lane.b32.xlu0 %v3044_v27, %s2843_s28  ;;  %452 = vst.msk [vmem:[#allocation2 + $0x1c8] sm:$0xff] %vm378_vm0, %v372_v62  ;;  %449 = vst.msk [vmem:[#allocation2 + $0x190] sm:$0xff] %vm378_vm0, %v369_v63  ;;  %v502_v2 = vld [vmem:[#allocation2 + $0xc8] sm:$0xff]  ;;  %v3109_v10 = vld [vmem:[#allocation2 + $0xb0] sm:$0xff]  ;;  %vm2039_vm10 = vcmask 293888   ;;  %vm2535_vm11 = vcmask 1040384  }
  0x31   : > { %785 = vrot.lane.b32.xlu1 %v3046_v28, %s2843_s28  ;;  %454 = vst.msk [vmem:[#allocation2 + $0x1e8] sm:$0xff] %vm378_vm0, %v374_v4  ;;  %451 = vst.msk [vmem:[#allocation2 + $0x1b0] sm:$0xff] %vm378_vm0, %v371_v5  ;;  %v504_v9 = vld [vmem:[#allocation2 + $0xe8] sm:$0xff]  ;;  %v503_v12 = vld [vmem:[#allocation2 + $0xd0] sm:$0xff]  ;;  %vm2537_vm12 = vcmask 25600  }
  0x32   : > { %453 = vst.msk [vmem:[#allocation2 + $0x1d0] sm:$0xff] %vm378_vm0, %v373_v6  ;;  %455 = vst.msk [vmem:[#allocation2 + $0x1f0] sm:$0xff] %vm378_vm0, %v375_v7  ;;  %v506_v11 = vld [vmem:[#allocation2 + $0x108] sm:$0xff]  ;;  %v505_v14 = vld [vmem:[#allocation2 + $0xf0] sm:$0xff] }
  0x33   : > { %v508_v13 = vld [vmem:[#allocation2 + $0x128] sm:$0xff]  ;;  %v507_v18 = vld [vmem:[#allocation2 + $0x110] sm:$0xff] }
  0x34   : > { %795 = vrot.lane.b32.xlu0 %v3070_v49, %s2843_s28  ;;  %v510_v15 = vld [vmem:[#allocation2 + $0x148] sm:$0xff]  ;;  %v509_v20 = vld [vmem:[#allocation2 + $0x130] sm:$0xff] }
  0x35   : > { %789 = vrot.lane.b32.xlu1 %v3072_v50, %s2843_s28  ;;  %v512_v19 = vld [vmem:[#allocation2 + $0x168] sm:$0xff]  ;;  %v511_v22 = vld [vmem:[#allocation2 + $0x150] sm:$0xff] }
  0x36   : > { %v514_v21 = vld [vmem:[#allocation2 + $0x188] sm:$0xff]  ;;  %v513_v24 = vld [vmem:[#allocation2 + $0x170] sm:$0xff] }
  0x37   : > { %v516_v23 = vld [vmem:[#allocation2 + $0x1a8] sm:$0xff]  ;;  %v515_v26 = vld [vmem:[#allocation2 + $0x190] sm:$0xff] }
  0x38   : > { %799 = vrot.lane.b32.xlu0 %v500_v0, %s2843_s28  ;;  %v518_v25 = vld [vmem:[#allocation2 + $0x1c8] sm:$0xff]  ;;  %v517_v30 = vld [vmem:[#allocation2 + $0x1b0] sm:$0xff] }
  0x39   : > { %793 = vrot.lane.b32.xlu1 %v3093_v3, %s2843_s28  ;;  %v520_v29 = vld [vmem:[#allocation2 + $0x1e8] sm:$0xff]  ;;  %v519_v32 = vld [vmem:[#allocation2 + $0x1d0] sm:$0xff] }
  0x3a   : > { %v3132_v33 = vld [vmem:[#allocation2 + $0x29] sm:$0xff]  ;;  %v523_v36 = vld [vmem:[#allocation2 + $0x11] sm:$0xff] }
  0x3b   : > { %v521_v34 = vld [vmem:[#allocation2 + $0x1f0] sm:$0xff] }
  0x3c   : > { %803 = vrot.lane.b32.xlu0 %v502_v2, %s2843_s28  ;;  %v3137_v35 = vld [vmem:[#allocation2 + $0x49] sm:$0xff]  ;;  %v3144_v38 = vld [vmem:[#allocation2 + $0x31] sm:$0xff] }
  0x3d   : > { %797 = vrot.lane.b32.xlu1 %v3104_v8, %s2843_s28  ;;  %v3142_v37 = vld [vmem:[#allocation2 + $0x69] sm:$0xff]  ;;  %v3152_v40 = vld [vmem:[#allocation2 + $0x51] sm:$0xff] }
  0x3e   : > { %v3150_v39 = vld [vmem:[#allocation2 + $0x89] sm:$0xff]  ;;  %v3160_v42 = vld [vmem:[#allocation2 + $0x71] sm:$0xff] }
  0x3f   : > { %v3158_v41 = vld [vmem:[#allocation2 + $0xa9] sm:$0xff]  ;;  %v3168_v44 = vld [vmem:[#allocation2 + $0x91] sm:$0xff] }
  0x40   : > { %807 = vrot.lane.b32.xlu0 %v504_v9, %s2843_s28  ;;  %v3166_v43 = vld [vmem:[#allocation2 + $0xc9] sm:$0xff]  ;;  %v3176_v46 = vld [vmem:[#allocation2 + $0xb1] sm:$0xff] }
  0x41   : > { %801 = vrot.lane.b32.xlu1 %v3109_v10, %s2843_s28  ;;  %v3174_v45 = vld [vmem:[#allocation2 + $0xe9] sm:$0xff]  ;;  %v3184_v48 = vld [vmem:[#allocation2 + $0xd1] sm:$0xff] }
  0x42   : > { %v3182_v47 = vld [vmem:[#allocation2 + $0x109] sm:$0xff]  ;;  %v3192_v52 = vld [vmem:[#allocation2 + $0xf1] sm:$0xff] }
  0x43   : > { %v3190_v51 = vld [vmem:[#allocation2 + $0x129] sm:$0xff]  ;;  %v3198_v54 = vld [vmem:[#allocation2 + $0x111] sm:$0xff] }
  0x44   : > { %811 = vrot.lane.b32.xlu0 %v506_v11, %s2843_s28  ;;  %v542_v53 = vld [vmem:[#allocation2 + $0x149] sm:$0xff]  ;;  %v3203_v56 = vld [vmem:[#allocation2 + $0x131] sm:$0xff] }
  0x45   : > { %805 = vrot.lane.b32.xlu1 %v503_v12, %s2843_s28  ;;  %v544_v55 = vld [vmem:[#allocation2 + $0x169] sm:$0xff]  ;;  %v543_v58 = vld [vmem:[#allocation2 + $0x151] sm:$0xff] }
  0x46   : > { %v546_v57 = vld [vmem:[#allocation2 + $0x189] sm:$0xff]  ;;  %v545_v61 = vld [vmem:[#allocation2 + $0x171] sm:$0xff] }
  0x47   : > { %v548_v60 = vld [vmem:[#allocation2 + $0x1a9] sm:$0xff]  ;;  %v547_v1 = vld [vmem:[#allocation2 + $0x191] sm:$0xff] }
  0x48   : > { %815 = vrot.lane.b32.xlu0 %v508_v13, %s2843_s28  ;;  %v550_v63 = vld [vmem:[#allocation2 + $0x1c9] sm:$0xff]  ;;  %v549_v4 = vld [vmem:[#allocation2 + $0x1b1] sm:$0xff] }
  0x49   : > { %809 = vrot.lane.b32.xlu1 %v505_v14, %s2843_s28  ;;  %v552_v0 = vld [vmem:[#allocation2 + $0x1e9] sm:$0xff]  ;;  %v551_v7 = vld [vmem:[#allocation2 + $0x1d1] sm:$0xff] }
  0x4a   : > { %v3228_v11 = vld [vmem:[#allocation2 + $0x27] sm:$0xff]  ;;  %v553_v12 = vld [vmem:[#allocation2 + $0x1f1] sm:$0xff] }
  0x4c   : > { %819 = vrot.lane.b32.xlu0 %v510_v15, %s2843_s28  ;;  %v3237_v15 = vld [vmem:[#allocation2 + $0x47] sm:$0xff] }
  0x4d   : > { %813 = vrot.lane.b32.xlu1 %v507_v18, %s2843_s28 }
  0x50   : > { %823 = vrot.lane.b32.xlu0 %v512_v19, %s2843_s28 }
  0x51   : > { %817 = vrot.lane.b32.xlu1 %v509_v20, %s2843_s28  ;;  %v3246_v20 = vld [vmem:[#allocation2 + $0x67] sm:$0xff] }
  0x54   : > { %827 = vrot.lane.b32.xlu0 %v514_v21, %s2843_s28  ;;  %v3248_v21 = vld [vmem:[#allocation2 + $0x2f] sm:$0xff] }
  0x55   : > { %821 = vrot.lane.b32.xlu1 %v511_v22, %s2843_s28 }
  0x58   : > { %831 = vrot.lane.b32.xlu0 %v516_v23, %s2843_s28 }
  0x59   : > { %825 = vrot.lane.b32.xlu1 %v513_v24, %s2843_s28  ;;  %v3258_v24 = vld [vmem:[#allocation2 + $0x87] sm:$0xff] }
  0x5c   : > { %835 = vrot.lane.b32.xlu0 %v518_v25, %s2843_s28  ;;  %v3260_v25 = vld [vmem:[#allocation2 + $0x4f] sm:$0xff] }
  0x5d   : > { %829 = vrot.lane.b32.xlu1 %v515_v26, %s2843_s28 }
  0x60   : > { %839 = vrot.lane.b32.xlu0 %v520_v29, %s2843_s28 }
  0x61   : > { %833 = vrot.lane.b32.xlu1 %v517_v30, %s2843_s28  ;;  %v3270_v30 = vld [vmem:[#allocation2 + $0xa7] sm:$0xff] }
  0x64   : > { %907 = vrot.lane.b32.xlu0 %v522_v31, %s2844_s29  ;;  %v3272_v31 = vld [vmem:[#allocation2 + $0x6f] sm:$0xff] }
  0x65   : > { %837 = vrot.lane.b32.xlu1 %v519_v32, %s2843_s28 }
  0x68   : > { %911 = vrot.lane.b32.xlu0 %v3132_v33, %s2844_s29 }
  0x69   : > { %841 = vrot.lane.b32.xlu1 %v521_v34, %s2843_s28 }
  0x6c   : > { %915 = vrot.lane.b32.xlu0 %v3137_v35, %s2844_s29 }
  0x6d   : > { %909 = vrot.lane.b32.xlu1 %v523_v36, %s2844_s29  ;;  %v3282_v36 = vld [vmem:[#allocation2 + $0xc7] sm:$0xff] }
  0x6e   : > { %4300 = vst [vmem:[#allocation7_spill] sm:$0xff] %v3282_v36 }
  0x70   : > { %919 = vrot.lane.b32.xlu0 %v3142_v37, %s2844_s29 }
  0x71   : > { %913 = vrot.lane.b32.xlu1 %v3144_v38, %s2844_s29 }
  0x74   : > { %923 = vrot.lane.b32.xlu0 %v3150_v39, %s2844_s29 }
  0x75   : > { %917 = vrot.lane.b32.xlu1 %v3152_v40, %s2844_s29 }
  0x78   : > { %927 = vrot.lane.b32.xlu0 %v3158_v41, %s2844_s29 }
  0x79   : > { %921 = vrot.lane.b32.xlu1 %v3160_v42, %s2844_s29 }
  0x7c   : > { %931 = vrot.lane.b32.xlu0 %v3166_v43, %s2844_s29 }
  0x7d   : > { %925 = vrot.lane.b32.xlu1 %v3168_v44, %s2844_s29 }
  0x80   : > { %935 = vrot.lane.b32.xlu0 %v3174_v45, %s2844_s29 }
  0x81   : > { %929 = vrot.lane.b32.xlu1 %v3176_v46, %s2844_s29 }
  0x84   : > { %939 = vrot.lane.b32.xlu0 %v3182_v47, %s2844_s29 }
  0x85   : > { %933 = vrot.lane.b32.xlu1 %v3184_v48, %s2844_s29 }
  0x88   : > { %943 = vrot.lane.b32.xlu0 %v3190_v51, %s2844_s29  ;;  %v3208_v59 = vpop.permute.xlu0 %779 }
  0x89   : > { %937 = vrot.lane.b32.xlu1 %v3192_v52, %s2844_s29 }
  0x8c   : > { %947 = vrot.lane.b32.xlu0 %v542_v53, %s2844_s29  ;;  %v3214_v62 = vpop.permute.xlu0 %781  ;;  %v3284_v53 = vld [vmem:[#allocation2 + $0x8f] sm:$0xff] }
  0x8d   : > { %941 = vrot.lane.b32.xlu1 %v3198_v54, %s2844_s29 }
  0x90   : > { %951 = vrot.lane.b32.xlu0 %v544_v55, %s2844_s29 }
  0x91   : > { %945 = vrot.lane.b32.xlu1 %v3203_v56, %s2844_s29 }
  0x94   : > { %955 = vrot.lane.b32.xlu0 %v546_v57, %s2844_s29 }
  0x95   : > { %949 = vrot.lane.b32.xlu1 %v543_v58, %s2844_s29  ;;  %v3294_v58 = vld [vmem:[#allocation2 + $0xe7] sm:$0xff] }
  0x96   : > { %4303 = vst [vmem:[#allocation10_spill] sm:$0xff] %v3294_v58 }
  0x98   : > { %959 = vrot.lane.b32.xlu0 %v548_v60, %s2844_s29  ;;  %v3296_v60 = vld [vmem:[#allocation2 + $0xaf] sm:$0xff] }
  0x99   : > { %953 = vrot.lane.b32.xlu1 %v545_v61, %s2844_s29 }
  0x9c   : > { %963 = vrot.lane.b32.xlu0 %v550_v63, %s2844_s29 }
  0x9d   : > { %957 = vrot.lane.b32.xlu1 %v547_v1, %s2844_s29  ;;  %v3306_v1 = vld [vmem:[#allocation2 + $0xcf] sm:$0xff] }
  0x9e   : > { %v3218_v5 = vpop.permute.xlu0 %787  ;;  %4306 = vst [vmem:[#allocation13_spill] sm:$0xff] %v3306_v1 }
  0x9f   : > { %v3220_v6 = vpop.permute.xlu1 %783 }
  0xa0   : > { %967 = vrot.lane.b32.xlu0 %v552_v0, %s2844_s29  ;;  %v2034_v0 = vld [vmem:[%s4289_s3] sm:$0xff] }
  0xa1   : > { %961 = vrot.lane.b32.xlu1 %v549_v4, %s2844_s29  ;;  %v2035_v4 = vld [vmem:[%s4289_s3 + $0x8] sm:$0xff] }
  0xa2   : > { %v3224_v2 = vpop.permute.xlu0 %791 }
  0xa3   : > { %v3226_v9 = vpop.permute.xlu1 %785 }
  0xa4   : > { %1035 = vrot.lane.b32.xlu0 %v3228_v11, %s2845_s30 }
  0xa5   : > { %965 = vrot.lane.b32.xlu1 %v551_v7, %s2844_s29  ;;  %v2801_v7 = vpack.c.bf16 %v2035_v4, %v2034_v0  ;;  %v2037_v0 = vld [vmem:[%s4289_s3 + $0x18] sm:$0xff] }
  0xa6   : > { %v3233_v13 = vpop.permute.xlu0 %795 }
  0xa7   : > { %v3235_v14 = vpop.permute.xlu1 %789  ;;  %2802 = vmatprep.subr.bf16.mxu0 %v2801_v7  ;;  %2809 = vmatprep.subr.bf16.mxu1 %v2801_v7 }
  0xa8   : > { %1039 = vrot.lane.b32.xlu0 %v3237_v15, %s2845_s30  ;;  %2804 = vmatpush3.bf16.msra.mxu0 %v2801_v7 }
  0xa9   : > { %969 = vrot.lane.b32.xlu1 %v553_v12, %s2844_s29  ;;  %2812 = vmatpush3.bf16.msra.mxu1 %v2801_v7  ;;  %v2038_v7 = vld [vmem:[%s4289_s3 + $0x20] sm:$0xf] }
  0xaa   : > { %v3242_v18 = vpop.permute.xlu0 %799 }
  0xab   : > { %v3244_v19 = vpop.permute.xlu1 %793 }
  0xac   : > { %1043 = vrot.lane.b32.xlu0 %v3246_v20, %s2845_s30 }
  0xad   : > { %1037 = vrot.lane.b32.xlu1 %v3248_v21, %s2845_s30 }
  0xae   : > { %v3254_v22 = vpop.permute.xlu0 %803 }
  0xaf   : > { %4296 = vst [vmem:[#allocation3_spill] sm:$0xff] %v3254_v22  ;;  %v3256_v23 = vpop.permute.xlu1 %797  ;;  %v3557_v22 = vld [vmem:[#allocation2 + $0x107] sm:$0xff] }
  0xb0   : > { %1047 = vrot.lane.b32.xlu0 %v3258_v24, %s2845_s30 }
  0xb1   : > { %1041 = vrot.lane.b32.xlu1 %v3260_v25, %s2845_s30 }
  0xb2   : > { %v3266_v26 = vpop.permute.xlu0 %807 }
  0xb3   : > { %4297 = vst [vmem:[#allocation4_spill] sm:$0xff] %v3266_v26  ;;  %v3268_v29 = vpop.permute.xlu1 %801  ;;  %v694_v26 = vld [vmem:[#allocation2 + $0xf0] sm:$0xff] }
  0xb4   : > { %1051 = vrot.lane.b32.xlu0 %v3270_v30, %s2845_s30 }
  0xb5   : > { %1045 = vrot.lane.b32.xlu1 %v3272_v31, %s2845_s30 }
  0xb6   : > { %v3278_v32 = vpop.permute.xlu0 %811 }
  0xb7   : > { %4298 = vst [vmem:[#allocation5_spill] sm:$0xff] %v3278_v32  ;;  %v3280_v34 = vpop.permute.xlu1 %805 }
  0xb8   : > { %4299 = vst [vmem:[#allocation6_spill] sm:$0xff] %v3280_v34  ;;  %1055 = vrot.lane.b32.xlu0 %v3282_v36, %s2845_s30 }
  0xb9   : > { %1049 = vrot.lane.b32.xlu1 %v3284_v53, %s2845_s30 }
  0xba   : > { %v3290_v55 = vpop.permute.xlu0 %815 }
  0xbb   : > { %4301 = vst [vmem:[#allocation8_spill] sm:$0xff] %v3290_v55  ;;  %v3292_v57 = vpop.permute.xlu1 %809  ;;  %v3322_v55 = vld [vmem:[#allocation2 + $0xef] sm:$0xff] }
  0xbc   : > { %4302 = vst [vmem:[#allocation9_spill] sm:$0xff] %v3292_v57  ;;  %1059 = vrot.lane.b32.xlu0 %v3294_v58, %s2845_s30  ;;  %4309 = vst [vmem:[#allocation16_spill] sm:$0xff] %v3322_v55 }
  0xbd   : > { %1053 = vrot.lane.b32.xlu1 %v3296_v60, %s2845_s30 }
  0xbe   : > { %v3302_v61 = vpop.permute.xlu0 %819 }
  0xbf   : > { %4304 = vst [vmem:[#allocation11_spill] sm:$0xff] %v3302_v61  ;;  %v3304_v63 = vpop.permute.xlu1 %813 }
  0xc0   : > { %4305 = vst [vmem:[#allocation12_spill] sm:$0xff] %v3304_v63  ;;  %1163 = vrot.lane.b32.xlu0 %v3026_v17, %s2846_s6  ;;  %v2036_v17 = vld [vmem:[%s4289_s3 + $0x10] sm:$0xff] }
  0xc1   : > { %1057 = vrot.lane.b32.xlu1 %v3306_v1, %s2845_s30  ;;  %v2805_v4 = vpack.c.bf16 %v2037_v0, %v2036_v17 }
  0xc2   : > { %v3318_v12 = vpop.permute.xlu0 %823 }
  0xc3   : > { %4307 = vst [vmem:[#allocation14_spill] sm:$0xff] %v3318_v12  ;;  %v3320_v61 = vpop.permute.xlu1 %817  ;;  %2806 = vmatprep.subr.bf16.mxu0 %v2805_v4  ;;  %2810 = vmatprep.subr.bf16.mxu1 %v2805_v4 }
  0xc4   : > { %4308 = vst [vmem:[#allocation15_spill] sm:$0xff] %v3320_v61  ;;  %1291 = vrot.lane.b32.xlu0 %v3132_v33, %s2847_s11  ;;  %2808 = vmatpush3.bf16.msra.mxu0 %v2805_v4 }
  0xc5   : > { %1061 = vrot.lane.b32.xlu1 %v3322_v55, %s2845_s30  ;;  %2813 = vmatpush3.bf16.msra.mxu1 %v2805_v4 }
  0xc6   : > { %v3334_v12 = vpop.permute.xlu0 %827  ;;  %2751 = vmatprep.subr.msk.mxu0 %vm2136_vm2, %v2038_v7  ;;  %2811 = vmatprep.subr.msk.mxu1 %vm2136_vm2, %v2038_v7 }
  0xc7   : > { %4310 = vst [vmem:[#allocation17_spill] sm:$0xff] %v3334_v12  ;;  %v3336_v61 = vpop.permute.xlu1 %821 }
  0xc8   : > { %4311 = vst [vmem:[#allocation18_spill] sm:$0xff] %v3336_v61  ;;  %1419 = vrot.lane.b32.xlu0 %v3237_v15, %s2848_s16  ;;  %2752 = vmatpush3.msk.msra.mxu0 %vm2136_vm2, %v2038_v7 }
  0xc9   : > { %1165 = vrot.lane.b32.xlu1 %v3046_v28, %s2846_s6  ;;  %2814 = vmatpush3.msk.msra.mxu1 %vm2136_vm2, %v2038_v7 }
  0xca   : > { %v3342_v33 = vpop.permute.xlu0 %831 }
  0xcb   : > { %4312 = vst [vmem:[#allocation19_spill] sm:$0xff] %v3342_v33  ;;  %v3344_v63 = vpop.permute.xlu1 %825 }
  0xcc   : > { %4313 = vst [vmem:[#allocation20_spill] sm:$0xff] %v3344_v63  ;;  %1547 = vrot.lane.b32.xlu0 %v3024_v16, %s2849_s22 }
  0xcd   : > { %1293 = vrot.lane.b32.xlu1 %v3144_v38, %s2847_s11 }
  0xce   : > { %v3353_v28 = vpop.permute.xlu0 %835 }
  0xcf   : > { %4314 = vst [vmem:[#allocation21_spill] sm:$0xff] %v3353_v28  ;;  %v3355_v17 = vpop.permute.xlu1 %829 }
  0xd0   : > { %4315 = vst [vmem:[#allocation22_spill] sm:$0xff] %v3355_v17  ;;  %1549 = vrot.lane.b32.xlu0 %v3072_v50, %s2849_s22 }
  0xd1   : > { %1421 = vrot.lane.b32.xlu1 %v3260_v25, %s2848_s16 }
  0xd2   : > { %v3361_v0 = vpop.permute.xlu0 %839 }
  0xd3   : > { %4316 = vst [vmem:[#allocation23_spill] sm:$0xff] %v3361_v0  ;;  %v3363_v4 = vpop.permute.xlu1 %833 }
  0xd4   : > { %4317 = vst [vmem:[#allocation24_spill] sm:$0xff] %v3363_v4  ;;  %1169 = vrot.lane.b32.xlu0 %v3072_v50, %s2846_s6 }
  0xd5   : > { %1167 = vrot.lane.b32.xlu1 %v3024_v16, %s2846_s6 }
  0xd6   : > { %v3369_v38 = vpop.permute.xlu0 %907 }
  0xd7   : > { %v3371_v7 = vpop.permute.xlu1 %837 }
  0xd8   : > { %4318 = vst [vmem:[#allocation25_spill] sm:$0xff] %v3371_v7  ;;  %1677 = vrot.lane.b32.xlu0 %v3152_v40, %s2850_s23 }
  0xd9   : > { %1675 = vrot.lane.b32.xlu1 %v3137_v35, %s2850_s23 }
  0xda   : > { %v3377_v0 = vpop.permute.xlu0 %911 }
  0xdb   : > { %v3379_v28 = vpop.permute.xlu1 %841 }
  0xdc   : > { %4319 = vst [vmem:[#allocation26_spill] sm:$0xff] %v3379_v28  ;;  %1423 = vrot.lane.b32.xlu0 %v3246_v20, %s2848_s16 }
  0xdd   : > { %1295 = vrot.lane.b32.xlu1 %v3137_v35, %s2847_s11 }
  0xde   : > { %v3385_v16 = vpop.permute.xlu0 %915 }
  0xdf   : > { %v3387_v50 = vpop.permute.xlu1 %909 }
  0xe0   : > { %1551 = vrot.lane.b32.xlu0 %v3044_v27, %s2849_s22 }
  0xe1   : > { %1297 = vrot.lane.b32.xlu1 %v3152_v40, %s2847_s11 }
  0xe2   : > { %v3393_v7 = vpop.permute.xlu0 %919 }
  0xe3   : > { %v3395_v33 = vpop.permute.xlu1 %913 }
  0xe4   : > { %1553 = vrot.lane.b32.xlu0 %v3093_v3, %s2849_s22 }
  0xe5   : > { %1425 = vrot.lane.b32.xlu1 %v3272_v31, %s2848_s16 }
  0xe6   : > { %v3401_v35 = vpop.permute.xlu0 %923 }
  0xe7   : > { %v3403_v28 = vpop.permute.xlu1 %917 }
  0xe8   : > { %1173 = vrot.lane.b32.xlu0 %v3093_v3, %s2846_s6 }
  0xe9   : > { %1171 = vrot.lane.b32.xlu1 %v3044_v27, %s2846_s6 }
  0xea   : > { %v3409_v40 = vpop.permute.xlu0 %927 }
  0xeb   : > { %4320 = vst [vmem:[#allocation27_spill] sm:$0xff] %v3409_v40  ;;  %v3411_v4 = vpop.permute.xlu1 %921 }
  0xec   : > { %1681 = vrot.lane.b32.xlu0 %v3160_v42, %s2850_s23 }
  0xed   : > { %1679 = vrot.lane.b32.xlu1 %v3142_v37, %s2850_s23 }
  0xee   : > { %v3417_v12 = vpop.permute.xlu0 %931 }
  0xef   : > { %4321 = vst [vmem:[#allocation28_spill] sm:$0xff] %v3417_v12  ;;  %v3419_v17 = vpop.permute.xlu1 %925 }
  0xf0   : > { %1427 = vrot.lane.b32.xlu0 %v3258_v24, %s2848_s16 }
  0xf1   : > { %1299 = vrot.lane.b32.xlu1 %v3142_v37, %s2847_s11 }
  0xf2   : > { %v3425_v27 = vpop.permute.xlu0 %935 }
  0xf3   : > { %4322 = vst [vmem:[#allocation29_spill] sm:$0xff] %v3425_v27  ;;  %v3427_v3 = vpop.permute.xlu1 %929 }
  0xf4   : > { %4323 = vst [vmem:[#allocation30_spill] sm:$0xff] %v3427_v3  ;;  %1555 = vrot.lane.b32.xlu0 %v3070_v49, %s2849_s22 }
  0xf5   : > { %1301 = vrot.lane.b32.xlu1 %v3160_v42, %s2847_s11 }
  0xf6   : > { %v3433_v63 = vpop.permute.xlu0 %939 }
  0xf7   : > { %4324 = vst [vmem:[#allocation31_spill] sm:$0xff] %v3433_v63  ;;  %v3435_v61 = vpop.permute.xlu1 %933 }
  0xf8   : > { %4325 = vst [vmem:[#allocation32_spill] sm:$0xff] %v3435_v61  ;;  %1557 = vrot.lane.b32.xlu0 %v3104_v8, %s2849_s22 }
  0xf9   : > { %1429 = vrot.lane.b32.xlu1 %v3284_v53, %s2848_s16 }
  0xfa   : > { %v3441_v37 = vpop.permute.xlu0 %943 }
  0xfb   : > { %4326 = vst [vmem:[#allocation33_spill] sm:$0xff] %v3441_v37  ;;  %v3443_v32 = vpop.permute.xlu1 %937 }
  0xfc   : > { %4327 = vst [vmem:[#allocation34_spill] sm:$0xff] %v3443_v32  ;;  %1177 = vrot.lane.b32.xlu0 %v3104_v8, %s2846_s6 }
  0xfd   : > { %1175 = vrot.lane.b32.xlu1 %v3070_v49, %s2846_s6  ;;  %v689_v49 = vld [vmem:[#allocation2 + $0xa8] sm:$0xff] }
  0xfe   : > { %v3449_v42 = vpop.permute.xlu0 %947 }
  0xff   : > { %4328 = vst [vmem:[#allocation35_spill] sm:$0xff] %v3449_v42  ;;  %v3451_v63 = vpop.permute.xlu1 %941 }
 0x100   : > { %4329 = vst [vmem:[#allocation36_spill] sm:$0xff] %v3451_v63  ;;  %1685 = vrot.lane.b32.xlu0 %v3168_v44, %s2850_s23 }
 0x101   : > { %1683 = vrot.lane.b32.xlu1 %v3150_v39, %s2850_s23 }
 0x102   : > { %v3457_v27 = vpop.permute.xlu0 %951 }
 0x103   : > { %4330 = vst [vmem:[#allocation37_spill] sm:$0xff] %v3457_v27  ;;  %v3459_v37 = vpop.permute.xlu1 %945 }
 0x104   : > { %4331 = vst [vmem:[#allocation38_spill] sm:$0xff] %v3459_v37  ;;  %1431 = vrot.lane.b32.xlu0 %v3270_v30, %s2848_s16 }
 0x105   : > { %1303 = vrot.lane.b32.xlu1 %v3150_v39, %s2847_s11 }
 0x106   : > { %v3465_v8 = vpop.permute.xlu0 %955 }
 0x107   : > { %4332 = vst [vmem:[#allocation39_spill] sm:$0xff] %v3465_v8  ;;  %v3467_v42 = vpop.permute.xlu1 %949 }
 0x108   : > { %4333 = vst [vmem:[#allocation40_spill] sm:$0xff] %v3467_v42  ;;  %1559 = vrot.lane.b32.xlu0 %v689_v49, %s2849_s22 }
 0x109   : > { %1305 = vrot.lane.b32.xlu1 %v3168_v44, %s2847_s11 }
 0x10a   : > { %v3472_v63 = vpop.permute.xlu0 %959 }
 0x10b   : > { %4334 = vst [vmem:[#allocation41_spill] sm:$0xff] %v3472_v63  ;;  %v3474_v27 = vpop.permute.xlu1 %953 }
 0x10c   : > { %4335 = vst [vmem:[#allocation42_spill] sm:$0xff] %v3474_v27  ;;  %1561 = vrot.lane.b32.xlu0 %v3109_v10, %s2849_s22 }
 0x10d   : > { %1433 = vrot.lane.b32.xlu1 %v3296_v60, %s2848_s16 }
 0x10e   : > { %v3480_v39 = vpop.permute.xlu0 %963 }
 0x10f   : > { %4336 = vst [vmem:[#allocation43_spill] sm:$0xff] %v3480_v39  ;;  %v3482_v8 = vpop.permute.xlu1 %957 }
 0x110   : > { %4337 = vst [vmem:[#allocation44_spill] sm:$0xff] %v3482_v8  ;;  %1181 = vrot.lane.b32.xlu0 %v3109_v10, %s2846_s6  ;;  %v691_v10 = vld [vmem:[#allocation2 + $0xc8] sm:$0xff] }
 0x111   : > { %1179 = vrot.lane.b32.xlu1 %v689_v49, %s2846_s6 }
 0x112   : > { %v3487_v44 = vpop.permute.xlu0 %967 }
 0x113   : > { %4338 = vst [vmem:[#allocation45_spill] sm:$0xff] %v3487_v44  ;;  %v3489_v63 = vpop.permute.xlu1 %961 }
 0x114   : > { %4339 = vst [vmem:[#allocation46_spill] sm:$0xff] %v3489_v63  ;;  %1689 = vrot.lane.b32.xlu0 %v3176_v46, %s2850_s23  ;;  %v692_v63 = vld [vmem:[#allocation2 + $0xd0] sm:$0xff] }
 0x115   : > { %1687 = vrot.lane.b32.xlu1 %v3158_v41, %s2850_s23 }
 0x116   : > { %v3495_v27 = vpop.permute.xlu0 %1035 }
 0x117   : > { %v3497_v39 = vpop.permute.xlu1 %965 }
 0x118   : > { %4340 = vst [vmem:[#allocation47_spill] sm:$0xff] %v3497_v39  ;;  %1435 = vrot.lane.b32.xlu0 %v3282_v36, %s2848_s16  ;;  %v459_v36 = vld [vmem:[#allocation2 + $0xf] sm:$0xff] }
 0x119   : > { %1307 = vrot.lane.b32.xlu1 %v3158_v41, %s2847_s11 }
 0x11a   : > { %v3503_v49 = vpop.permute.xlu0 %1039 }
 0x11b   : > { %v3505_v44 = vpop.permute.xlu1 %969 }
 0x11c   : > { %4341 = vst [vmem:[#allocation48_spill] sm:$0xff] %v3505_v44  ;;  %1563 = vrot.lane.b32.xlu0 %v691_v10, %s2849_s22 }
 0x11d   : > { %1309 = vrot.lane.b32.xlu1 %v3176_v46, %s2847_s11 }
 0x11e   : > { %v3510_v8 = vpop.permute.xlu0 %1043 }
 0x11f   : > { %v1038_v39 = vpop.permute.xlu1 %1037 }
 0x120   : > { %1565 = vrot.lane.b32.xlu0 %v692_v63, %s2849_s22 }
 0x121   : > { %1437 = vrot.lane.b32.xlu1 %v3306_v1, %s2848_s16 }
 0x122   : > { %v3515_v41 = vpop.permute.xlu0 %1047 }
 0x123   : > { %v3517_v42 = vpop.permute.xlu1 %1041 }
 0x124   : > { %1185 = vrot.lane.b32.xlu0 %v692_v63, %s2846_s6  ;;  %v693_v63 = vld [vmem:[#allocation2 + $0xe8] sm:$0xff] }
 0x125   : > { %1183 = vrot.lane.b32.xlu1 %v691_v10, %s2846_s6 }
 0x126   : > { %v3521_v44 = vpop.permute.xlu0 %1051 }
 0x127   : > { %v3523_v46 = vpop.permute.xlu1 %1045 }
 0x128   : > { %1693 = vrot.lane.b32.xlu0 %v3184_v48, %s2850_s23 }
 0x129   : > { %1691 = vrot.lane.b32.xlu1 %v3166_v43, %s2850_s23 }
 0x12a   : > { %v3529_v37 = vpop.permute.xlu0 %1055 }
 0x12b   : > { %4342 = vst [vmem:[#allocation49_spill] sm:$0xff] %v3529_v37  ;;  %v3531_v32 = vpop.permute.xlu1 %1049 }
 0x12c   : > { %1439 = vrot.lane.b32.xlu0 %v3294_v58, %s2848_s16 }
 0x12d   : > { %1311 = vrot.lane.b32.xlu1 %v3166_v43, %s2847_s11 }
 0x12e   : > { %v3537_v10 = vpop.permute.xlu0 %1059 }
 0x12f   : > { %4343 = vst [vmem:[#allocation50_spill] sm:$0xff] %v3537_v10  ;;  %v3539_v57 = vpop.permute.xlu1 %1053 }
 0x130   : > { %1567 = vrot.lane.b32.xlu0 %v693_v63, %s2849_s22 }
 0x131   : > { %1313 = vrot.lane.b32.xlu1 %v3184_v48, %s2847_s11 }
 0x132   : > { %v1164_v61 = vpop.permute.xlu0 %1163 }
 0x133   : > { %v3544_v12 = vpop.permute.xlu1 %1057 }
 0x134   : > { %4344 = vst [vmem:[#allocation51_spill] sm:$0xff] %v3544_v12  ;;  %1569 = vrot.lane.b32.xlu0 %v694_v26, %s2849_s22  ;;  %v3565_v12 = vld [vmem:[#allocation2 + $0x10f] sm:$0xff] }
 0x135   : > { %1441 = vrot.lane.b32.xlu1 %v3322_v55, %s2848_s16 }
 0x136   : > { %v1292_v43 = vpop.permute.xlu0 %1291 }
 0x137   : > { %v3549_v58 = vpop.permute.xlu1 %1061 }
 0x138   : > { %4345 = vst [vmem:[#allocation52_spill] sm:$0xff] %v3549_v58  ;;  %1189 = vrot.lane.b32.xlu0 %v694_v26, %s2846_s6  ;;  %v458_v26 = vld [vmem:[#allocation2 + $0x7] sm:$0xff] }
 0x139   : > { %1187 = vrot.lane.b32.xlu1 %v693_v63, %s2846_s6  ;;  %v1772_v63 = vsel %vm378_vm0, %v459_v36, %v3214_v62  ;;  %v1771_v3 = vsel %vm378_vm0, %v458_v26, %v3208_v59 }
 0x13a   : > { %v1420_v10 = vpop.permute.xlu0 %1419  ;;  %v1805_v37 = vsel %vm1803_vm3, %v1772_v63, %v3387_v50 }
 0x13b   : > { %v1166_v1 = vpop.permute.xlu1 %1165  ;;  %v1838_v40 = vsel %vm1836_vm4, %v1805_v37, %v1038_v39 }
 0x13c   : > { %1697 = vrot.lane.b32.xlu0 %v3192_v52, %s2850_s23  ;;  %v1871_v62 = vsel %vm1869_vm5, %v1838_v40, %v1166_v1 }
 0x13d   : > { %1695 = vrot.lane.b32.xlu1 %v3174_v45, %s2850_s23 }
 0x13e   : > { %v1548_v48 = vpop.permute.xlu0 %1547 }
 0x13f   : > { %v1294_v34 = vpop.permute.xlu1 %1293 }
 0x140   : > { %1443 = vrot.lane.b32.xlu0 %v3557_v22, %s2848_s16  ;;  %v1904_v59 = vsel %vm1902_vm6, %v1871_v62, %v1294_v34  ;;  %v695_v34 = vld [vmem:[#allocation2 + $0x108] sm:$0xff]  ;;  %v1774_v62 = vsel %vm378_vm0, %v3248_v21, %v3226_v9 }
 0x141   : > { %1315 = vrot.lane.b32.xlu1 %v3174_v45, %s2847_s11  ;;  %v1804_v45 = vsel %vm1803_vm3, %v1771_v3, %v3369_v38  ;;  %v696_v38 = vld [vmem:[#allocation2 + $0x110] sm:$0xff] }
 0x142   : > { %v1550_v55 = vpop.permute.xlu0 %1549  ;;  %v1837_v36 = vsel %vm1836_vm4, %v1804_v45, %v3495_v27  ;;  %v1773_v45 = vsel %vm378_vm0, %v3228_v11, %v3220_v6 }
 0x143   : > { %v1422_v58 = vpop.permute.xlu1 %1421  ;;  %v1870_v39 = vsel %vm1869_vm5, %v1837_v36, %v1164_v61 }
 0x144   : > { %1445 = vrot.lane.b32.xlu0 %v3565_v12, %s2848_s16  ;;  %v1937_v26 = vsel %vm1935_vm7, %v1904_v59, %v1422_v58 }
 0x145   : > { %1317 = vrot.lane.b32.xlu1 %v3192_v52, %s2847_s11  ;;  %v1903_v52 = vsel %vm1902_vm6, %v1870_v39, %v1292_v43  ;;  %v1970_v61 = vsel %vm1968_vm8, %v1937_v26, %v1550_v55  ;;  %v3610_v39 = vld [vmem:[#allocation2 + $0x127] sm:$0xff]  ;;  %v1806_v26 = vsel %vm1803_vm3, %v1773_v45, %v3377_v0 }
 0x146   : > { %v1170_v50 = vpop.permute.xlu0 %1169  ;;  %v1936_v1 = vsel %vm1935_vm7, %v1903_v52, %v1420_v10  ;;  %v1807_v52 = vsel %vm1803_vm3, %v1774_v62, %v3395_v33 }
 0x147   : > { %v1168_v37 = vpop.permute.xlu1 %1167  ;;  %v1969_v40 = vsel %vm1968_vm8, %v1936_v1, %v1548_v48  ;;  %v1839_v1 = vsel %vm1836_vm4, %v1806_v26, %v3503_v49  ;;  %v1840_v6 = vsel %vm1836_vm4, %v1807_v52, %v3517_v42  ;;  %v3628_v49 = vld [vmem:[#allocation2 + $0x12f] sm:$0xff] }
 0x148   : > { %1065 = vrot.lane.b32.xlu0 %v3565_v12, %s2845_s30  ;;  %v1873_v9 = vsel %vm1869_vm5, %v1840_v6, %v1170_v50  ;;  %v1872_v11 = vsel %vm1869_vm5, %v1839_v1, %v1168_v37  ;;  %v3672_v1 = vld [vmem:[#allocation2 + $0x147] sm:$0xff] }
 0x149   : > { %1063 = vrot.lane.b32.xlu1 %v3557_v22, %s2845_s30 }
 0x14a   : > { %v1678_v27 = vpop.permute.xlu0 %1677 }
 0x14b   : > { %v1676_v3 = vpop.permute.xlu1 %1675  ;;  %v2003_v58 = vsel %vm2001_vm9, %v1970_v61, %v1678_v27 }
 0x14c   : > { %v2002_v43 = vsel %vm2001_vm9, %v1969_v40, %v1676_v3  ;;  %1573 = vrot.lane.b32.xlu0 %v696_v38, %s2849_s22  ;;  %v697_v3 = vld [vmem:[#allocation2 + $0x128] sm:$0xff] }
 0x14d   : > { %1571 = vrot.lane.b32.xlu1 %v695_v34, %s2849_s22  ;;  %2753 = vmatprep.mubr.msk.f32.mxu0 %vm2039_vm10, %v2002_v43 }
 0x14e   : > { %2754 = vmatmul.mubr.msk.f32.vlgmr.msra.gmra.mrb[0].mxu0 %vm2039_vm10, %v2003_v58  ;;  %v1424_v10 = vpop.permute.xlu0 %1423 }
 0x14f   : > { %v1296_v63 = vpop.permute.xlu1 %1295 }
 0x150   : > { %1193 = vrot.lane.b32.xlu0 %v696_v38, %s2846_s6  ;;  %v1905_v21 = vsel %vm1902_vm6, %v1872_v11, %v1296_v63 }
 0x151   : > { %1191 = vrot.lane.b32.xlu1 %v695_v34, %s2846_s6 }
 0x152   : > { %v1552_v55 = vpop.permute.xlu0 %1551 }
 0x153   : > { %v1298_v48 = vpop.permute.xlu1 %1297 }
 0x154   : > { %1701 = vrot.lane.b32.xlu0 %v3198_v54, %s2850_s23  ;;  %v1906_v33 = vsel %vm1902_vm6, %v1873_v9, %v1298_v48  ;;  %v1776_v48 = vsel %vm378_vm0, %v3260_v25, %v3235_v14 }
 0x155   : > { %1699 = vrot.lane.b32.xlu1 %v3182_v47, %s2850_s23 }
 0x156   : > { %v1554_v36 = vpop.permute.xlu0 %1553 }
 0x157   : > { %v1426_v59 = vpop.permute.xlu1 %1425 }
 0x158   : > { %1447 = vrot.lane.b32.xlu0 %v3610_v39, %s2848_s16  ;;  %v1939_v42 = vsel %vm1935_vm7, %v1906_v33, %v1426_v59  ;;  %v1809_v59 = vsel %vm1803_vm3, %v1776_v48, %v3403_v28  ;;  %v268_v33 = vld [vmem:[%s2946_s25 + $0xf0] sm:$0xff]  ;;  %v1777_v48 = vsel %vm378_vm0, %v3246_v20, %v3224_v2 }
 0x159   : > { %1319 = vrot.lane.b32.xlu1 %v3182_v47, %s2847_s11  ;;  %v1938_v47 = vsel %vm1935_vm7, %v1905_v21, %v1424_v10  ;;  %v1972_v34 = vsel %vm1968_vm8, %v1939_v42, %v1554_v36  ;;  %v1842_v52 = vsel %vm1836_vm4, %v1809_v59, %v3523_v46  ;;  %v1810_v59 = vsel %vm1803_vm3, %v1777_v48, %v3393_v7  ;;  %v732_v20 = vld [vmem:[#allocation2 + $0x151] sm:$0xff] }
 0x15a   : > { %v1174_v0 = vpop.permute.xlu0 %1173  ;;  %v1971_v50 = vsel %vm1968_vm8, %v1938_v47, %v1552_v55  ;;  %v1775_v55 = vsel %vm378_vm0, %v3237_v15, %v3218_v5  ;;  %v634_v15 = vld [vmem:[#allocation2 + $0x129] sm:$0xff]  ;;  %v2832_v47 = vld [vmem:[%s4287_s1] ss:$0 sm:$0xff] }
 0x15b   : > { %v1172_v38 = vpop.permute.xlu1 %1171  ;;  %v1808_v36 = vsel %vm1803_vm3, %v1775_v55, %v3385_v16  ;;  %v1875_v5 = vsel %vm1869_vm5, %v1842_v52, %v1174_v0  ;;  %v3682_v0 = vld [vmem:[#allocation2 + $0x14f] sm:$0xff]  ;;  %v1843_v52 = vsel %vm1836_vm4, %v1810_v59, %v3515_v41  ;;  %v3783_v59 = vld [vmem:[#allocation2 + $0x187] sm:$0xff] }
 0x15c   : > { %1449 = vrot.lane.b32.xlu0 %v3628_v49, %s2848_s16  ;;  %v1841_v26 = vsel %vm1836_vm4, %v1808_v36, %v3510_v8 }
 0x15d   : > { %1321 = vrot.lane.b32.xlu1 %v3198_v54, %s2847_s11  ;;  %v698_v54 = vld [vmem:[#allocation2 + $0x130] sm:$0xff]  ;;  %v1874_v14 = vsel %vm1869_vm5, %v1841_v26, %v1172_v38 }
 0x15e   : > { %v1682_v37 = vpop.permute.xlu0 %1681 }
 0x15f   : > { %v1680_v40 = vpop.permute.xlu1 %1679  ;;  %v2005_v27 = vsel %vm2001_vm9, %v1972_v34, %v1682_v37  ;;  %v2833_v37 = vld [vmem:[%s4288_s2] ss:$0 sm:$0xff] }
 0x160   : > { %v2004_v61 = vsel %vm2001_vm9, %v1971_v50, %v1680_v40  ;;  %1069 = vrot.lane.b32.xlu0 %v3628_v49, %s2845_s30  ;;  %v306_v50 = vmul.f32 %v2832_v47, %v268_v33 }
 0x161   : > { %1067 = vrot.lane.b32.xlu1 %v3610_v39, %s2845_s30  ;;  %2756 = vmatprep.mubr.msk.f32.mxu0 %vm2039_vm10, %v2004_v61  ;;  %v269_v61 = vld [vmem:[%s2946_s25 + $0xf8] sm:$0xff] }
 0x162   : > { %2757 = vmatmul.mubr.msk.f32.gmra.mrb[2].mxu0 %vm2039_vm10, %v2005_v27  ;;  %v1428_v58 = vpop.permute.xlu0 %1427  ;;  %v344_v34 = vadd.f32 %v2833_v37, %v306_v50  ;;  %v1779_v50 = vsel %vm378_vm0, %v3258_v24, %v3233_v13 }
 0x163   : > { %v1300_v43 = vpop.permute.xlu1 %1299 }
 0x164   : > { %1577 = vrot.lane.b32.xlu0 %v698_v54, %s2849_s22  ;;  %v1907_v25 = vsel %vm1902_vm6, %v1874_v14, %v1300_v43 }
 0x165   : > { %1575 = vrot.lane.b32.xlu1 %v697_v3, %s2849_s22 }
 0x166   : > { %v1556_v10 = vpop.permute.xlu0 %1555 }
 0x167   : > { %v1302_v63 = vpop.permute.xlu1 %1301 }
 0x168   : > { %1197 = vrot.lane.b32.xlu0 %v698_v54, %s2846_s6  ;;  %v1908_v28 = vsel %vm1902_vm6, %v1875_v5, %v1302_v63  ;;  %v376_v54 = vmax.f32 %v344_v34, 0.0 }
 0x169   : > { %1195 = vrot.lane.b32.xlu1 %v697_v3, %s2846_s6  ;;  %v307_v3 = vmul.f32 %v2832_v47, %v269_v61  ;;  %v701_v47 = vld [vmem:[#allocation2 + $0x168] sm:$0xff] }
 0x16a   : > { %v1558_v45 = vpop.permute.xlu0 %1557  ;;  %456 = vst.msk [vmem:[#allocation2 + $0x208] sm:$0xff] %vm378_vm0, %v376_v54 }
 0x16b   : > { %v1430_v62 = vpop.permute.xlu1 %1429  ;;  %v345_v43 = vadd.f32 %v2833_v37, %v307_v3  ;;  %v1780_v37 = vsel %vm378_vm0, %v3284_v53, %v3256_v23 }
 0x16c   : > { %1705 = vrot.lane.b32.xlu0 %v3203_v56, %s2850_s23  ;;  %v1941_v46 = vsel %vm1935_vm7, %v1908_v28, %v1430_v62  ;;  %v1813_v61 = vsel %vm1803_vm3, %v1780_v37, %v3419_v17 }
 0x16d   : > { %1703 = vrot.lane.b32.xlu1 %v3190_v51, %s2850_s23  ;;  %v1940_v51 = vsel %vm1935_vm7, %v1907_v25, %v1428_v58  ;;  %v1974_v11 = vsel %vm1968_vm8, %v1941_v46, %v1558_v45  ;;  %v699_v58 = vld [vmem:[#allocation2 + $0x148] sm:$0xff]  ;;  %v377_v55 = vmax.f32 %v345_v43, 0.0  ;;  %v1778_v45 = vsel %vm378_vm0, %v3272_v31, %v3244_v19 }
 0x16e   : > { %v1178_v16 = vpop.permute.xlu0 %1177  ;;  %v1973_v6 = vsel %vm1968_vm8, %v1940_v51, %v1556_v10  ;;  %v1811_v26 = vsel %vm1803_vm3, %v1778_v45, %v3411_v4  ;;  %v731_v31 = vld [vmem:[#allocation2 + $0x149] sm:$0xff]  ;;  %v1846_v3 = vsel %vm1836_vm4, %v1813_v61, %v3539_v57 }
 0x16f   : > { %v1176_v8 = vpop.permute.xlu1 %1175  ;;  %457 = vst.msk [vmem:[#allocation2 + $0x210] sm:$0xff] %vm378_vm0, %v377_v55  ;;  %v1844_v5 = vsel %vm1836_vm4, %v1811_v26, %v3531_v32  ;;  %v3733_v46 = vld [vmem:[#allocation2 + $0x167] sm:$0xff] }
 0x170   : > { %1451 = vrot.lane.b32.xlu0 %v3672_v1, %s2848_s16  ;;  %v1877_v2 = vsel %vm1869_vm5, %v1844_v5, %v1178_v16  ;;  %v1876_v19 = vsel %vm1869_vm5, %v1843_v52, %v1176_v8  ;;  %v3788_v5 = vld [vmem:[#allocation2 + $0x18f] sm:$0xff] }
 0x171   : > { %1323 = vrot.lane.b32.xlu1 %v634_v15, %s2847_s11 }
 0x172   : > { %v1686_v9 = vpop.permute.xlu0 %1685 }
 0x173   : > { %v1684_v21 = vpop.permute.xlu1 %1683  ;;  %v2007_v38 = vsel %vm2001_vm9, %v1974_v11, %v1686_v9 }
 0x174   : > { %v2006_v42 = vsel %vm2001_vm9, %v1973_v6, %v1684_v21  ;;  %1453 = vrot.lane.b32.xlu0 %v3682_v0, %s2848_s16  ;;  %v3742_v21 = vld [vmem:[#allocation2 + $0x16f] sm:$0xff] }
 0x175   : > { %1325 = vrot.lane.b32.xlu1 %v3203_v56, %s2847_s11  ;;  %2759 = vmatprep.mubr.msk.f32.mxu0 %vm2039_vm10, %v2006_v42  ;;  %v700_v56 = vld [vmem:[#allocation2 + $0x150] sm:$0xff] }
 0x176   : > { %2760 = vmatmul.mubr.msk.f32.gmra.mrb[4].mxu0 %vm2039_vm10, %v2007_v38  ;;  %v1432_v40 = vpop.permute.xlu0 %1431  ;;  %v702_v42 = vld [vmem:[#allocation2 + $0x170] sm:$0xff] }
 0x177   : > { %v1304_v27 = vpop.permute.xlu1 %1303 }
 0x178   : > { %1073 = vrot.lane.b32.xlu0 %v3682_v0, %s2845_s30  ;;  %v1909_v7 = vsel %vm1902_vm6, %v1876_v19, %v1304_v27  ;;  %v1812_v27 = vsel %vm1803_vm3, %v1779_v50, %v3401_v35  ;;  %v1782_v19 = vsel %vm378_vm0, %v3296_v60, %v3268_v29  ;;  %v703_v60 = vld [vmem:[#allocation2 + $0x188] sm:$0xff] }
 0x179   : > { %1071 = vrot.lane.b32.xlu1 %v3672_v1, %s2845_s30  ;;  %v1942_v32 = vsel %vm1935_vm7, %v1909_v7, %v1432_v40  ;;  %v1845_v54 = vsel %vm1836_vm4, %v1812_v27, %v3521_v44  ;;  %v734_v44 = vld [vmem:[#allocation2 + $0x171] sm:$0xff]  ;;  %v4346_v7 = vld [vmem:[#allocation27_spill] sm:$0xff] }
 0x17a   : > { %v1560_v10 = vpop.permute.xlu0 %1559 }
 0x17b   : > { %v1306_v63 = vpop.permute.xlu1 %1305  ;;  %v1975_v25 = vsel %vm1968_vm8, %v1942_v32, %v1560_v10 }
 0x17c   : > { %1581 = vrot.lane.b32.xlu0 %v700_v56, %s2849_s22  ;;  %v1910_v4 = vsel %vm1902_vm6, %v1877_v2, %v1306_v63  ;;  %v1781_v2 = vsel %vm378_vm0, %v3270_v30, %v3242_v18  ;;  %v704_v30 = vld [vmem:[#allocation2 + $0x190] sm:$0xff] }
 0x17d   : > { %1579 = vrot.lane.b32.xlu1 %v699_v58, %s2849_s22 }
 0x17e   : > { %v1562_v62 = vpop.permute.xlu0 %1561 }
 0x17f   : > { %v1434_v36 = vpop.permute.xlu1 %1433 }
 0x180   : > { %1201 = vrot.lane.b32.xlu0 %v700_v56, %s2846_s6  ;;  %v1943_v41 = vsel %vm1935_vm7, %v1910_v4, %v1434_v36  ;;  %v1814_v4 = vsel %vm1803_vm3, %v1781_v2, %v4346_v7 }
 0x181   : > { %1199 = vrot.lane.b32.xlu1 %v699_v58, %s2846_s6  ;;  %v1976_v16 = vsel %vm1968_vm8, %v1943_v41, %v1562_v62  ;;  %v733_v58 = vld [vmem:[#allocation2 + $0x169] sm:$0xff] }
 0x182   : > { %v1182_v14 = vpop.permute.xlu0 %1181  ;;  %v4348_v41 = vld [vmem:[#allocation49_spill] sm:$0xff] }
 0x183   : > { %v1180_v15 = vpop.permute.xlu1 %1179  ;;  %v1879_v13 = vsel %vm1869_vm5, %v1846_v3, %v1182_v14  ;;  %v4347_v14 = vld [vmem:[#allocation30_spill] sm:$0xff]  ;;  %v1847_v32 = vsel %vm1836_vm4, %v1814_v4, %v4348_v41 }
 0x184   : > { %1709 = vrot.lane.b32.xlu0 %v732_v20, %s2850_s23  ;;  %v1878_v23 = vsel %vm1869_vm5, %v1845_v54, %v1180_v15  ;;  %v1815_v15 = vsel %vm1803_vm3, %v1782_v19, %v4347_v14  ;;  %v673_v54 = vld [vmem:[#allocation2 + $0x1a7] sm:$0xff] }
 0x185   : > { %1707 = vrot.lane.b32.xlu1 %v731_v31, %s2850_s23 }
 0x186   : > { %v1690_v28 = vpop.permute.xlu0 %1689 }
 0x187   : > { %v1688_v8 = vpop.permute.xlu1 %1687  ;;  %v2009_v51 = vsel %vm2001_vm9, %v1976_v16, %v1690_v28 }
 0x188   : > { %v2008_v6 = vsel %vm2001_vm9, %v1975_v25, %v1688_v8  ;;  %1455 = vrot.lane.b32.xlu0 %v3733_v46, %s2848_s16  ;;  %v4349_v25 = vld [vmem:[#allocation51_spill] sm:$0xff] }
 0x189   : > { %1327 = vrot.lane.b32.xlu1 %v731_v31, %s2847_s11  ;;  %2762 = vmatprep.mubr.msk.f32.mxu0 %vm2039_vm10, %v2008_v6  ;;  %v1848_v28 = vsel %vm1836_vm4, %v1815_v15, %v4349_v25 }
 0x18a   : > { %2763 = vmatmul.mubr.msk.f32.gmra.mrb[6].mxu0 %vm2039_vm10, %v2009_v51  ;;  %v1436_v9 = vpop.permute.xlu0 %1435 }
 0x18b   : > { %v1308_v11 = vpop.permute.xlu1 %1307 }
 0x18c   : > { %1457 = vrot.lane.b32.xlu0 %v3742_v21, %s2848_s16  ;;  %v1911_v24 = vsel %vm1902_vm6, %v1878_v23, %v1308_v11 }
 0x18d   : > { %1329 = vrot.lane.b32.xlu1 %v732_v20, %s2847_s11  ;;  %v1944_v57 = vsel %vm1935_vm7, %v1911_v24, %v1436_v9 }
 0x18e   : > { %v1564_v33 = vpop.permute.xlu0 %1563 }
 0x18f   : > { %v1310_v38 = vpop.permute.xlu1 %1309  ;;  %v1977_v43 = vsel %vm1968_vm8, %v1944_v57, %v1564_v33  ;;  %v4352_v57 = vld [vmem:[#allocation6_spill] sm:$0xff] }
 0x190   : > { %1077 = vrot.lane.b32.xlu0 %v3742_v21, %s2845_s30  ;;  %v1912_v53 = vsel %vm1902_vm6, %v1879_v13, %v1310_v38 }
 0x191   : > { %1075 = vrot.lane.b32.xlu1 %v3733_v46, %s2845_s30 }
 0x192   : > { %v1566_v34 = vpop.permute.xlu0 %1565 }
 0x193   : > { %v1438_v40 = vpop.permute.xlu1 %1437 }
 0x194   : > { %1585 = vrot.lane.b32.xlu0 %v702_v42, %s2849_s22  ;;  %v1945_v56 = vsel %vm1935_vm7, %v1912_v53, %v1438_v40  ;;  %v735_v40 = vld [vmem:[#allocation2 + $0x189] sm:$0xff] }
 0x195   : > { %1583 = vrot.lane.b32.xlu1 %v701_v47, %s2849_s22  ;;  %v1978_v63 = vsel %vm1968_vm8, %v1945_v56, %v1566_v34  ;;  %v736_v34 = vld [vmem:[#allocation2 + $0x191] sm:$0xff] }
 0x196   : > { %v1186_v35 = vpop.permute.xlu0 %1185  ;;  %v3831_v53 = vld [vmem:[#allocation2 + $0x1af] sm:$0xff] }
 0x197   : > { %v1184_v17 = vpop.permute.xlu1 %1183  ;;  %v1881_v18 = vsel %vm1869_vm5, %v1848_v28, %v1186_v35  ;;  %v4350_v35 = vld [vmem:[#allocation3_spill] sm:$0xff] }
 0x198   : > { %1205 = vrot.lane.b32.xlu0 %v702_v42, %s2846_s6  ;;  %v1880_v29 = vsel %vm1869_vm5, %v1847_v32, %v1184_v17  ;;  %v4351_v17 = vld [vmem:[#allocation7_spill] sm:$0xff] }
 0x199   : > { %1203 = vrot.lane.b32.xlu1 %v701_v47, %s2846_s6  ;;  %v1783_v56 = vsel %vm378_vm0, %v4351_v17, %v4350_v35  ;;  %v4363_v17 = vld [vmem:[#allocation34_spill] sm:$0xff] }
 0x19a   : > { %v1694_v10 = vpop.permute.xlu0 %1693 }
 0x19b   : > { %v1692_v55 = vpop.permute.xlu1 %1691  ;;  %v2011_v48 = vsel %vm2001_vm9, %v1978_v63, %v1694_v10  ;;  %v4354_v63 = vld [vmem:[#allocation28_spill] sm:$0xff] }
 0x19c   : > { %v2010_v45 = vsel %vm2001_vm9, %v1977_v43, %v1692_v55  ;;  %1713 = vrot.lane.b32.xlu0 %v734_v44, %s2850_s23  ;;  %v1816_v55 = vsel %vm1803_vm3, %v1783_v56, %v4354_v63  ;;  %v707_v63 = vld [vmem:[#allocation2 + $0x1c8] sm:$0xff] }
 0x19d   : > { %1711 = vrot.lane.b32.xlu1 %v733_v58, %s2850_s23  ;;  %2765 = vmatprep.mubr.msk.f32.mxu0 %vm2039_vm10, %v2010_v45 }
 0x19e   : > { %2766 = vmatmul.mubr.msk.f32.gmra.mrb[8].mxu0 %vm2039_vm10, %v2011_v48  ;;  %v1440_v62 = vpop.permute.xlu0 %1439  ;;  %v4355_v48 = vld [vmem:[#allocation32_spill] sm:$0xff] }
 0x19f   : > { %v1312_v36 = vpop.permute.xlu1 %1311 }
 0x1a0   : > { %1459 = vrot.lane.b32.xlu0 %v3783_v59, %s2848_s16  ;;  %v1913_v16 = vsel %vm1902_vm6, %v1880_v29, %v1312_v36 }
 0x1a1   : > { %1331 = vrot.lane.b32.xlu1 %v733_v58, %s2847_s11  ;;  %v1946_v11 = vsel %vm1935_vm7, %v1913_v16, %v1440_v62  ;;  %v4356_v62 = vld [vmem:[#allocation50_spill] sm:$0xff] }
 0x1a2   : > { %v1568_v26 = vpop.permute.xlu0 %1567  ;;  %v1849_v36 = vsel %vm1836_vm4, %v1816_v55, %v4356_v62  ;;  %v738_v16 = vld [vmem:[#allocation2 + $0x1b1] sm:$0xff] }
 0x1a3   : > { %v1314_v52 = vpop.permute.xlu1 %1313  ;;  %v1979_v33 = vsel %vm1968_vm8, %v1946_v11, %v1568_v26  ;;  %v4357_v26 = vld [vmem:[#allocation52_spill] sm:$0xff] }
 0x1a4   : > { %1461 = vrot.lane.b32.xlu0 %v3788_v5, %s2848_s16  ;;  %v1914_v8 = vsel %vm1902_vm6, %v1881_v18, %v1314_v52 }
 0x1a5   : > { %1333 = vrot.lane.b32.xlu1 %v734_v44, %s2847_s11  ;;  %v4353_v44 = vld [vmem:[#allocation13_spill] sm:$0xff] }
 0x1a6   : > { %v1570_v20 = vpop.permute.xlu0 %1569  ;;  %v1784_v58 = vsel %vm378_vm0, %v4353_v44, %v4352_v57 }
 0x1a7   : > { %v1442_v31 = vpop.permute.xlu1 %1441  ;;  %v1817_v45 = vsel %vm1803_vm3, %v1784_v58, %v4355_v48 }
 0x1a8   : > { %1081 = vrot.lane.b32.xlu0 %v3788_v5, %s2845_s30  ;;  %v1947_v9 = vsel %vm1935_vm7, %v1914_v8, %v1442_v31  ;;  %v1850_v52 = vsel %vm1836_vm4, %v1817_v45, %v4357_v26  ;;  %v705_v31 = vld [vmem:[#allocation2 + $0x1a8] sm:$0xff] }
 0x1a9   : > { %1079 = vrot.lane.b32.xlu1 %v3783_v59, %s2845_s30  ;;  %v1980_v42 = vsel %vm1968_vm8, %v1947_v9, %v1570_v20  ;;  %v706_v20 = vld [vmem:[#allocation2 + $0x1b0] sm:$0xff]  ;;  %v675_v9 = vld [vmem:[#allocation2 + $0x1c7] sm:$0xff] }
 0x1aa   : > { %v1190_v51 = vpop.permute.xlu0 %1189  ;;  %v737_v8 = vld [vmem:[#allocation2 + $0x1a9] sm:$0xff] }
 0x1ab   : > { %v1188_v6 = vpop.permute.xlu1 %1187  ;;  %v1883_v2 = vsel %vm1869_vm5, %v1850_v52, %v1190_v51 }
 0x1ac   : > { %1589 = vrot.lane.b32.xlu0 %v704_v30, %s2849_s22  ;;  %v1882_v19 = vsel %vm1869_vm5, %v1849_v36, %v1188_v6 }
 0x1ad   : > { %1587 = vrot.lane.b32.xlu1 %v703_v60, %s2849_s22 }
 0x1ae   : > { %v1698_v38 = vpop.permute.xlu0 %1697 }
 0x1af   : > { %v1696_v47 = vpop.permute.xlu1 %1695  ;;  %v2013_v50 = vsel %vm2001_vm9, %v1980_v42, %v1698_v38  ;;  %v676_v38 = vld [vmem:[#allocation2 + $0x1cf] sm:$0xff] }
 0x1b0   : > { %v2012_v37 = vsel %vm2001_vm9, %v1979_v33, %v1696_v47  ;;  %1209 = vrot.lane.b32.xlu0 %v704_v30, %s2846_s6 }
 0x1b1   : > { %1207 = vrot.lane.b32.xlu1 %v703_v60, %s2846_s6  ;;  %2768 = vmatprep.mubr.msk.f32.mxu0 %vm2039_vm10, %v2012_v37  ;;  %v4359_v37 = vld [vmem:[#allocation10_spill] sm:$0xff] }
 0x1b2   : > { %2769 = vmatmul.mubr.msk.f32.gmra.mrb[10].mxu0 %vm2039_vm10, %v2013_v50  ;;  %v1444_v27 = vpop.permute.xlu0 %1443  ;;  %v4358_v50 = vld [vmem:[#allocation4_spill] sm:$0xff] }
 0x1b3   : > { %v1316_v61 = vpop.permute.xlu1 %1315 }
 0x1b4   : > { %1717 = vrot.lane.b32.xlu0 %v736_v34, %s2850_s23  ;;  %v1915_v7 = vsel %vm1902_vm6, %v1882_v19, %v1316_v61 }
 0x1b5   : > { %1715 = vrot.lane.b32.xlu1 %v735_v40, %s2850_s23  ;;  %v1948_v32 = vsel %vm1935_vm7, %v1915_v7, %v1444_v27  ;;  %v4361_v27 = vld [vmem:[#allocation16_spill] sm:$0xff] }
 0x1b6   : > { %v1446_v3 = vpop.permute.xlu0 %1445  ;;  %v739_v7 = vld [vmem:[#allocation2 + $0x1c9] sm:$0xff] }
 0x1b7   : > { %v1318_v13 = vpop.permute.xlu1 %1317 }
 0x1b8   : > { %1463 = vrot.lane.b32.xlu0 %v673_v54, %s2848_s16  ;;  %v1916_v4 = vsel %vm1902_vm6, %v1883_v2, %v1318_v13  ;;  %v4362_v13 = vld [vmem:[#allocation29_spill] sm:$0xff] }
 0x1b9   : > { %1335 = vrot.lane.b32.xlu1 %v735_v40, %s2847_s11  ;;  %v1949_v41 = vsel %vm1935_vm7, %v1916_v4, %v1446_v3  ;;  %v4360_v40 = vld [vmem:[#allocation9_spill] sm:$0xff] }
 0x1ba   : > { %v1066_v23 = vpop.permute.xlu0 %1065  ;;  %v1786_v61 = vsel %vm378_vm0, %v4361_v27, %v4360_v40 }
 0x1bb   : > { %v1064_v24 = vpop.permute.xlu1 %1063  ;;  %v1819_v56 = vsel %vm1803_vm3, %v1786_v61, %v4363_v17 }
 0x1bc   : > { %1465 = vrot.lane.b32.xlu0 %v3831_v53, %s2848_s16  ;;  %v1852_v57 = vsel %vm1836_vm4, %v1819_v56, %v1066_v23 }
 0x1bd   : > { %1337 = vrot.lane.b32.xlu1 %v736_v34, %s2847_s11  ;;  %v1785_v34 = vsel %vm378_vm0, %v4359_v37, %v4358_v50  ;;  %v710_v37 = vld [vmem:[#allocation2 + $0x1f0] sm:$0xff] }
 0x1be   : > { %v1574_v43 = vpop.permute.xlu0 %1573  ;;  %v1818_v35 = vsel %vm1803_vm3, %v1785_v34, %v4362_v13  ;;  %v709_v34 = vld [vmem:[#allocation2 + $0x1e8] sm:$0xff] }
 0x1bf   : > { %v1572_v10 = vpop.permute.xlu1 %1571  ;;  %v1982_v25 = vsel %vm1968_vm8, %v1949_v41, %v1574_v43  ;;  %v1851_v44 = vsel %vm1836_vm4, %v1818_v35, %v1064_v24 }
 0x1c0   : > { %1085 = vrot.lane.b32.xlu0 %v3831_v53, %s2845_s30  ;;  %v1981_v28 = vsel %vm1968_vm8, %v1948_v32, %v1572_v10  ;;  %v708_v10 = vld [vmem:[#allocation2 + $0x1d0] sm:$0xff] }
 0x1c1   : > { %1083 = vrot.lane.b32.xlu1 %v673_v54, %s2845_s30 }
 0x1c2   : > { %v1194_v14 = vpop.permute.xlu0 %1193 }
 0x1c3   : > { %v1192_v15 = vpop.permute.xlu1 %1191  ;;  %v1885_v58 = vsel %vm1869_vm5, %v1852_v57, %v1194_v14 }
 0x1c4   : > { %1593 = vrot.lane.b32.xlu0 %v706_v20, %s2849_s22  ;;  %v1884_v43 = vsel %vm1869_vm5, %v1851_v44, %v1192_v15  ;;  %v677_v15 = vld [vmem:[#allocation2 + $0x1e7] sm:$0xff]  ;;  %v742_v44 = vld [vmem:[#allocation2 + $0x1f1] sm:$0xff] }
 0x1c5   : > { %1591 = vrot.lane.b32.xlu1 %v705_v31, %s2849_s22 }
 0x1c6   : > { %v1702_v18 = vpop.permute.xlu0 %1701 }
 0x1c7   : > { %v1700_v29 = vpop.permute.xlu1 %1699  ;;  %v2015_v30 = vsel %vm2001_vm9, %v1982_v25, %v1702_v18  ;;  %v678_v25 = vld [vmem:[#allocation2 + $0x1ef] sm:$0xff] }
 0x1c8   : > { %v2014_v60 = vsel %vm2001_vm9, %v1981_v28, %v1700_v29  ;;  %1213 = vrot.lane.b32.xlu0 %v706_v20, %s2846_s6  ;;  %v4364_v29 = vld [vmem:[#allocation5_spill] sm:$0xff] }
 0x1c9   : > { %1211 = vrot.lane.b32.xlu1 %v705_v31, %s2846_s6  ;;  %2771 = vmatprep.mubr.msk.f32.mxu0 %vm2039_vm10, %v2014_v60  ;;  %v740_v31 = vld [vmem:[#allocation2 + $0x1d1] sm:$0xff]  ;;  %v4365_v60 = vld [vmem:[#allocation12_spill] sm:$0xff] }
 0x1ca   : > { %2772 = vmatmul.mubr.msk.f32.gmra.mrb[12].mxu0 %vm2039_vm10, %v2015_v30  ;;  %v1448_v51 = vpop.permute.xlu0 %1447  ;;  %v1787_v30 = vsel %vm378_vm0, %v3557_v22, %v4364_v29 }
 0x1cb   : > { %v1320_v6 = vpop.permute.xlu1 %1319 }
 0x1cc   : > { %1721 = vrot.lane.b32.xlu0 %v738_v16, %s2850_s23  ;;  %v1917_v55 = vsel %vm1902_vm6, %v1884_v43, %v1320_v6  ;;  %v4366_v6 = vld [vmem:[#allocation31_spill] sm:$0xff] }
 0x1cd   : > { %1719 = vrot.lane.b32.xlu1 %v737_v8, %s2850_s23  ;;  %v1950_v24 = vsel %vm1935_vm7, %v1917_v55, %v1448_v51 }
 0x1ce   : > { %v1450_v11 = vpop.permute.xlu0 %1449 }
 0x1cf   : > { %v1322_v33 = vpop.permute.xlu1 %1321 }
 0x1d0   : > { %1467 = vrot.lane.b32.xlu0 %v675_v9, %s2848_s16  ;;  %v1918_v48 = vsel %vm1902_vm6, %v1885_v58, %v1322_v33  ;;  %v741_v58 = vld [vmem:[#allocation2 + $0x1e9] sm:$0xff] }
 0x1d1   : > { %1339 = vrot.lane.b32.xlu1 %v737_v8, %s2847_s11  ;;  %v1951_v23 = vsel %vm1935_vm7, %v1918_v48, %v1450_v11  ;;  %v4367_v11 = vld [vmem:[#allocation36_spill] sm:$0xff] }
 0x1d2   : > { %v1070_v42 = vpop.permute.xlu0 %1069 }
 0x1d3   : > { %v1068_v47 = vpop.permute.xlu1 %1067 }
 0x1d4   : > { %1469 = vrot.lane.b32.xlu0 %v676_v38, %s2848_s16 }
 0x1d5   : > { %1341 = vrot.lane.b32.xlu1 %v738_v16, %s2847_s11  ;;  %v1788_v16 = vsel %vm378_vm0, %v3565_v12, %v4365_v60 }
 0x1d6   : > { %v1578_v54 = vpop.permute.xlu0 %1577  ;;  %v1821_v33 = vsel %vm1803_vm3, %v1788_v16, %v4367_v11 }
 0x1d7   : > { %v1576_v3 = vpop.permute.xlu1 %1575  ;;  %v1984_v36 = vsel %vm1968_vm8, %v1951_v23, %v1578_v54 }
 0x1d8   : > { %1089 = vrot.lane.b32.xlu0 %v676_v38, %s2845_s30  ;;  %v1983_v26 = vsel %vm1968_vm8, %v1950_v24, %v1576_v3  ;;  %v1854_v38 = vsel %vm1836_vm4, %v1821_v33, %v1070_v42  ;;  %v4368_v24 = vld [vmem:[#allocation8_spill] sm:$0xff]  ;;  %v744_v33 = vld [vmem:[#allocation2 + $0x211] sm:$0xff] }
 0x1d9   : > { %1087 = vrot.lane.b32.xlu1 %v675_v9, %s2845_s30  ;;  %v1820_v9 = vsel %vm1803_vm3, %v1787_v30, %v4366_v6 }
 0x1da   : > { %v1198_v45 = vpop.permute.xlu0 %1197  ;;  %v1853_v50 = vsel %vm1836_vm4, %v1820_v9, %v1068_v47 }
 0x1db   : > { %v1196_v62 = vpop.permute.xlu1 %1195  ;;  %v1887_v22 = vsel %vm1869_vm5, %v1854_v38, %v1198_v45  ;;  %v680_v45 = vld [vmem:[#allocation2 + $0x20f] sm:$0xff] }
 0x1dc   : > { %1597 = vrot.lane.b32.xlu0 %v708_v10, %s2849_s22  ;;  %v1886_v12 = vsel %vm1869_vm5, %v1853_v50, %v1196_v62  ;;  %v743_v38 = vld [vmem:[#allocation2 + $0x209] sm:$0xff] }
 0x1dd   : > { %1595 = vrot.lane.b32.xlu1 %v707_v63, %s2849_s22 }
 0x1de   : > { %v1706_v52 = vpop.permute.xlu0 %1705 }
 0x1df   : > { %v1704_v2 = vpop.permute.xlu1 %1703  ;;  %v2017_v19 = vsel %vm2001_vm9, %v1984_v36, %v1706_v52  ;;  %v1789_v36 = vsel %vm378_vm0, %v3610_v39, %v4368_v24 }
 0x1e0   : > { %v2016_v20 = vsel %vm2001_vm9, %v1983_v26, %v1704_v2  ;;  %1217 = vrot.lane.b32.xlu0 %v708_v10, %s2846_s6  ;;  %v4369_v26 = vld [vmem:[#allocation15_spill] sm:$0xff] }
 0x1e1   : > { %1215 = vrot.lane.b32.xlu1 %v707_v63, %s2846_s6  ;;  %2774 = vmatprep.mubr.msk.f32.mxu0 %vm2039_vm10, %v2016_v20  ;;  %v679_v63 = vld [vmem:[#allocation2 + $0x207] sm:$0xff]  ;;  %v1790_v52 = vsel %vm378_vm0, %v3628_v49, %v4369_v26  ;;  %v4370_v20 = vld [vmem:[#allocation33_spill] sm:$0xff] }
 0x1e2   : > { %2775 = vmatmul.mubr.msk.f32.gmra.mrb[14].mxu0 %vm2039_vm10, %v2017_v19  ;;  %v1452_v4 = vpop.permute.xlu0 %1451 }
 0x1e3   : > { %v1324_v14 = vpop.permute.xlu1 %1323 }
 0x1e4   : > { %1725 = vrot.lane.b32.xlu0 %v740_v31, %s2850_s23  ;;  %v1919_v40 = vsel %vm1902_vm6, %v1886_v12, %v1324_v14  ;;  %v681_v12 = vld [vmem:[#allocation2 + $0x227] sm:$0xff] }
 0x1e5   : > { %1723 = vrot.lane.b32.xlu1 %v739_v7, %s2850_s23  ;;  %v1952_v47 = vsel %vm1935_vm7, %v1919_v40, %v1452_v4  ;;  %v713_v40 = vld [vmem:[#allocation2 + $0x228] sm:$0xff] }
 0x1e6   : > { %v1454_v41 = vpop.permute.xlu0 %1453 }
 0x1e7   : > { %v1326_v32 = vpop.permute.xlu1 %1325 }
 0x1e8   : > { %1471 = vrot.lane.b32.xlu0 %v677_v15, %s2848_s16  ;;  %v1920_v27 = vsel %vm1902_vm6, %v1887_v22, %v1326_v32  ;;  %v711_v32 = vld [vmem:[#allocation2 + $0x208] sm:$0xff] }
 0x1e9   : > { %1343 = vrot.lane.b32.xlu1 %v739_v7, %s2847_s11  ;;  %v1953_v42 = vsel %vm1935_vm7, %v1920_v27, %v1454_v41  ;;  %v4371_v7 = vld [vmem:[#allocation38_spill] sm:$0xff]  ;;  %v712_v41 = vld [vmem:[#allocation2 + $0x210] sm:$0xff] }
 0x1ea   : > { %v1074_v28 = vpop.permute.xlu0 %1073  ;;  %v1823_v4 = vsel %vm1803_vm3, %v1790_v52, %v4371_v7 }
 0x1eb   : > { %v1072_v18 = vpop.permute.xlu1 %1071  ;;  %v1856_v14 = vsel %vm1836_vm4, %v1823_v4, %v1074_v28 }
 0x1ec   : > { %1473 = vrot.lane.b32.xlu0 %v678_v25, %s2848_s16 }
 0x1ed   : > { %1345 = vrot.lane.b32.xlu1 %v740_v31, %s2847_s11  ;;  %v1822_v31 = vsel %vm1803_vm3, %v1789_v36, %v4370_v20 }
 0x1ee   : > { %v1582_v8 = vpop.permute.xlu0 %1581 }
 0x1ef   : > { %v1580_v51 = vpop.permute.xlu1 %1579  ;;  %v1986_v3 = vsel %vm1968_vm8, %v1953_v42, %v1582_v8  ;;  %v682_v42 = vld [vmem:[#allocation2 + $0x22f] sm:$0xff] }
 0x1f0   : > { %1093 = vrot.lane.b32.xlu0 %v678_v25, %s2845_s30  ;;  %v1985_v13 = vsel %vm1968_vm8, %v1952_v47, %v1580_v51  ;;  %v4372_v47 = vld [vmem:[#allocation18_spill] sm:$0xff] }
 0x1f1   : > { %1091 = vrot.lane.b32.xlu1 %v677_v15, %s2845_s30  ;;  %v1855_v15 = vsel %vm1836_vm4, %v1822_v31, %v1072_v18 }
 0x1f2   : > { %v1202_v61 = vpop.permute.xlu0 %1201 }
 0x1f3   : > { %v1200_v54 = vpop.permute.xlu1 %1199  ;;  %v1889_v39 = vsel %vm1869_vm5, %v1856_v14, %v1202_v61  ;;  %v746_v14 = vld [vmem:[#allocation2 + $0x231] sm:$0xff] }
 0x1f4   : > { %1601 = vrot.lane.b32.xlu0 %v710_v37, %s2849_s22  ;;  %v1888_v49 = vsel %vm1869_vm5, %v1855_v15, %v1200_v54  ;;  %v745_v54 = vld [vmem:[#allocation2 + $0x229] sm:$0xff] }
 0x1f5   : > { %1599 = vrot.lane.b32.xlu1 %v709_v34, %s2849_s22 }
 0x1f6   : > { %v1710_v35 = vpop.permute.xlu0 %1709 }
 0x1f7   : > { %v1708_v17 = vpop.permute.xlu1 %1707  ;;  %v2019_v56 = vsel %vm2001_vm9, %v1986_v3, %v1710_v35  ;;  %v1792_v3 = vsel %vm378_vm0, %v3682_v0, %v4372_v47  ;;  %v4379_v47 = vld [vmem:[#allocation37_spill] sm:$0xff] }
 0x1f8   : > { %v2018_v57 = vsel %vm2001_vm9, %v1985_v13, %v1708_v17  ;;  %1221 = vrot.lane.b32.xlu0 %v710_v37, %s2846_s6  ;;  %v4373_v17 = vld [vmem:[#allocation11_spill] sm:$0xff] }
 0x1f9   : > { %1219 = vrot.lane.b32.xlu1 %v709_v34, %s2846_s6  ;;  %2777 = vmatprep.mubr.msk.f32.mxu1 %vm2039_vm10, %v2018_v57  ;;  %v4374_v57 = vld [vmem:[#allocation40_spill] sm:$0xff] }
 0x1fa   : > { %2778 = vmatmul.mubr.msk.f32.vlgmr.msra.gmra.mrb[0].mxu1 %vm2039_vm10, %v2019_v56  ;;  %v1456_v43 = vpop.permute.xlu0 %1455  ;;  %v1791_v56 = vsel %vm378_vm0, %v3672_v1, %v4373_v17 }
 0x1fb   : > { %v1328_v10 = vpop.permute.xlu1 %1327 }
 0x1fc   : > { %1729 = vrot.lane.b32.xlu0 %v742_v44, %s2850_s23  ;;  %v1921_v25 = vsel %vm1902_vm6, %v1888_v49, %v1328_v10 }
 0x1fd   : > { %1727 = vrot.lane.b32.xlu1 %v741_v58, %s2850_s23  ;;  %v1954_v18 = vsel %vm1935_vm7, %v1921_v25, %v1456_v43 }
 0x1fe   : > { %v1458_v55 = vpop.permute.xlu0 %1457 }
 0x1ff   : > { %v1330_v48 = vpop.permute.xlu1 %1329 }
 0x200   : > { %1475 = vrot.lane.b32.xlu0 %v679_v63, %s2848_s16  ;;  %v1922_v29 = vsel %vm1902_vm6, %v1889_v39, %v1330_v48 }
 0x201   : > { %1347 = vrot.lane.b32.xlu1 %v741_v58, %s2847_s11  ;;  %v1955_v28 = vsel %vm1935_vm7, %v1922_v29, %v1458_v55  ;;  %v4375_v58 = vld [vmem:[#allocation35_spill] sm:$0xff]  ;;  %v714_v55 = vld [vmem:[#allocation2 + $0x230] sm:$0xff] }
 0x202   : > { %v1078_v62 = vpop.permute.xlu0 %1077  ;;  %v1824_v43 = vsel %vm1803_vm3, %v1791_v56, %v4375_v58 }
 0x203   : > { %v3945_v23 = vpop.permute.xlu1 %1075 }
 0x204   : > { %1477 = vrot.lane.b32.xlu0 %v680_v45, %s2848_s16  ;;  %v1857_v1 = vsel %vm1836_vm4, %v1824_v43, %v3945_v23 }
 0x205   : > { %1349 = vrot.lane.b32.xlu1 %v742_v44, %s2847_s11  ;;  %v1825_v44 = vsel %vm1803_vm3, %v1792_v3, %v4374_v57 }
 0x206   : > { %v1586_v2 = vpop.permute.xlu0 %1585  ;;  %v1858_v0 = vsel %vm1836_vm4, %v1825_v44, %v1078_v62 }
 0x207   : > { %v1584_v19 = vpop.permute.xlu1 %1583  ;;  %v1988_v16 = vsel %vm1968_vm8, %v1955_v28, %v1586_v2 }
 0x208   : > { %1097 = vrot.lane.b32.xlu0 %v680_v45, %s2845_s30  ;;  %v1987_v8 = vsel %vm1968_vm8, %v1954_v18, %v1584_v19 }
 0x209   : > { %1095 = vrot.lane.b32.xlu1 %v679_v63, %s2845_s30  ;;  %s4002_s30 = scalar_lea.vmem %s4290_s4, %s2704_s20  ;;  %s2666_s20 = sshll.u32 %s4397_s19, 1 }
 0x20a   : > { %v1206_v30 = vpop.permute.xlu0 %1205  ;;  %s235_s8 = scalar_lea.vmem %s4291_s5, %s2666_s20 }
 0x20b   : > { %v1204_v60 = vpop.permute.xlu1 %1203  ;;  %v1891_v10 = vsel %vm1869_vm5, %v1858_v0, %v1206_v30 }
 0x20c   : > { %1605 = vrot.lane.b32.xlu0 %v712_v41, %s2849_s22  ;;  %v1890_v48 = vsel %vm1869_vm5, %v1857_v1, %v1204_v60 }
 0x20d   : > { %1603 = vrot.lane.b32.xlu1 %v711_v32, %s2849_s22 }
 0x20e   : > { %v1714_v51 = vpop.permute.xlu0 %1713 }
 0x20f   : > { %v1712_v6 = vpop.permute.xlu1 %1711  ;;  %v2021_v9 = vsel %vm2001_vm9, %v1988_v16, %v1714_v51 }
 0x210   : > { %v2020_v11 = vsel %vm2001_vm9, %v1987_v8, %v1712_v6  ;;  %1225 = vrot.lane.b32.xlu0 %v712_v41, %s2846_s6 }
 0x211   : > { %1223 = vrot.lane.b32.xlu1 %v711_v32, %s2846_s6  ;;  %2780 = vmatprep.mubr.msk.f32.mxu1 %vm2039_vm10, %v2020_v11 }
 0x212   : > { %2781 = vmatmul.mubr.msk.f32.gmra.mrb[2].mxu1 %vm2039_vm10, %v2021_v9  ;;  %v1460_v50 = vpop.permute.xlu0 %1459  ;;  %v4376_v9 = vld [vmem:[#allocation14_spill] sm:$0xff] }
 0x213   : > { %v1332_v22 = vpop.permute.xlu1 %1331  ;;  %v1793_v11 = vsel %vm378_vm0, %v3733_v46, %v4376_v9 }
 0x214   : > { %1733 = vrot.lane.b32.xlu0 %v744_v33, %s2850_s23  ;;  %v1923_v52 = vsel %vm1902_vm6, %v1890_v48, %v1332_v22  ;;  %v1826_v46 = vsel %vm1803_vm3, %v1793_v11, %v4379_v47 }
 0x215   : > { %1731 = vrot.lane.b32.xlu1 %v743_v38, %s2850_s23  ;;  %v1956_v39 = vsel %vm1935_vm7, %v1923_v52, %v1460_v50 }
 0x216   : > { %v1462_v37 = vpop.permute.xlu0 %1461 }
 0x217   : > { %v1334_v34 = vpop.permute.xlu1 %1333 }
 0x218   : > { %1479 = vrot.lane.b32.xlu0 %v681_v12, %s2848_s16  ;;  %v1924_v45 = vsel %vm1902_vm6, %v1891_v10, %v1334_v34  ;;  %v4378_v12 = vld [vmem:[#allocation42_spill] sm:$0xff] }
 0x219   : > { %1351 = vrot.lane.b32.xlu1 %v743_v38, %s2847_s11  ;;  %v1957_v7 = vsel %vm1935_vm7, %v1924_v45, %v1462_v37 }
 0x21a   : > { %v3983_v27 = vpop.permute.xlu0 %1081 }
 0x21b   : > { %v3985_v61 = vpop.permute.xlu1 %1079 }
 0x21c   : > { %1607 = vrot.lane.b32.xlu0 %v713_v40, %s2849_s22 }
 0x21d   : > { %1353 = vrot.lane.b32.xlu1 %v744_v33, %s2847_s11  ;;  %v4377_v33 = vld [vmem:[#allocation20_spill] sm:$0xff] }
 0x21e   : > { %v1590_v13 = vpop.permute.xlu0 %1589  ;;  %v1794_v38 = vsel %vm378_vm0, %v3742_v21, %v4377_v33 }
 0x21f   : > { %v1588_v35 = vpop.permute.xlu1 %1587  ;;  %v1990_v15 = vsel %vm1968_vm8, %v1957_v7, %v1590_v13  ;;  %v1827_v37 = vsel %vm1803_vm3, %v1794_v38, %v4378_v12  ;;  %v1859_v13 = vsel %vm1836_vm4, %v1826_v46, %v3985_v61  ;;  %v4383_v38 = vld [vmem:[#allocation39_spill] sm:$0xff] }
 0x220   : > { %1735 = vrot.lane.b32.xlu0 %v745_v54, %s2850_s23  ;;  %v1989_v32 = vsel %vm1968_vm8, %v1956_v39, %v1588_v35  ;;  %v1860_v21 = vsel %vm1836_vm4, %v1827_v37, %v3983_v27 }
 0x221   : > { %1481 = vrot.lane.b32.xlu1 %v682_v42, %s2848_s16  ;;  %v2755_v63 = vpop.f32.mrb[0].mxu0 }
 0x222   : > { %v2366_v24 = vsel %vm378_vm0, %v2755_v63, 0.0  ;;  %v2435_v36 = vmul.f32 %v2755_v63, %v2755_v63  ;;  %2540 = vst.msk [vmem:[%s4002_s30 + $0x8] sm:$0xff] %vm378_vm0, %v2755_v63  ;;  %v2206_v62 = vpop.f32.mrb[1].mxu0  ;;  %v1210_v26 = vpop.permute.xlu0 %1209 }
 0x223   : > { %v2365_v2 = vsel %vm378_vm0, %v2206_v62, 0.0  ;;  %v2434_v23 = vmul.f32 %v2206_v62, %v2206_v62  ;;  %2539 = vst.msk [vmem:[%s4002_s30] sm:$0xff] %vm378_vm0, %v2206_v62  ;;  %v1208_v19 = vpop.permute.xlu1 %1207  ;;  %v1893_v35 = vsel %vm1869_vm5, %v1860_v21, %v1210_v26 }
 0x224   : > { %v2467_v20 = vsel %vm378_vm0, %v2435_v36, 0.0  ;;  %v2367_v31 = vadd.f32 %v2366_v24, %v2365_v2  ;;  %v1892_v57 = vsel %vm1869_vm5, %v1859_v13, %v1208_v19 }
 0x225   : > { %1609 = vrot.lane.b32.xlu1 %v714_v55, %s2849_s22  ;;  %v2466_v4 = vsel %vm378_vm0, %v2434_v23, 0.0 }
 0x226   : > { %v2468_v49 = vadd.f32 %v2467_v20, %v2466_v4  ;;  %v1718_v41 = vpop.permute.xlu0 %1717 }
 0x227   : > { %v2023_v25 = vsel %vm2001_vm9, %v1990_v15, %v1718_v41  ;;  %v1716_v29 = vpop.permute.xlu1 %1715 }
 0x228   : > { %v2022_v30 = vsel %vm2001_vm9, %v1989_v32, %v1716_v29 }
 0x229   : > { %1737 = vrot.lane.b32.xlu1 %v746_v14, %s2850_s23  ;;  %2783 = vmatprep.mubr.msk.f32.mxu1 %vm2039_vm10, %v2022_v30 }
 0x22a   : > { %2784 = vmatmul.mubr.msk.f32.gmra.mrb[4].mxu1 %vm2039_vm10, %v2023_v25  ;;  %v1464_v60 = vpop.permute.xlu0 %1463  ;;  %v4380_v25 = vld [vmem:[#allocation22_spill] sm:$0xff] }
 0x22b   : > { %v1336_v28 = vpop.permute.xlu1 %1335  ;;  %v1796_v29 = vsel %vm378_vm0, %v3788_v5, %v4380_v25 }
 0x22c   : > { %v1925_v1 = vsel %vm1902_vm6, %v1892_v57, %v1336_v28 }
 0x22d   : > { %v1958_v48 = vsel %vm1935_vm7, %v1925_v1, %v1464_v60 }
 0x22e   : > { %v1466_v18 = vpop.permute.xlu0 %1465 }
 0x22f   : > { %v1338_v16 = vpop.permute.xlu1 %1337 }
 0x230   : > { %v1926_v44 = vsel %vm1902_vm6, %v1893_v35, %v1338_v16 }
 0x231   : > { %v1959_v61 = vsel %vm1935_vm7, %v1926_v44, %v1466_v18  ;;  %v4381_v18 = vld [vmem:[#allocation17_spill] sm:$0xff] }
 0x232   : > { %v4033_v8 = vpop.permute.xlu0 %1085  ;;  %v1795_v16 = vsel %vm378_vm0, %v3783_v59, %v4381_v18 }
 0x233   : > { %v4035_v51 = vpop.permute.xlu1 %1083 }
 0x235   : > { %v2758_v6 = vpop.f32.mrb[2].mxu0 }
 0x236   : > { %2542 = vst.msk [vmem:[%s4002_s30 + $0x18] sm:$0xff] %vm378_vm0, %v2758_v6  ;;  %v2216_v50 = vpop.f32.mrb[3].mxu0  ;;  %v1594_v22 = vpop.permute.xlu0 %1593  ;;  %v2437_v34 = vmul.f32 %v2758_v6, %v2758_v6  ;;  %v2370_v17 = vsel %vm378_vm0, %v2758_v6, 0.0  ;;  %v4382_v6 = vld [vmem:[#allocation44_spill] sm:$0xff] }
 0x237   : > { %v2368_v40 = vsel %vm378_vm0, %v2216_v50, 0.0  ;;  %v2436_v54 = vmul.f32 %v2216_v50, %v2216_v50  ;;  %2541 = vst.msk [vmem:[%s4002_s30 + $0x10] sm:$0xff] %vm378_vm0, %v2216_v50  ;;  %v1592_v42 = vpop.permute.xlu1 %1591  ;;  %v1992_v55 = vsel %vm1968_vm8, %v1959_v61, %v1594_v22  ;;  %v1829_v9 = vsel %vm1803_vm3, %v1796_v29, %v4382_v6 }
 0x238   : > { %v2369_v3 = vadd.f32 %v2368_v40, %v2367_v31  ;;  %v2471_v27 = vsel %vm378_vm0, %v2437_v34, 0.0  ;;  %v1991_v24 = vsel %vm1968_vm8, %v1958_v48, %v1592_v42  ;;  %v1828_v50 = vsel %vm1803_vm3, %v1795_v16, %v4383_v38 }
 0x239   : > { %v2469_v56 = vsel %vm378_vm0, %v2436_v54, 0.0  ;;  %v1862_v22 = vsel %vm1836_vm4, %v1829_v9, %v4033_v8  ;;  %v1861_v12 = vsel %vm1836_vm4, %v1828_v50, %v4035_v51 }
 0x23a   : > { %v2470_v58 = vadd.f32 %v2469_v56, %v2468_v49  ;;  %v1214_v43 = vpop.permute.xlu0 %1213  ;;  %v2371_v0 = vadd.f32 %v2370_v17, %v2369_v3 }
 0x23b   : > { %v1212_v10 = vpop.permute.xlu1 %1211  ;;  %v1895_v37 = vsel %vm1869_vm5, %v1862_v22, %v1214_v43 }
 0x23c   : > { %v2472_v63 = vadd.f32 %v2471_v27, %v2470_v58  ;;  %v1894_v59 = vsel %vm1869_vm5, %v1861_v12, %v1212_v10 }
 0x23e   : > { %v1722_v45 = vpop.permute.xlu0 %1721 }
 0x23f   : > { %v2025_v36 = vsel %vm2001_vm9, %v1992_v55, %v1722_v45  ;;  %v1720_v62 = vpop.permute.xlu1 %1719 }
 0x240   : > { %v2024_v26 = vsel %vm2001_vm9, %v1991_v24, %v1720_v62  ;;  %v484_v62 = vld [vmem:[#allocation2 + $0x1a7] sm:$0xff] }
 0x241   : > { %2786 = vmatprep.mubr.msk.f32.mxu1 %vm2039_vm10, %v2024_v26 }
 0x242   : > { %2787 = vmatmul.mubr.msk.f32.gmra.mrb[6].mxu1 %vm2039_vm10, %v2025_v36  ;;  %v1468_v52 = vpop.permute.xlu0 %1467 }
 0x243   : > { %v1340_v2 = vpop.permute.xlu1 %1339 }
 0x244   : > { %v1927_v54 = vsel %vm1902_vm6, %v1894_v59, %v1340_v2 }
 0x245   : > { %v1960_v8 = vsel %vm1935_vm7, %v1927_v54, %v1468_v52  ;;  %v4384_v52 = vld [vmem:[#allocation24_spill] sm:$0xff] }
 0x246   : > { %v1470_v23 = vpop.permute.xlu0 %1469  ;;  %v1798_v2 = vsel %vm378_vm0, %v3831_v53, %v4384_v52 }
 0x247   : > { %v1342_v19 = vpop.permute.xlu1 %1341 }
 0x248   : > { %v1928_v34 = vsel %vm1902_vm6, %v1895_v37, %v1342_v19  ;;  %v4385_v19 = vld [vmem:[#allocation19_spill] sm:$0xff] }
 0x249   : > { %v2761_v20 = vpop.f32.mrb[4].mxu0  ;;  %v1961_v47 = vsel %vm1935_vm7, %v1928_v34, %v1470_v23 }
 0x24a   : > { %2544 = vst.msk [vmem:[%s4002_s30 + $0x28] sm:$0xff] %vm378_vm0, %v2761_v20  ;;  %v2226_v31 = vpop.f32.mrb[5].mxu0  ;;  %v4073_v7 = vpop.permute.xlu0 %1089  ;;  %v2439_v4 = vmul.f32 %v2761_v20, %v2761_v20  ;;  %v2374_v41 = vsel %vm378_vm0, %v2761_v20, 0.0  ;;  %v1797_v20 = vsel %vm378_vm0, %v484_v62, %v4385_v19 }
 0x24b   : > { %v2372_v14 = vsel %vm378_vm0, %v2226_v31, 0.0  ;;  %v2438_v15 = vmul.f32 %v2226_v31, %v2226_v31  ;;  %2543 = vst.msk [vmem:[%s4002_s30 + $0x20] sm:$0xff] %vm378_vm0, %v2226_v31  ;;  %v1088_v39 = vpop.permute.xlu1 %1087  ;;  %v4386_v31 = vld [vmem:[#allocation46_spill] sm:$0xff] }
 0x24c   : > { %v2373_v49 = vadd.f32 %v2372_v14, %v2371_v0  ;;  %v2475_v11 = vsel %vm378_vm0, %v2439_v4, 0.0  ;;  %v1831_v4 = vsel %vm1803_vm3, %v1798_v2, %v4386_v31 }
 0x24d   : > { %v2473_v32 = vsel %vm378_vm0, %v2438_v15, 0.0  ;;  %v4387_v15 = vld [vmem:[#allocation41_spill] sm:$0xff] }
 0x24e   : > { %v2474_v30 = vadd.f32 %v2473_v32, %v2472_v63  ;;  %v1598_v60 = vpop.permute.xlu0 %1597  ;;  %v2375_v28 = vadd.f32 %v2374_v41, %v2373_v49  ;;  %v1830_v49 = vsel %vm1803_vm3, %v1797_v20, %v4387_v15  ;;  %v1864_v41 = vsel %vm1836_vm4, %v1831_v4, %v4073_v7 }
 0x24f   : > { %v1596_v33 = vpop.permute.xlu1 %1595  ;;  %v1994_v46 = vsel %vm1968_vm8, %v1961_v47, %v1598_v60  ;;  %v1863_v32 = vsel %vm1836_vm4, %v1830_v49, %v1088_v39 }
 0x250   : > { %v2476_v5 = vadd.f32 %v2475_v11, %v2474_v30  ;;  %v1993_v51 = vsel %vm1968_vm8, %v1960_v8, %v1596_v33 }
 0x252   : > { %v1218_v40 = vpop.permute.xlu0 %1217 }
 0x253   : > { %v1216_v42 = vpop.permute.xlu1 %1215  ;;  %v1897_v25 = vsel %vm1869_vm5, %v1864_v41, %v1218_v40 }
 0x254   : > { %v1896_v53 = vsel %vm1869_vm5, %v1863_v32, %v1216_v42 }
 0x256   : > { %v1726_v21 = vpop.permute.xlu0 %1725 }
 0x257   : > { %v2027_v3 = vsel %vm2001_vm9, %v1994_v46, %v1726_v21  ;;  %v1724_v13 = vpop.permute.xlu1 %1723 }
 0x258   : > { %v2026_v35 = vsel %vm2001_vm9, %v1993_v51, %v1724_v13  ;;  %v486_v13 = vld [vmem:[#allocation2 + $0x1c7] sm:$0xff] }
 0x259   : > { %2789 = vmatprep.mubr.msk.f32.mxu1 %vm2039_vm10, %v2026_v35  ;;  %v487_v35 = vld [vmem:[#allocation2 + $0x1cf] sm:$0xff] }
 0x25a   : > { %2790 = vmatmul.mubr.msk.f32.gmra.mrb[8].mxu1 %vm2039_vm10, %v2027_v3  ;;  %v1472_v17 = vpop.permute.xlu0 %1471 }
 0x25b   : > { %v1344_v56 = vpop.permute.xlu1 %1343 }
 0x25c   : > { %v1929_v60 = vsel %vm1902_vm6, %v1896_v53, %v1344_v56  ;;  %v4388_v56 = vld [vmem:[#allocation21_spill] sm:$0xff] }
 0x25d   : > { %v2764_v57 = vpop.f32.mrb[6].mxu0  ;;  %v1962_v7 = vsel %vm1935_vm7, %v1929_v60, %v1472_v17 }
 0x25e   : > { %2546 = vst.msk [vmem:[%s4002_s30 + $0x38] sm:$0xff] %vm378_vm0, %v2764_v57  ;;  %v2236_v44 = vpop.f32.mrb[7].mxu0  ;;  %v1474_v58 = vpop.permute.xlu0 %1473  ;;  %v2441_v43 = vmul.f32 %v2764_v57, %v2764_v57  ;;  %v2378_v63 = vsel %vm378_vm0, %v2764_v57, 0.0  ;;  %v1799_v57 = vsel %vm378_vm0, %v486_v13, %v4388_v56 }
 0x25f   : > { %v2376_v0 = vsel %vm378_vm0, %v2236_v44, 0.0  ;;  %v2440_v1 = vmul.f32 %v2236_v44, %v2236_v44  ;;  %2545 = vst.msk [vmem:[%s4002_s30 + $0x30] sm:$0xff] %vm378_vm0, %v2236_v44  ;;  %v1346_v27 = vpop.permute.xlu1 %1345  ;;  %v4389_v44 = vld [vmem:[#allocation25_spill] sm:$0xff] }
 0x260   : > { %v2377_v10 = vadd.f32 %v2376_v0, %v2375_v28  ;;  %v2479_v24 = vsel %vm378_vm0, %v2441_v43, 0.0  ;;  %v1930_v29 = vsel %vm1902_vm6, %v1897_v25, %v1346_v27  ;;  %v4390_v0 = vld [vmem:[#allocation43_spill] sm:$0xff] }
 0x261   : > { %v2477_v61 = vsel %vm378_vm0, %v2440_v1, 0.0  ;;  %v1963_v18 = vsel %vm1935_vm7, %v1930_v29, %v1474_v58  ;;  %v1800_v58 = vsel %vm378_vm0, %v487_v35, %v4389_v44  ;;  %v1832_v1 = vsel %vm1803_vm3, %v1799_v57, %v4390_v0  ;;  %v4391_v27 = vld [vmem:[#allocation47_spill] sm:$0xff] }
 0x262   : > { %v2478_v55 = vadd.f32 %v2477_v61, %v2476_v5  ;;  %v1094_v48 = vpop.permute.xlu0 %1093  ;;  %v2379_v45 = vadd.f32 %v2378_v63, %v2377_v10  ;;  %v1833_v10 = vsel %vm1803_vm3, %v1800_v58, %v4391_v27 }
 0x263   : > { %v1092_v36 = vpop.permute.xlu1 %1091  ;;  %v1866_v61 = vsel %vm1836_vm4, %v1833_v10, %v1094_v48 }
 0x264   : > { %v2480_v26 = vadd.f32 %v2479_v24, %v2478_v55  ;;  %v1865_v55 = vsel %vm1836_vm4, %v1832_v1, %v1092_v36 }
 0x266   : > { %v1602_v23 = vpop.permute.xlu0 %1601 }
 0x267   : > { %v1600_v14 = vpop.permute.xlu1 %1599  ;;  %v1996_v16 = vsel %vm1968_vm8, %v1963_v18, %v1602_v23 }
 0x268   : > { %v1995_v39 = vsel %vm1968_vm8, %v1962_v7, %v1600_v14  ;;  %v488_v14 = vld [vmem:[#allocation2 + $0x1e7] sm:$0xff] }
 0x26a   : > { %v1222_v30 = vpop.permute.xlu0 %1221 }
 0x26b   : > { %v1220_v28 = vpop.permute.xlu1 %1219 }
 0x26c   : > { %v1898_v24 = vsel %vm1869_vm5, %v1865_v55, %v1220_v28  ;;  %v4392_v28 = vld [vmem:[#allocation23_spill] sm:$0xff] }
 0x26d   : > { %v1801_v18 = vsel %vm378_vm0, %v488_v14, %v4392_v28 }
 0x26e   : > { %v1730_v6 = vpop.permute.xlu0 %1729 }
 0x26f   : > { %v2029_v9 = vsel %vm2001_vm9, %v1996_v16, %v1730_v6  ;;  %v1728_v11 = vpop.permute.xlu1 %1727 }
 0x270   : > { %v2028_v33 = vsel %vm2001_vm9, %v1995_v39, %v1728_v11  ;;  %v4393_v39 = vld [vmem:[#allocation45_spill] sm:$0xff] }
 0x271   : > { %v2767_v38 = vpop.f32.mrb[8].mxu0  ;;  %2792 = vmatprep.mubr.msk.f32.mxu1 %vm2039_vm10, %v2028_v33 }
 0x272   : > { %2548 = vst.msk [vmem:[%s4002_s30 + $0x48] sm:$0xff] %vm378_vm0, %v2767_v38  ;;  %v2246_v50 = vpop.f32.mrb[9].mxu0  ;;  %2793 = vmatmul.mubr.msk.f32.gmra.mrb[10].mxu1 %vm2039_vm10, %v2029_v9  ;;  %v1476_v22 = vpop.permute.xlu0 %1475  ;;  %v2443_v5 = vmul.f32 %v2767_v38, %v2767_v38  ;;  %v2382_v40 = vsel %vm378_vm0, %v2767_v38, 0.0  ;;  %v1834_v9 = vsel %vm1803_vm3, %v1801_v18, %v4393_v39 }
 0x273   : > { %v2380_v12 = vsel %vm378_vm0, %v2246_v50, 0.0  ;;  %v2442_v37 = vmul.f32 %v2246_v50, %v2246_v50  ;;  %2547 = vst.msk [vmem:[%s4002_s30 + $0x40] sm:$0xff] %vm378_vm0, %v2246_v50  ;;  %v1348_v59 = vpop.permute.xlu1 %1347 }
 0x274   : > { %v2381_v34 = vadd.f32 %v2380_v12, %v2379_v45  ;;  %v2483_v8 = vsel %vm378_vm0, %v2443_v5, 0.0  ;;  %v1899_v45 = vsel %vm1869_vm5, %v1866_v61, %v1222_v30  ;;  %v1931_v62 = vsel %vm1902_vm6, %v1898_v24, %v1348_v59 }
 0x275   : > { %v2481_v54 = vsel %vm378_vm0, %v2442_v37, 0.0  ;;  %v1964_v19 = vsel %vm1935_vm7, %v1931_v62, %v1476_v22 }
 0x276   : > { %v2482_v42 = vadd.f32 %v2481_v54, %v2480_v26  ;;  %v1478_v47 = vpop.permute.xlu0 %1477  ;;  %v2383_v46 = vadd.f32 %v2382_v40, %v2381_v34  ;;  %v489_v34 = vld [vmem:[#allocation2 + $0x1ef] sm:$0xff] }
 0x277   : > { %v1350_v21 = vpop.permute.xlu1 %1349 }
 0x278   : > { %v2484_v51 = vadd.f32 %v2483_v8, %v2482_v42  ;;  %v1932_v26 = vsel %vm1902_vm6, %v1899_v45, %v1350_v21  ;;  %v4395_v21 = vld [vmem:[#allocation48_spill] sm:$0xff] }
 0x279   : > { %v1965_v23 = vsel %vm1935_vm7, %v1932_v26, %v1478_v47 }
 0x27a   : > { %v1098_v3 = vpop.permute.xlu0 %1097 }
 0x27b   : > { %v1096_v17 = vpop.permute.xlu1 %1095 }
 0x27c   : > { %v1867_v38 = vsel %vm1836_vm4, %v1834_v9, %v1096_v17 }
 0x27e   : > { %v1606_v43 = vpop.permute.xlu0 %1605 }
 0x27f   : > { %v1604_v63 = vpop.permute.xlu1 %1603  ;;  %v1998_v48 = vsel %vm1968_vm8, %v1965_v23, %v1606_v43 }
 0x280   : > { %v1997_v36 = vsel %vm1968_vm8, %v1964_v19, %v1604_v63 }
 0x282   : > { %v1226_v52 = vpop.permute.xlu0 %1225 }
 0x283   : > { %v1224_v2 = vpop.permute.xlu1 %1223 }
 0x284   : > { %v1900_v22 = vsel %vm1869_vm5, %v1867_v38, %v1224_v2 }
 0x285   : > { %v2770_v20 = vpop.f32.mrb[10].mxu0 }
 0x286   : > { %2550 = vst.msk [vmem:[%s4002_s30 + $0x58] sm:$0xff] %vm378_vm0, %v2770_v20  ;;  %v2256_v31 = vpop.f32.mrb[11].mxu0  ;;  %v1734_v4 = vpop.permute.xlu0 %1733  ;;  %v2445_v15 = vmul.f32 %v2770_v20, %v2770_v20  ;;  %v2386_v30 = vsel %vm378_vm0, %v2770_v20, 0.0 }
 0x287   : > { %v2384_v49 = vsel %vm378_vm0, %v2256_v31, 0.0  ;;  %v2444_v41 = vmul.f32 %v2256_v31, %v2256_v31  ;;  %2549 = vst.msk [vmem:[%s4002_s30 + $0x50] sm:$0xff] %vm378_vm0, %v2256_v31  ;;  %v2031_v32 = vsel %vm2001_vm9, %v1998_v48, %v1734_v4  ;;  %v1732_v25 = vpop.permute.xlu1 %1731 }
 0x288   : > { %v2385_v53 = vadd.f32 %v2384_v49, %v2383_v46  ;;  %v2030_v29 = vsel %vm2001_vm9, %v1997_v36, %v1732_v25  ;;  %v2487_v11 = vsel %vm378_vm0, %v2445_v15, 0.0  ;;  %v4394_v46 = vld [vmem:[#allocation26_spill] sm:$0xff] }
 0x289   : > { %v2485_v60 = vsel %vm378_vm0, %v2444_v41, 0.0  ;;  %2795 = vmatprep.mubr.msk.f32.mxu1 %vm2039_vm10, %v2030_v29  ;;  %v1802_v8 = vsel %vm378_vm0, %v489_v34, %v4394_v46 }
 0x28a   : > { %v2486_v16 = vadd.f32 %v2485_v60, %v2484_v51  ;;  %2796 = vmatmul.mubr.msk.f32.gmra.mrb[12].mxu1 %vm2039_vm10, %v2031_v32  ;;  %v1480_v7 = vpop.permute.xlu0 %1479  ;;  %v2387_v6 = vadd.f32 %v2386_v30, %v2385_v53  ;;  %v1835_v51 = vsel %vm1803_vm3, %v1802_v8, %v4395_v21 }
 0x28b   : > { %v1352_v33 = vpop.permute.xlu1 %1351  ;;  %v1868_v13 = vsel %vm1836_vm4, %v1835_v51, %v1098_v3 }
 0x28c   : > { %v2488_v50 = vadd.f32 %v2487_v11, %v2486_v16  ;;  %v1933_v5 = vsel %vm1902_vm6, %v1900_v22, %v1352_v33  ;;  %v1901_v17 = vsel %vm1869_vm5, %v1868_v13, %v1226_v52 }
 0x28d   : > { %v1966_v59 = vsel %vm1935_vm7, %v1933_v5, %v1480_v7 }
 0x28e   : > { %v1608_v12 = vpop.permute.xlu0 %1607 }
 0x28f   : > { %v1354_v37 = vpop.permute.xlu1 %1353  ;;  %v1999_v40 = vsel %vm1968_vm8, %v1966_v59, %v1608_v12 }
 0x290   : > { %v1934_v56 = vsel %vm1902_vm6, %v1901_v17, %v1354_v37 }
 0x292   : > { %v1736_v54 = vpop.permute.xlu0 %1735 }
 0x293   : > { %v2032_v42 = vsel %vm2001_vm9, %v1999_v40, %v1736_v54  ;;  %v1482_v47 = vpop.permute.xlu1 %1481 }
 0x294   : > { %2798 = vmatprep.mubr.msk.f32.mxu1 %vm2039_vm10, %v2032_v42  ;;  %v1967_v57 = vsel %vm1935_vm7, %v1934_v56, %v1482_v47 }
 0x297   : > { %v1610_v35 = vpop.permute.xlu1 %1609 }
 0x298   : > { %v2000_v44 = vsel %vm1968_vm8, %v1967_v57, %v1610_v35 }
 0x29b   : > { %v1738_v58 = vpop.permute.xlu1 %1737 }
 0x29c   : > { %v2033_v43 = vsel %vm2001_vm9, %v2000_v44, %v1738_v58 }
 0x29d   : > { %v2773_v0 = vpop.f32.mrb[12].mxu0  ;;  %2799 = vmatmul.mubr.msk.f32.gmra.mrb[14].mxu1 %vm2039_vm10, %v2033_v43 }
 0x29e   : > { %2552 = vst.msk [vmem:[%s4002_s30 + $0x68] sm:$0xff] %vm378_vm0, %v2773_v0  ;;  %v2266_v1 = vpop.f32.mrb[13].mxu0  ;;  %v2447_v3 = vmul.f32 %v2773_v0, %v2773_v0  ;;  %v2390_v61 = vsel %vm378_vm0, %v2773_v0, 0.0 }
 0x29f   : > { %v2388_v27 = vsel %vm378_vm0, %v2266_v1, 0.0  ;;  %v2446_v10 = vmul.f32 %v2266_v1, %v2266_v1  ;;  %2551 = vst.msk [vmem:[%s4002_s30 + $0x60] sm:$0xff] %vm378_vm0, %v2266_v1 }
 0x2a0   : > { %v2389_v63 = vadd.f32 %v2388_v27, %v2387_v6  ;;  %v2491_v62 = vsel %vm378_vm0, %v2447_v3, 0.0 }
 0x2a1   : > { %v2489_v55 = vsel %vm378_vm0, %v2446_v10, 0.0 }
 0x2a2   : > { %v2490_v45 = vadd.f32 %v2489_v55, %v2488_v50  ;;  %v2391_v24 = vadd.f32 %v2390_v61, %v2389_v63 }
 0x2a4   : > { %v2492_v26 = vadd.f32 %v2491_v62, %v2490_v45 }
 0x2b5   : > { %v2776_v52 = vpop.f32.mrb[14].mxu0 }
 0x2b6   : > { %2554 = vst.msk [vmem:[%s4002_s30 + $0x78] sm:$0xff] %vm378_vm0, %v2776_v52  ;;  %v2276_v2 = vpop.f32.mrb[15].mxu0  ;;  %v2449_v23 = vmul.f32 %v2776_v52, %v2776_v52  ;;  %v2394_v36 = vsel %vm378_vm0, %v2776_v52, 0.0 }
 0x2b7   : > { %v2392_v19 = vsel %vm378_vm0, %v2276_v2, 0.0  ;;  %v2448_v20 = vmul.f32 %v2276_v2, %v2276_v2  ;;  %2553 = vst.msk [vmem:[%s4002_s30 + $0x70] sm:$0xff] %vm378_vm0, %v2276_v2 }
 0x2b8   : > { %v2393_v48 = vadd.f32 %v2392_v19, %v2391_v24  ;;  %v2495_v15 = vsel %vm378_vm0, %v2449_v23, 0.0 }
 0x2b9   : > { %v2493_v31 = vsel %vm378_vm0, %v2448_v20, 0.0 }
 0x2ba   : > { %v2395_v4 = vadd.f32 %v2394_v36, %v2393_v48  ;;  %v2494_v14 = vadd.f32 %v2493_v31, %v2492_v26 }
 0x2bc   : > { %v2496_v49 = vadd.f32 %v2495_v15, %v2494_v14 }
 0x2cd   : > { %v2779_v41 = vpop.f32.mrb[0].mxu1 }
 0x2ce   : > { %2556 = vst.msk [vmem:[%s4002_s30 + $0x88] sm:$0xff] %vm378_vm0, %v2779_v41  ;;  %v2286_v32 = vpop.f32.mrb[1].mxu1  ;;  %v2451_v25 = vmul.f32 %v2779_v41, %v2779_v41  ;;  %v2398_v60 = vsel %vm378_vm0, %v2779_v41, 0.0 }
 0x2cf   : > { %v2396_v53 = vsel %vm378_vm0, %v2286_v32, 0.0  ;;  %v2450_v29 = vmul.f32 %v2286_v32, %v2286_v32  ;;  %2555 = vst.msk [vmem:[%s4002_s30 + $0x80] sm:$0xff] %vm378_vm0, %v2286_v32 }
 0x2d0   : > { %v2397_v30 = vadd.f32 %v2396_v53, %v2395_v4  ;;  %v2499_v7 = vsel %vm378_vm0, %v2451_v25, 0.0 }
 0x2d1   : > { %v2497_v28 = vsel %vm378_vm0, %v2450_v29, 0.0 }
 0x2d2   : > { %v2498_v18 = vadd.f32 %v2497_v28, %v2496_v49  ;;  %v2399_v16 = vadd.f32 %v2398_v60, %v2397_v30 }
 0x2d4   : > { %v2500_v6 = vadd.f32 %v2499_v7, %v2498_v18 }
 0x2e5   : > { %v2782_v39 = vpop.f32.mrb[2].mxu1 }
 0x2e6   : > { %2558 = vst.msk [vmem:[%s4002_s30 + $0x98] sm:$0xff] %vm378_vm0, %v2782_v39  ;;  %v2296_v9 = vpop.f32.mrb[3].mxu1  ;;  %v2453_v11 = vmul.f32 %v2782_v39, %v2782_v39  ;;  %v2402_v22 = vsel %vm378_vm0, %v2782_v39, 0.0 }
 0x2e7   : > { %v2400_v33 = vsel %vm378_vm0, %v2296_v9, 0.0  ;;  %v2452_v38 = vmul.f32 %v2296_v9, %v2296_v9  ;;  %2557 = vst.msk [vmem:[%s4002_s30 + $0x90] sm:$0xff] %vm378_vm0, %v2296_v9 }
 0x2e8   : > { %v2401_v50 = vadd.f32 %v2400_v33, %v2399_v16  ;;  %v2503_v59 = vsel %vm378_vm0, %v2453_v11, 0.0 }
 0x2e9   : > { %v2501_v5 = vsel %vm378_vm0, %v2452_v38, 0.0 }
 0x2ea   : > { %v2502_v12 = vadd.f32 %v2501_v5, %v2500_v6  ;;  %v2403_v37 = vadd.f32 %v2402_v22, %v2401_v50 }
 0x2ec   : > { %v2504_v34 = vadd.f32 %v2503_v59, %v2502_v12 }
 0x2fd   : > { %v2785_v40 = vpop.f32.mrb[4].mxu1 }
 0x2fe   : > { %2560 = vst.msk [vmem:[%s4002_s30 + $0xa8] sm:$0xff] %vm378_vm0, %v2785_v40  ;;  %v2306_v54 = vpop.f32.mrb[5].mxu1  ;;  %v2455_v42 = vmul.f32 %v2785_v40, %v2785_v40  ;;  %v2406_v21 = vsel %vm378_vm0, %v2785_v40, 0.0 }
 0x2ff   : > { %v2404_v47 = vsel %vm378_vm0, %v2306_v54, 0.0  ;;  %v2454_v46 = vmul.f32 %v2306_v54, %v2306_v54  ;;  %2559 = vst.msk [vmem:[%s4002_s30 + $0xa0] sm:$0xff] %vm378_vm0, %v2306_v54 }
 0x300   : > { %v2405_v8 = vadd.f32 %v2404_v47, %v2403_v37  ;;  %v2507_v17 = vsel %vm378_vm0, %v2455_v42, 0.0 }
 0x301   : > { %v2505_v51 = vsel %vm378_vm0, %v2454_v46, 0.0 }
 0x302   : > { %v2506_v13 = vadd.f32 %v2505_v51, %v2504_v34  ;;  %v2407_v35 = vadd.f32 %v2406_v21, %v2405_v8 }
 0x304   : > { %v2508_v56 = vadd.f32 %v2507_v17, %v2506_v13 }
 0x315   : > { %v2788_v57 = vpop.f32.mrb[6].mxu1 }
 0x316   : > { %2562 = vst.msk [vmem:[%s4002_s30 + $0xb8] sm:$0xff] %vm378_vm0, %v2788_v57  ;;  %v2316_v44 = vpop.f32.mrb[7].mxu1  ;;  %v2457_v58 = vmul.f32 %v2788_v57, %v2788_v57  ;;  %v2410_v3 = vsel %vm378_vm0, %v2788_v57, 0.0 }
 0x317   : > { %v2408_v43 = vsel %vm378_vm0, %v2316_v44, 0.0  ;;  %v2456_v0 = vmul.f32 %v2316_v44, %v2316_v44  ;;  %2561 = vst.msk [vmem:[%s4002_s30 + $0xb0] sm:$0xff] %vm378_vm0, %v2316_v44 }
 0x318   : > { %v2409_v1 = vadd.f32 %v2408_v43, %v2407_v35  ;;  %v2511_v61 = vsel %vm378_vm0, %v2457_v58, 0.0 }
 0x319   : > { %v2509_v27 = vsel %vm378_vm0, %v2456_v0, 0.0 }
 0x31a   : > { %v2510_v10 = vadd.f32 %v2509_v27, %v2508_v56  ;;  %v2411_v63 = vadd.f32 %v2410_v3, %v2409_v1 }
 0x31c   : > { %v2512_v55 = vadd.f32 %v2511_v61, %v2510_v10 }
 0x32d   : > { %v2791_v45 = vpop.f32.mrb[8].mxu1 }
 0x32e   : > { %2564 = vst.msk [vmem:[%s4002_s30 + $0xc8] sm:$0xff] %vm378_vm0, %v2791_v45  ;;  %v2326_v24 = vpop.f32.mrb[9].mxu1  ;;  %v2459_v62 = vmul.f32 %v2791_v45, %v2791_v45  ;;  %v2414_v23 = vsel %vm378_vm0, %v2791_v45, 0.0 }
 0x32f   : > { %v2412_v26 = vsel %vm378_vm0, %v2326_v24, 0.0  ;;  %v2458_v52 = vmul.f32 %v2326_v24, %v2326_v24  ;;  %2563 = vst.msk [vmem:[%s4002_s30 + $0xc0] sm:$0xff] %vm378_vm0, %v2326_v24 }
 0x330   : > { %v2413_v2 = vadd.f32 %v2412_v26, %v2411_v63  ;;  %v2515_v36 = vsel %vm378_vm0, %v2459_v62, 0.0 }
 0x331   : > { %v2513_v19 = vsel %vm378_vm0, %v2458_v52, 0.0 }
 0x332   : > { %v2514_v20 = vadd.f32 %v2513_v19, %v2512_v55  ;;  %v2415_v48 = vadd.f32 %v2414_v23, %v2413_v2 }
 0x334   : > { %v2516_v31 = vadd.f32 %v2515_v36, %v2514_v20 }
 0x345   : > { %v2794_v4 = vpop.f32.mrb[10].mxu1 }
 0x346   : > { %2566 = vst.msk [vmem:[%s4002_s30 + $0xd8] sm:$0xff] %vm378_vm0, %v2794_v4  ;;  %v2336_v14 = vpop.f32.mrb[11].mxu1  ;;  %v2461_v15 = vmul.f32 %v2794_v4, %v2794_v4  ;;  %v2418_v25 = vsel %vm378_vm0, %v2794_v4, 0.0 }
 0x347   : > { %v2416_v49 = vsel %vm378_vm0, %v2336_v14, 0.0  ;;  %v2460_v41 = vmul.f32 %v2336_v14, %v2336_v14  ;;  %2565 = vst.msk [vmem:[%s4002_s30 + $0xd0] sm:$0xff] %vm378_vm0, %v2336_v14 }
 0x348   : > { %v2417_v32 = vadd.f32 %v2416_v49, %v2415_v48  ;;  %v2519_v60 = vsel %vm378_vm0, %v2461_v15, 0.0 }
 0x349   : > { %v2517_v53 = vsel %vm378_vm0, %v2460_v41, 0.0 }
 0x34a   : > { %v2518_v29 = vadd.f32 %v2517_v53, %v2516_v31  ;;  %v2419_v30 = vadd.f32 %v2418_v25, %v2417_v32 }
 0x34c   : > { %v2520_v28 = vadd.f32 %v2519_v60, %v2518_v29 }
 0x35d   : > { %v2797_v18 = vpop.f32.mrb[12].mxu1 }
 0x35e   : > { %2568 = vst.msk [vmem:[%s4002_s30 + $0xe8] sm:$0xff] %vm378_vm0, %v2797_v18  ;;  %v2346_v16 = vpop.f32.mrb[13].mxu1  ;;  %v2463_v7 = vmul.f32 %v2797_v18, %v2797_v18  ;;  %v2422_v11 = vsel %vm378_vm0, %v2797_v18, 0.0 }
 0x35f   : > { %v2420_v6 = vsel %vm378_vm0, %v2346_v16, 0.0  ;;  %v2462_v39 = vmul.f32 %v2346_v16, %v2346_v16  ;;  %2567 = vst.msk [vmem:[%s4002_s30 + $0xe0] sm:$0xff] %vm378_vm0, %v2346_v16 }
 0x360   : > { %v2421_v9 = vadd.f32 %v2420_v6, %v2419_v30  ;;  %v2523_v22 = vsel %vm378_vm0, %v2463_v7, 0.0 }
 0x361   : > { %v2521_v33 = vsel %vm378_vm0, %v2462_v39, 0.0 }
 0x362   : > { %v2522_v38 = vadd.f32 %v2521_v33, %v2520_v28  ;;  %v2423_v50 = vadd.f32 %v2422_v11, %v2421_v9 }
 0x364   : > { %v2524_v5 = vadd.f32 %v2523_v22, %v2522_v38 }
 0x370   : > { %v2800_v12 = vpop.f32.mrb[14].mxu1 }
 0x371   : > { %2570 = vst.msk [vmem:[%s4002_s30 + $0xf8] sm:$0xff] %vm378_vm0, %v2800_v12  ;;  %v2356_v37 = vpop.f32.mrb[15].mxu1  ;;  %v2465_v59 = vmul.f32 %v2800_v12, %v2800_v12  ;;  %v2426_v42 = vsel %vm378_vm0, %v2800_v12, 0.0 }
 0x372   : > { %v2424_v34 = vsel %vm378_vm0, %v2356_v37, 0.0  ;;  %v2464_v40 = vmul.f32 %v2356_v37, %v2356_v37  ;;  %2569 = vst.msk [vmem:[%s4002_s30 + $0xf0] sm:$0xff] %vm378_vm0, %v2356_v37 }
 0x373   : > { %v2425_v54 = vadd.f32 %v2424_v34, %v2423_v50  ;;  %v2527_v21 = vsel %vm378_vm0, %v2465_v59, 0.0 }
 0x374   : > { %v2525_v47 = vsel %vm378_vm0, %v2464_v40, 0.0 }
 0x375   : > { %v2427_v46 = vadd.f32 %v2426_v42, %v2425_v54  ;;  %v2526_v8 = vadd.f32 %v2525_v47, %v2524_v5 }
 0x377   : > { %v2428_v51 = vrot.slane %v2427_v46, 4  ;;  %v2528_v13 = vadd.f32 %v2527_v21, %v2526_v8 }
 0x379   : > { %v2429_v35 = vadd.f32 %v2428_v51, %v2427_v46  ;;  %v2529_v17 = vrot.slane %v2528_v13, 4 }
 0x37b   : > { %v2430_v56 = vrot.slane %v2429_v35, 2  ;;  %v2530_v57 = vadd.f32 %v2529_v17, %v2528_v13 }
 0x37d   : > { %v2431_v44 = vadd.f32 %v2430_v56, %v2429_v35  ;;  %v2531_v58 = vrot.slane %v2530_v57, 2 }
 0x37f   : > { %v2432_v43 = vrot.slane %v2431_v44, 1  ;;  %v2532_v0 = vadd.f32 %v2531_v58, %v2530_v57 }
 0x381   : > { %v2533_v1 = vrot.slane %v2532_v0, 1  ;;  %v2433_v3 = vadd.f32 %v2432_v43, %v2431_v44 }
 0x383   : > { %v2534_v27 = vadd.f32 %v2533_v1, %v2532_v0 }
 0x385   : > { %v2536_v10 = vsel %vm2535_vm11, %v2433_v3, %v2534_v27 }
 0x386   : > { %2538 = vst.msk [vmem:[%s235_s8] sm:$0x3] %vm2537_vm12, %v2536_v10 }
 0x387 PF: > { %s16_s18 = sadd.s32 1, %s2840_s18  }
 0x388   : > { %p13_p4 = scmp.ge.s32.totalorder %s16_s18, 4  }
 0x38a   :  { %15 = sbr.rel (!%p13_p4) target bundleno = 1 (0x1), region = 81 }

</bundles_post_ra>
